<compile_context>
chip_gen: v6e
topology: v6e:2x2x1
jax: 0.10.0
libtpu: 0.0.40
codegen_flags: <defaults>
</compile_context>

<pallas_src>
import functools

import jax
import jax.numpy as jnp
from jax.experimental import pallas as pl
from jax.experimental.pallas import tpu as pltpu

LN_EPS = 1e-5  # torch.nn.LayerNorm default


def _layernorm(x, w, b):
    mu = jnp.mean(x, axis=-1, keepdims=True)
    var = jnp.mean(jnp.square(x - mu), axis=-1, keepdims=True)
    return (x - mu) * jax.lax.rsqrt(var + LN_EPS) * w + b


def _pick_row_tile(n, cap):
    """Largest divisor of n that is <= cap and a multiple of 8 (or n itself)."""
    if n <= cap:
        return n
    for d in range(cap, 0, -1):
        if n % d == 0 and d % 8 == 0:
            return d
    return n


def _pick_batch_tile(n, cap):
    """Largest divisor of n that is <= cap (leading dim, no (8,128) rule)."""
    cap = min(cap, n)
    for d in range(cap, 0, -1):
        if n % d == 0:
            return d
    return n


# ----------------------------- kernels --------------------------------------
def window_attn_kernel(x_ref, mask_ref, lnw_ref, lnb_ref, wqkv_ref, bqkv_ref,
                       wproj_ref, bproj_ref, o_ref, *, num_heads):
    # x_ref block: (WB, Nw, C)  -- a batch of WB windows of raw (pre-norm1) tokens
    WB, Nw, C = x_ref.shape
    hd = C // num_heads

    x = x_ref[...].astype(jnp.float32)                          # (WB, Nw, C)
    # Fused norm1; padded tokens are zeroed to reproduce torch's
    # "LayerNorm first, then zero-pad" ordering.
    h = _layernorm(x, lnw_ref[...], lnb_ref[...]) * mask_ref[...]

    h2 = h.reshape(WB * Nw, C)
    # attention scale already folded into the q-columns of wqkv/bqkv
    qkv = jnp.dot(h2, wqkv_ref[...],
                  preferred_element_type=jnp.float32) + bqkv_ref[...]
    qkv = qkv.reshape(WB, Nw, 3 * C)

    wproj = wproj_ref[...]
    out = jnp.zeros((WB * Nw, C), jnp.float32) + bproj_ref[...]  # proj bias
    for hh in range(num_heads):                                  # static unroll
        q = qkv[:, :, hh * hd:(hh + 1) * hd]                     # (WB, Nw, hd)
        k = qkv[:, :, C + hh * hd:C + (hh + 1) * hd]
        v = qkv[:, :, 2 * C + hh * hd:2 * C + (hh + 1) * hd]

        s = jnp.einsum('wqd,wkd->wqk', q, k,
                       preferred_element_type=jnp.float32)       # (WB, Nw, Nw)
        s = s - jnp.max(s, axis=-1, keepdims=True)
        p = jnp.exp(s)
        p = p * pl.reciprocal(jnp.sum(p, axis=-1, keepdims=True), approx=True)
        # NOTE: torch's isinf|isnan masked_fill is dead code here (no mask,
        # max-subtracted softmax can never produce inf/nan), so it is omitted.

        oh = jnp.einsum('wqk,wkd->wqd', p, v,
                        preferred_element_type=jnp.float32)      # (WB, Nw, hd)
        # per-head projection slab, accumulated (no head concat / relayout)
        out = out + jnp.dot(oh.reshape(WB * Nw, hd),
                            wproj[hh * hd:(hh + 1) * hd, :],
                            preferred_element_type=jnp.float32)

    o_ref[...] = out.reshape(WB, Nw, C).astype(o_ref.dtype)


def mlp_residual_kernel(x_ref, a_ref, lnw_ref, lnb_ref, w1_ref, b1_ref,
                        w2_ref, b2_ref, o_ref):
    # fused: xr = x + attn_out ; out = xr + fc2(gelu(fc1(layernorm(xr))))
    xr = x_ref[...].astype(jnp.float32) + a_ref[...].astype(jnp.float32)
    h = _layernorm(xr, lnw_ref[...], lnb_ref[...])
    h = jnp.dot(h, w1_ref[...], preferred_element_type=jnp.float32) + b1_ref[...]
    h = jax.nn.gelu(h, approximate=False)                        # exact GELU
    h = jnp.dot(h, w2_ref[...], preferred_element_type=jnp.float32) + b2_ref[...]
    o_ref[...] = (xr + h).astype(o_ref.dtype)


# ----------------------------- wrappers -------------------------------------
def window_attn_pallas(xw, mw, lnw, lnb, wqkv, bqkv, wproj, bproj,
                       *, num_heads, scale, wb_cap=16):
    Bw, Nw, C = xw.shape
    WB = _pick_batch_tile(Bw, wb_cap)

    # Fold the attention scale into the q-columns of the qkv weight & bias
    # (one-time constant transform, removes per-token multiplies in-kernel).
    wqkv_s = jnp.concatenate([wqkv[:, :C] * scale, wqkv[:, C:]], axis=1)
    bqkv_s = jnp.concatenate([bqkv[:C] * scale, bqkv[C:]], axis=0)

    kernel = functools.partial(window_attn_kernel, num_heads=num_heads)
    return pl.pallas_call(
        kernel,
        out_shape=jax.ShapeDtypeStruct((Bw, Nw, C), xw.dtype),
        grid=(Bw // WB,),
        in_specs=[pl.BlockSpec((WB, Nw, C), lambda i: (i, 0, 0)),
                  pl.BlockSpec((WB, Nw, 1), lambda i: (i, 0, 0)),
                  pl.BlockSpec((1, C), lambda i: (0, 0)),
                  pl.BlockSpec((1, C), lambda i: (0, 0)),
                  pl.BlockSpec((C, 3 * C), lambda i: (0, 0)),
                  pl.BlockSpec((1, 3 * C), lambda i: (0, 0)),
                  pl.BlockSpec((C, C), lambda i: (0, 0)),
                  pl.BlockSpec((1, C), lambda i: (0, 0))],
        out_specs=pl.BlockSpec((WB, Nw, C), lambda i: (i, 0, 0)),
        compiler_params=pltpu.CompilerParams(
            dimension_semantics=("parallel",)),
    )(xw, mw, lnw.reshape(1, C), lnb.reshape(1, C),
      wqkv_s, bqkv_s.reshape(1, 3 * C), wproj, bproj.reshape(1, C))


def mlp_pallas(x2d, a2d, lnw, lnb, w1, b1, w2, b2, *, tm_cap=512):
    M, C = x2d.shape
    Hd = w1.shape[1]
    tm = _pick_row_tile(M, tm_cap)
    return pl.pallas_call(
        mlp_residual_kernel,
        out_shape=jax.ShapeDtypeStruct((M, C), x2d.dtype),
        grid=(M // tm,),
        in_specs=[pl.BlockSpec((tm, C), lambda i: (i, 0)),
                  pl.BlockSpec((tm, C), lambda i: (i, 0)),
                  pl.BlockSpec((1, C), lambda i: (0, 0)),
                  pl.BlockSpec((1, C), lambda i: (0, 0)),
                  pl.BlockSpec((C, Hd), lambda i: (0, 0)),
                  pl.BlockSpec((1, Hd), lambda i: (0, 0)),
                  pl.BlockSpec((Hd, C), lambda i: (0, 0)),
                  pl.BlockSpec((1, C), lambda i: (0, 0))],
        out_specs=pl.BlockSpec((tm, C), lambda i: (i, 0)),
        compiler_params=pltpu.CompilerParams(
            dimension_semantics=("parallel",)),
    )(x2d, a2d, lnw.reshape(1, C), lnb.reshape(1, C),
      w1, b1.reshape(1, Hd), w2, b2.reshape(1, C))


# ----------------------------- Block forward --------------------------------
def block_forward(x, H, W, params, *, window_size, num_heads,
                  tm_cap=512, wb_cap=16):
    """Block.forward(x, H, W) with window=True (WindowAttention), drop_path=0,
    dropout=0 (eval semantics)."""
    B, N, C = x.shape
    ws = window_size[0]
    scale = (C // num_heads) ** (-0.5)

    # ---- window partition of the RAW tokens (norm1 is fused into the kernel)
    xr = x.reshape(B, H, W, C)
    pad_b = (window_size[0] - H % window_size[0]) % window_size[0]
    pad_r = (window_size[1] - W % window_size[1]) % window_size[1]
    mask = jnp.ones((B, H, W, 1), x.dtype)
    if pad_b or pad_r:
        xr = jnp.pad(xr, ((0, 0), (0, pad_b), (0, pad_r), (0, 0)))
        mask = jnp.pad(mask, ((0, 0), (0, pad_b), (0, pad_r), (0, 0)))
    Hp, Wp = H + pad_b, W + pad_r

    def _partition(t):                      # (B,Hp,Wp,c) -> (Bw, ws*ws, c)
        c = t.shape[-1]
        t = t.reshape(B, Hp // ws, ws, Wp // ws, ws, c)
        return t.transpose(0, 1, 3, 2, 4, 5).reshape(-1, ws * ws, c)

    xw = _partition(xr)
    mw = _partition(mask)

    aw = window_attn_pallas(xw, mw, params["ln1_w"], params["ln1_b"],
                            params["qkv_w"], params["qkv_b"],
                            params["proj_w"], params["proj_b"],
                            num_heads=num_heads, scale=scale, wb_cap=wb_cap)

    # window_reverse (glue) + crop
    a = aw.reshape(B, Hp // ws, Wp // ws, ws, ws, C)
    a = a.transpose(0, 1, 3, 2, 4, 5).reshape(B, Hp, Wp, C)
    if pad_b or pad_r:
        a = a[:, :H, :W, :]
    a = a.reshape(B, N, C)

    # ---- (x + attn) and (norm2 + mlp + residual), all fused in one kernel
    out = mlp_pallas(x.reshape(B * N, C), a.reshape(B * N, C),
                     params["ln2_w"], params["ln2_b"],
                     params["fc1_w"], params["fc1_b"],
                     params["fc2_w"], params["fc2_b"], tm_cap=tm_cap)
    return out.reshape(B, N, C)


# ----------------------------- pure-JAX reference ----------------------------
def block_reference(x, H, W, params, *, window_size, num_heads):
    B, N, C = x.shape
    ws = window_size[0]
    hd = C // num_heads
    scale = hd ** (-0.5)

    h = _layernorm(x, params["ln1_w"], params["ln1_b"])
    hx = h.reshape(B, H, W, C)
    pad_b = (window_size[0] - H % window_size[0]) % window_size[0]
    pad_r = (window_size[1] - W % window_size[1]) % window_size[1]
    if pad_b or pad_r:
        hx = jnp.pad(hx, ((0, 0), (0, pad_b), (0, pad_r), (0, 0)))
    Hp, Wp = H + pad_b, W + pad_r
    xw = hx.reshape(B, Hp // ws, ws, Wp // ws, ws, C)
    xw = xw.transpose(0, 1, 3, 2, 4, 5).reshape(-1, ws * ws, C)

    Bw, Nw, _ = xw.shape
    qkv = xw @ params["qkv_w"] + params["qkv_b"]
    qkv = qkv.reshape(Bw, Nw, 3, num_heads, hd).transpose(2, 0, 3, 1, 4)
    q, k, v = qkv[0], qkv[1], qkv[2]
    attn = (q * scale) @ jnp.swapaxes(k, -2, -1)
    attn = jax.nn.softmax(attn, axis=-1)
    attn = jnp.where(jnp.isinf(attn) | jnp.isnan(attn), 0.0, attn)
    o = (attn @ v).transpose(0, 2, 1, 3).reshape(Bw, Nw, C)
    o = o @ params["proj_w"] + params["proj_b"]

    a = o.reshape(B, Hp // ws, Wp // ws, ws, ws, C)
    a = a.transpose(0, 1, 3, 2, 4, 5).reshape(B, Hp, Wp, C)
    if pad_b or pad_r:
        a = a[:, :H, :W, :]
    x = x + a.reshape(B, N, C)

    h2 = _layernorm(x, params["ln2_w"], params["ln2_b"])
    h2 = jax.nn.gelu(h2 @ params["fc1_w"] + params["fc1_b"], approximate=False)
    h2 = h2 @ params["fc2_w"] + params["fc2_b"]
    return x + h2


# ----------------------------- main ------------------------------------------
if __name__ == "__main__":
    key = jax.random.PRNGKey(0)
    B, H, W = 2, 6, 6           # H,W not multiples of window -> exercises padding
    C = 32                      # dim
    num_heads = 4
    window_size = (4, 4)
    mlp_hidden = int(C * 4.0)
    N = H * W

    ks = jax.random.split(key, 16)
    f32 = jnp.float32
    params = {
        "ln1_w": 1.0 + 0.1 * jax.random.normal(ks[9], (C,), f32),
        "ln1_b": 0.1 * jax.random.normal(ks[10], (C,), f32),
        "qkv_w": 0.02 * jax.random.normal(ks[1], (C, 3 * C), f32),
        "qkv_b": 0.02 * jax.random.normal(ks[2], (3 * C,), f32),
        "proj_w": 0.02 * jax.random.normal(ks[3], (C, C), f32),
        "proj_b": 0.02 * jax.random.normal(ks[4], (C,), f32),
        "ln2_w": 1.0 + 0.1 * jax.random.normal(ks[11], (C,), f32),
        "ln2_b": 0.1 * jax.random.normal(ks[12], (C,), f32),
        "fc1_w": 0.02 * jax.random.normal(ks[5], (C, mlp_hidden), f32),
        "fc1_b": 0.02 * jax.random.normal(ks[6], (mlp_hidden,), f32),
        "fc2_w": 0.02 * jax.random.normal(ks[7], (mlp_hidden, C), f32),
        "fc2_b": 0.02 * jax.random.normal(ks[8], (C,), f32),
    }
    # TODO(synk): rel_pos_h / rel_pos_w params exist only under COMPAT and are
    # unused when rel_pos_spatial=False, so they are omitted here.

    x = jax.random.normal(ks[0], (B, N, C), f32)

    out = block_forward(x, H, W, params,
                        window_size=window_size, num_heads=num_heads)
    out = jax.block_until_ready(out)

    ref = jax.block_until_ready(
        block_reference(x, H, W, params,
                        window_size=window_size, num_heads=num_heads))

    if not jnp.allclose(out, ref, atol=5e-3, rtol=5e-3):
        raise AssertionError(
            f"mismatch, max abs diff = {float(jnp.max(jnp.abs(out - ref)))}")

    print("KERNEL_OK")
</pallas_src>

<mosaic_0001>
module attributes {stable_mosaic.version = 11 : i64} {
  func.func @window_attn_kernel(%arg0: i32, %arg1: memref<8x16x32xf32, #tpu.memory_space<vmem>>, %arg2: memref<8x16x1xf32, #tpu.memory_space<vmem>>, %arg3: memref<1x32xf32, #tpu.memory_space<vmem>>, %arg4: memref<1x32xf32, #tpu.memory_space<vmem>>, %arg5: memref<32x96xf32, #tpu.memory_space<vmem>>, %arg6: memref<1x96xf32, #tpu.memory_space<vmem>>, %arg7: memref<32x32xf32, #tpu.memory_space<vmem>>, %arg8: memref<1x32xf32, #tpu.memory_space<vmem>>, %arg9: memref<8x16x32xf32, #tpu.memory_space<vmem>>) attributes {dimension_semantics = [#tpu.dimension_semantics<parallel>], iteration_bounds = array<i64: 1>, scalar_prefetch = 0 : i64, scratch_operands = 0 : i64, tpu.core_type = #tpu.core_type<tc>, window_params = [{transform_indices = @transform_0, window_bounds = array<i64: 8, 16, 32>}, {transform_indices = @transform_1, window_bounds = array<i64: 8, 16, 1>}, {pipeline_mode = #tpu.pipeline_mode<synchronous>, transform_indices = @transform_2, window_bounds = array<i64: 1, 32>}, {pipeline_mode = #tpu.pipeline_mode<synchronous>, transform_indices = @transform_3, window_bounds = array<i64: 1, 32>}, {pipeline_mode = #tpu.pipeline_mode<synchronous>, transform_indices = @transform_4, window_bounds = array<i64: 32, 96>}, {pipeline_mode = #tpu.pipeline_mode<synchronous>, transform_indices = @transform_5, window_bounds = array<i64: 1, 96>}, {pipeline_mode = #tpu.pipeline_mode<synchronous>, transform_indices = @transform_6, window_bounds = array<i64: 32, 32>}, {pipeline_mode = #tpu.pipeline_mode<synchronous>, transform_indices = @transform_7, window_bounds = array<i64: 1, 32>}, {transform_indices = @transform_8, window_bounds = array<i64: 8, 16, 32>}]} {
    %c0 = arith.constant 0 : index
    %c0_0 = arith.constant 0 : index
    %c0_1 = arith.constant 0 : index
    %0 = vector.load %arg1[%c0, %c0_0, %c0_1] : memref<8x16x32xf32, #tpu.memory_space<vmem>>, vector<8x16x32xf32>
    %c0_2 = arith.constant 0 : index
    %c0_3 = arith.constant 0 : index
    %1 = vector.load %arg3[%c0_2, %c0_3] : memref<1x32xf32, #tpu.memory_space<vmem>>, vector<1x32xf32>
    %c0_4 = arith.constant 0 : index
    %c0_5 = arith.constant 0 : index
    %2 = vector.load %arg4[%c0_4, %c0_5] : memref<1x32xf32, #tpu.memory_space<vmem>>, vector<1x32xf32>
    %cst = arith.constant dense<0.000000e+00> : vector<8x16xf32>
    %3 = vector.multi_reduction <add>, %0, %cst [2] : vector<8x16x32xf32> to vector<8x16xf32>
    %4 = vector.shape_cast %3 : vector<8x16xf32> to vector<8x16x1xf32>
    %cst_6 = arith.constant 3.200000e+01 : f32
    %5 = vector.broadcast %cst_6 : f32 to vector<8x16x1xf32>
    %6 = arith.divf %4, %5 : vector<8x16x1xf32>
    %7 = vector.broadcast %6 : vector<8x16x1xf32> to vector<8x16x32xf32>
    %8 = arith.subf %0, %7 : vector<8x16x32xf32>
    %9 = arith.mulf %8, %8 : vector<8x16x32xf32>
    %cst_7 = arith.constant dense<0.000000e+00> : vector<8x16xf32>
    %10 = vector.multi_reduction <add>, %9, %cst_7 [2] : vector<8x16x32xf32> to vector<8x16xf32>
    %11 = vector.shape_cast %10 : vector<8x16xf32> to vector<8x16x1xf32>
    %cst_8 = arith.constant 3.200000e+01 : f32
    %12 = vector.broadcast %cst_8 : f32 to vector<8x16x1xf32>
    %13 = arith.divf %11, %12 : vector<8x16x1xf32>
    %14 = vector.broadcast %6 : vector<8x16x1xf32> to vector<8x16x32xf32>
    %15 = arith.subf %0, %14 : vector<8x16x32xf32>
    %cst_9 = arith.constant 9.99999974E-6 : f32
    %16 = vector.broadcast %cst_9 : f32 to vector<8x16x1xf32>
    %17 = arith.addf %13, %16 : vector<8x16x1xf32>
    %18 = math.rsqrt %17 : vector<8x16x1xf32>
    %19 = vector.broadcast %18 : vector<8x16x1xf32> to vector<8x16x32xf32>
    %20 = arith.mulf %15, %19 : vector<8x16x32xf32>
    %21 = vector.shape_cast %1 : vector<1x32xf32> to vector<1x1x32xf32>
    %22 = vector.broadcast %21 : vector<1x1x32xf32> to vector<8x16x32xf32>
    %23 = arith.mulf %20, %22 : vector<8x16x32xf32>
    %24 = vector.shape_cast %2 : vector<1x32xf32> to vector<1x1x32xf32>
    %25 = vector.broadcast %24 : vector<1x1x32xf32> to vector<8x16x32xf32>
    %26 = arith.addf %23, %25 : vector<8x16x32xf32>
    %c0_10 = arith.constant 0 : index
    %c0_11 = arith.constant 0 : index
    %c0_12 = arith.constant 0 : index
    %27 = vector.load %arg2[%c0_10, %c0_11, %c0_12] : memref<8x16x1xf32, #tpu.memory_space<vmem>>, vector<8x16x1xf32>
    %28 = vector.broadcast %27 : vector<8x16x1xf32> to vector<8x16x32xf32>
    %29 = arith.mulf %26, %28 : vector<8x16x32xf32>
    %30 = vector.shape_cast %29 : vector<8x16x32xf32> to vector<128x32xf32>
    %c0_13 = arith.constant 0 : index
    %c0_14 = arith.constant 0 : index
    %31 = vector.load %arg5[%c0_13, %c0_14] : memref<32x96xf32, #tpu.memory_space<vmem>>, vector<32x96xf32>
    %cst_15 = arith.constant dense<0.000000e+00> : vector<128x96xf32>
    %32 = tpu.matmul %30, %31, %cst_15 {dimension_numbers = #tpu.dot_dimension_numbers<[1], [0], [0], [1], [0, 0, 1, 1], [], []>} : vector<128x32xf32>, vector<32x96xf32>, vector<128x96xf32> -> vector<128x96xf32>
    %c0_16 = arith.constant 0 : index
    %c0_17 = arith.constant 0 : index
    %33 = vector.load %arg6[%c0_16, %c0_17] : memref<1x96xf32, #tpu.memory_space<vmem>>, vector<1x96xf32>
    %34 = vector.broadcast %33 : vector<1x96xf32> to vector<128x96xf32>
    %35 = arith.addf %32, %34 : vector<128x96xf32>
    %36 = vector.shape_cast %35 : vector<128x96xf32> to vector<8x16x96xf32>
    %c0_18 = arith.constant 0 : index
    %c0_19 = arith.constant 0 : index
    %37 = vector.load %arg7[%c0_18, %c0_19] : memref<32x32xf32, #tpu.memory_space<vmem>>, vector<32x32xf32>
    %cst_20 = arith.constant 0.000000e+00 : f32
    %38 = vector.broadcast %cst_20 : f32 to vector<128x32xf32>
    %c0_21 = arith.constant 0 : index
    %c0_22 = arith.constant 0 : index
    %39 = vector.load %arg8[%c0_21, %c0_22] : memref<1x32xf32, #tpu.memory_space<vmem>>, vector<1x32xf32>
    %40 = vector.broadcast %39 : vector<1x32xf32> to vector<128x32xf32>
    %41 = arith.addf %38, %40 : vector<128x32xf32>
    %42 = vector.extract_strided_slice %36 {offsets = [0, 0, 0], sizes = [8, 16, 8], strides = [1, 1, 1]} : vector<8x16x96xf32> to vector<8x16x8xf32>
    %43 = vector.extract_strided_slice %36 {offsets = [0, 0, 32], sizes = [8, 16, 8], strides = [1, 1, 1]} : vector<8x16x96xf32> to vector<8x16x8xf32>
    %44 = vector.extract_strided_slice %36 {offsets = [0, 0, 64], sizes = [8, 16, 8], strides = [1, 1, 1]} : vector<8x16x96xf32> to vector<8x16x8xf32>
    "tpu.trace_start"() <{level = 10 : i32, message = "wqd,wkd->wqk"}> : () -> ()
    %cst_23 = arith.constant dense<0.000000e+00> : vector<8x16x16xf32>
    %45 = tpu.matmul %42, %43, %cst_23 {dimension_numbers = #tpu.dot_dimension_numbers<[2], [2], [1], [1], [0, 0, 0, 1, 1, 1], [0], [0]>} : vector<8x16x8xf32>, vector<8x16x8xf32>, vector<8x16x16xf32> -> vector<8x16x16xf32>
    "tpu.trace_stop"() : () -> ()
    %cst_24 = arith.constant dense<0xFF800000> : vector<8x16xf32>
    %46 = vector.multi_reduction <maximumf>, %45, %cst_24 [2] : vector<8x16x16xf32> to vector<8x16xf32>
    %47 = vector.shape_cast %46 : vector<8x16xf32> to vector<8x16x1xf32>
    %48 = vector.broadcast %47 : vector<8x16x1xf32> to vector<8x16x16xf32>
    %49 = arith.subf %45, %48 : vector<8x16x16xf32>
    %50 = math.exp %49 : vector<8x16x16xf32>
    %cst_25 = arith.constant dense<0.000000e+00> : vector<8x16xf32>
    %51 = vector.multi_reduction <add>, %50, %cst_25 [2] : vector<8x16x16xf32> to vector<8x16xf32>
    %52 = vector.shape_cast %51 : vector<8x16xf32> to vector<8x16x1xf32>
    %53 = tpu.reciprocal %52 {approx = true} : vector<8x16x1xf32> -> vector<8x16x1xf32>
    %54 = vector.broadcast %53 : vector<8x16x1xf32> to vector<8x16x16xf32>
    %55 = arith.mulf %50, %54 : vector<8x16x16xf32>
    "tpu.trace_start"() <{level = 10 : i32, message = "wqk,wkd->wqd"}> : () -> ()
    %cst_26 = arith.constant dense<0.000000e+00> : vector<8x16x8xf32>
    %56 = tpu.matmul %55, %44, %cst_26 {dimension_numbers = #tpu.dot_dimension_numbers<[2], [1], [1], [2], [0, 0, 0, 1, 1, 2], [0], [0]>} : vector<8x16x16xf32>, vector<8x16x8xf32>, vector<8x16x8xf32> -> vector<8x16x8xf32>
    "tpu.trace_stop"() : () -> ()
    %57 = vector.shape_cast %56 : vector<8x16x8xf32> to vector<128x8xf32>
    %58 = vector.extract_strided_slice %37 {offsets = [0, 0], sizes = [8, 32], strides = [1, 1]} : vector<32x32xf32> to vector<8x32xf32>
    %cst_27 = arith.constant dense<0.000000e+00> : vector<128x32xf32>
    %59 = tpu.matmul %57, %58, %cst_27 {dimension_numbers = #tpu.dot_dimension_numbers<[1], [0], [0], [1], [0, 0, 1, 1], [], []>} : vector<128x8xf32>, vector<8x32xf32>, vector<128x32xf32> -> vector<128x32xf32>
    %60 = arith.addf %41, %59 : vector<128x32xf32>
    %61 = vector.extract_strided_slice %36 {offsets = [0, 0, 8], sizes = [8, 16, 8], strides = [1, 1, 1]} : vector<8x16x96xf32> to vector<8x16x8xf32>
    %62 = vector.extract_strided_slice %36 {offsets = [0, 0, 40], sizes = [8, 16, 8], strides = [1, 1, 1]} : vector<8x16x96xf32> to vector<8x16x8xf32>
    %63 = vector.extract_strided_slice %36 {offsets = [0, 0, 72], sizes = [8, 16, 8], strides = [1, 1, 1]} : vector<8x16x96xf32> to vector<8x16x8xf32>
    "tpu.trace_start"() <{level = 10 : i32, message = "wqd,wkd->wqk"}> : () -> ()
    %cst_28 = arith.constant dense<0.000000e+00> : vector<8x16x16xf32>
    %64 = tpu.matmul %61, %62, %cst_28 {dimension_numbers = #tpu.dot_dimension_numbers<[2], [2], [1], [1], [0, 0, 0, 1, 1, 1], [0], [0]>} : vector<8x16x8xf32>, vector<8x16x8xf32>, vector<8x16x16xf32> -> vector<8x16x16xf32>
    "tpu.trace_stop"() : () -> ()
    %cst_29 = arith.constant dense<0xFF800000> : vector<8x16xf32>
    %65 = vector.multi_reduction <maximumf>, %64, %cst_29 [2] : vector<8x16x16xf32> to vector<8x16xf32>
    %66 = vector.shape_cast %65 : vector<8x16xf32> to vector<8x16x1xf32>
    %67 = vector.broadcast %66 : vector<8x16x1xf32> to vector<8x16x16xf32>
    %68 = arith.subf %64, %67 : vector<8x16x16xf32>
    %69 = math.exp %68 : vector<8x16x16xf32>
    %cst_30 = arith.constant dense<0.000000e+00> : vector<8x16xf32>
    %70 = vector.multi_reduction <add>, %69, %cst_30 [2] : vector<8x16x16xf32> to vector<8x16xf32>
    %71 = vector.shape_cast %70 : vector<8x16xf32> to vector<8x16x1xf32>
    %72 = tpu.reciprocal %71 {approx = true} : vector<8x16x1xf32> -> vector<8x16x1xf32>
    %73 = vector.broadcast %72 : vector<8x16x1xf32> to vector<8x16x16xf32>
    %74 = arith.mulf %69, %73 : vector<8x16x16xf32>
    "tpu.trace_start"() <{level = 10 : i32, message = "wqk,wkd->wqd"}> : () -> ()
    %cst_31 = arith.constant dense<0.000000e+00> : vector<8x16x8xf32>
    %75 = tpu.matmul %74, %63, %cst_31 {dimension_numbers = #tpu.dot_dimension_numbers<[2], [1], [1], [2], [0, 0, 0, 1, 1, 2], [0], [0]>} : vector<8x16x16xf32>, vector<8x16x8xf32>, vector<8x16x8xf32> -> vector<8x16x8xf32>
    "tpu.trace_stop"() : () -> ()
    %76 = vector.shape_cast %75 : vector<8x16x8xf32> to vector<128x8xf32>
    %77 = vector.extract_strided_slice %37 {offsets = [8, 0], sizes = [8, 32], strides = [1, 1]} : vector<32x32xf32> to vector<8x32xf32>
    %cst_32 = arith.constant dense<0.000000e+00> : vector<128x32xf32>
    %78 = tpu.matmul %76, %77, %cst_32 {dimension_numbers = #tpu.dot_dimension_numbers<[1], [0], [0], [1], [0, 0, 1, 1], [], []>} : vector<128x8xf32>, vector<8x32xf32>, vector<128x32xf32> -> vector<128x32xf32>
    %79 = arith.addf %60, %78 : vector<128x32xf32>
    %80 = vector.extract_strided_slice %36 {offsets = [0, 0, 16], sizes = [8, 16, 8], strides = [1, 1, 1]} : vector<8x16x96xf32> to vector<8x16x8xf32>
    %81 = vector.extract_strided_slice %36 {offsets = [0, 0, 48], sizes = [8, 16, 8], strides = [1, 1, 1]} : vector<8x16x96xf32> to vector<8x16x8xf32>
    %82 = vector.extract_strided_slice %36 {offsets = [0, 0, 80], sizes = [8, 16, 8], strides = [1, 1, 1]} : vector<8x16x96xf32> to vector<8x16x8xf32>
    "tpu.trace_start"() <{level = 10 : i32, message = "wqd,wkd->wqk"}> : () -> ()
    %cst_33 = arith.constant dense<0.000000e+00> : vector<8x16x16xf32>
    %83 = tpu.matmul %80, %81, %cst_33 {dimension_numbers = #tpu.dot_dimension_numbers<[2], [2], [1], [1], [0, 0, 0, 1, 1, 1], [0], [0]>} : vector<8x16x8xf32>, vector<8x16x8xf32>, vector<8x16x16xf32> -> vector<8x16x16xf32>
    "tpu.trace_stop"() : () -> ()
    %cst_34 = arith.constant dense<0xFF800000> : vector<8x16xf32>
    %84 = vector.multi_reduction <maximumf>, %83, %cst_34 [2] : vector<8x16x16xf32> to vector<8x16xf32>
    %85 = vector.shape_cast %84 : vector<8x16xf32> to vector<8x16x1xf32>
    %86 = vector.broadcast %85 : vector<8x16x1xf32> to vector<8x16x16xf32>
    %87 = arith.subf %83, %86 : vector<8x16x16xf32>
    %88 = math.exp %87 : vector<8x16x16xf32>
    %cst_35 = arith.constant dense<0.000000e+00> : vector<8x16xf32>
    %89 = vector.multi_reduction <add>, %88, %cst_35 [2] : vector<8x16x16xf32> to vector<8x16xf32>
    %90 = vector.shape_cast %89 : vector<8x16xf32> to vector<8x16x1xf32>
    %91 = tpu.reciprocal %90 {approx = true} : vector<8x16x1xf32> -> vector<8x16x1xf32>
    %92 = vector.broadcast %91 : vector<8x16x1xf32> to vector<8x16x16xf32>
    %93 = arith.mulf %88, %92 : vector<8x16x16xf32>
    "tpu.trace_start"() <{level = 10 : i32, message = "wqk,wkd->wqd"}> : () -> ()
    %cst_36 = arith.constant dense<0.000000e+00> : vector<8x16x8xf32>
    %94 = tpu.matmul %93, %82, %cst_36 {dimension_numbers = #tpu.dot_dimension_numbers<[2], [1], [1], [2], [0, 0, 0, 1, 1, 2], [0], [0]>} : vector<8x16x16xf32>, vector<8x16x8xf32>, vector<8x16x8xf32> -> vector<8x16x8xf32>
    "tpu.trace_stop"() : () -> ()
    %95 = vector.shape_cast %94 : vector<8x16x8xf32> to vector<128x8xf32>
    %96 = vector.extract_strided_slice %37 {offsets = [16, 0], sizes = [8, 32], strides = [1, 1]} : vector<32x32xf32> to vector<8x32xf32>
    %cst_37 = arith.constant dense<0.000000e+00> : vector<128x32xf32>
    %97 = tpu.matmul %95, %96, %cst_37 {dimension_numbers = #tpu.dot_dimension_numbers<[1], [0], [0], [1], [0, 0, 1, 1], [], []>} : vector<128x8xf32>, vector<8x32xf32>, vector<128x32xf32> -> vector<128x32xf32>
    %98 = arith.addf %79, %97 : vector<128x32xf32>
    %99 = vector.extract_strided_slice %36 {offsets = [0, 0, 24], sizes = [8, 16, 8], strides = [1, 1, 1]} : vector<8x16x96xf32> to vector<8x16x8xf32>
    %100 = vector.extract_strided_slice %36 {offsets = [0, 0, 56], sizes = [8, 16, 8], strides = [1, 1, 1]} : vector<8x16x96xf32> to vector<8x16x8xf32>
    %101 = vector.extract_strided_slice %36 {offsets = [0, 0, 88], sizes = [8, 16, 8], strides = [1, 1, 1]} : vector<8x16x96xf32> to vector<8x16x8xf32>
    "tpu.trace_start"() <{level = 10 : i32, message = "wqd,wkd->wqk"}> : () -> ()
    %cst_38 = arith.constant dense<0.000000e+00> : vector<8x16x16xf32>
    %102 = tpu.matmul %99, %100, %cst_38 {dimension_numbers = #tpu.dot_dimension_numbers<[2], [2], [1], [1], [0, 0, 0, 1, 1, 1], [0], [0]>} : vector<8x16x8xf32>, vector<8x16x8xf32>, vector<8x16x16xf32> -> vector<8x16x16xf32>
    "tpu.trace_stop"() : () -> ()
    %cst_39 = arith.constant dense<0xFF800000> : vector<8x16xf32>
    %103 = vector.multi_reduction <maximumf>, %102, %cst_39 [2] : vector<8x16x16xf32> to vector<8x16xf32>
    %104 = vector.shape_cast %103 : vector<8x16xf32> to vector<8x16x1xf32>
    %105 = vector.broadcast %104 : vector<8x16x1xf32> to vector<8x16x16xf32>
    %106 = arith.subf %102, %105 : vector<8x16x16xf32>
    %107 = math.exp %106 : vector<8x16x16xf32>
    %cst_40 = arith.constant dense<0.000000e+00> : vector<8x16xf32>
    %108 = vector.multi_reduction <add>, %107, %cst_40 [2] : vector<8x16x16xf32> to vector<8x16xf32>
    %109 = vector.shape_cast %108 : vector<8x16xf32> to vector<8x16x1xf32>
    %110 = tpu.reciprocal %109 {approx = true} : vector<8x16x1xf32> -> vector<8x16x1xf32>
    %111 = vector.broadcast %110 : vector<8x16x1xf32> to vector<8x16x16xf32>
    %112 = arith.mulf %107, %111 : vector<8x16x16xf32>
    "tpu.trace_start"() <{level = 10 : i32, message = "wqk,wkd->wqd"}> : () -> ()
    %cst_41 = arith.constant dense<0.000000e+00> : vector<8x16x8xf32>
    %113 = tpu.matmul %112, %101, %cst_41 {dimension_numbers = #tpu.dot_dimension_numbers<[2], [1], [1], [2], [0, 0, 0, 1, 1, 2], [0], [0]>} : vector<8x16x16xf32>, vector<8x16x8xf32>, vector<8x16x8xf32> -> vector<8x16x8xf32>
    "tpu.trace_stop"() : () -> ()
    %114 = vector.shape_cast %113 : vector<8x16x8xf32> to vector<128x8xf32>
    %115 = vector.extract_strided_slice %37 {offsets = [24, 0], sizes = [8, 32], strides = [1, 1]} : vector<32x32xf32> to vector<8x32xf32>
    %cst_42 = arith.constant dense<0.000000e+00> : vector<128x32xf32>
    %116 = tpu.matmul %114, %115, %cst_42 {dimension_numbers = #tpu.dot_dimension_numbers<[1], [0], [0], [1], [0, 0, 1, 1], [], []>} : vector<128x8xf32>, vector<8x32xf32>, vector<128x32xf32> -> vector<128x32xf32>
    %117 = arith.addf %98, %116 : vector<128x32xf32>
    %118 = vector.shape_cast %117 : vector<128x32xf32> to vector<8x16x32xf32>
    %c0_43 = arith.constant 0 : index
    %c0_44 = arith.constant 0 : index
    %c0_45 = arith.constant 0 : index
    %119 = vector.load %arg9[%c0_43, %c0_44, %c0_45] : memref<8x16x32xf32, #tpu.memory_space<vmem>>, vector<8x16x32xf32>
    tpu.vector_store %arg9[%c0_43, %c0_44, %c0_45], %118 {strides = array<i32>} : memref<8x16x32xf32, #tpu.memory_space<vmem>>, vector<8x16x32xf32>,
    return
  }
  func.func @transform_0(%arg0: i32) -> (i32, i32, i32) {
    %c0_i32 = arith.constant 0 : i32
    %c0_i32_0 = arith.constant 0 : i32
    %c0_i32_1 = arith.constant 0 : i32
    return %arg0, %c0_i32, %c0_i32_0 : i32, i32, i32
  }
  func.func @transform_1(%arg0: i32) -> (i32, i32, i32) {
    %c0_i32 = arith.constant 0 : i32
    %c0_i32_0 = arith.constant 0 : i32
    %c0_i32_1 = arith.constant 0 : i32
    return %arg0, %c0_i32, %c0_i32_0 : i32, i32, i32
  }
  func.func @transform_2(%arg0: i32) -> (i32, i32) {
    %c0_i32 = arith.constant 0 : i32
    %c0_i32_0 = arith.constant 0 : i32
    %c0_i32_1 = arith.constant 0 : i32
    return %c0_i32, %c0_i32_0 : i32, i32
  }
  func.func @transform_3(%arg0: i32) -> (i32, i32) {
    %c0_i32 = arith.constant 0 : i32
    %c0_i32_0 = arith.constant 0 : i32
    %c0_i32_1 = arith.constant 0 : i32
    return %c0_i32, %c0_i32_0 : i32, i32
  }
  func.func @transform_4(%arg0: i32) -> (i32, i32) {
    %c0_i32 = arith.constant 0 : i32
    %c0_i32_0 = arith.constant 0 : i32
    %c0_i32_1 = arith.constant 0 : i32
    return %c0_i32, %c0_i32_0 : i32, i32
  }
  func.func @transform_5(%arg0: i32) -> (i32, i32) {
    %c0_i32 = arith.constant 0 : i32
    %c0_i32_0 = arith.constant 0 : i32
    %c0_i32_1 = arith.constant 0 : i32
    return %c0_i32, %c0_i32_0 : i32, i32
  }
  func.func @transform_6(%arg0: i32) -> (i32, i32) {
    %c0_i32 = arith.constant 0 : i32
    %c0_i32_0 = arith.constant 0 : i32
    %c0_i32_1 = arith.constant 0 : i32
    return %c0_i32, %c0_i32_0 : i32, i32
  }
  func.func @transform_7(%arg0: i32) -> (i32, i32) {
    %c0_i32 = arith.constant 0 : i32
    %c0_i32_0 = arith.constant 0 : i32
    %c0_i32_1 = arith.constant 0 : i32
    return %c0_i32, %c0_i32_0 : i32, i32
  }
  func.func @transform_8(%arg0: i32) -> (i32, i32, i32) {
    %c0_i32 = arith.constant 0 : i32
    %c0_i32_0 = arith.constant 0 : i32
    %c0_i32_1 = arith.constant 0 : i32
    return %arg0, %c0_i32, %c0_i32_0 : i32, i32, i32
  }
}

</mosaic_0001>

<bundles_post_ra>
// kernel: tpu_custom_call.1
= control target key start
LH: loop header
LB: loop body
LE: loop exit
PB: predicated region body
PF: predicated region fallthrough
CT: control target
= control target key end

     0   :  { %13 = vsyncpa [#allocation3], 0  ;;  %s11541_s0 = inlined_call_operand.vmem [shape: f32[8,16,32], index: 0, kind: input, shape index: {}]   ;;  %s11542_s1 = inlined_call_operand.vmem [shape: f32[8,16,1], index: 1, kind: input, shape index: {}]   ;;  %s11543_s2 = inlined_call_operand.vmem [shape: f32[1,32], index: 2, kind: input, shape index: {}]   ;;  %s11544_s3 = inlined_call_operand.vmem [shape: f32[1,32], index: 3, kind: input, shape index: {}]   ;;  %s11545_s4 = inlined_call_operand.hbm [shape: f32[32,96], index: 4, kind: input, shape index: {}]   ;;  %s11546_s5 = inlined_call_operand.vmem [shape: f32[1,96], index: 5, kind: input, shape index: {}]   ;;  %s11547_s6 = inlined_call_operand.hbm [shape: f32[32,32], index: 6, kind: input, shape index: {}]   ;;  %s11548_s7 = inlined_call_operand.vmem [shape: f32[1,32], index: 7, kind: input, shape index: {}]   ;;  %s11549_s8 = inlined_call_operand.hbm [shape: f32[8,16,32], index: 8, kind: output, shape index: {}]  }
   0x1   :  { %14 = vsyncpa [#allocation6], 0 }
   0x2   :  { %15 = vsyncpa [#allocation4], 0  ;;  %s9493_s27 = smov [#allocation2]  }
   0x3   :  { %s29_s28 = sshll.u32 %s9493_s27, 4  ;;  %s30_s28 = int_to_ptr.vmem [resolvable:$true] %s29_s28 }
   0x4   :  { %s9435_s29 = scalar_lea.vmem %s30_s28, 512  ;;  %p9440_p1 = scmp.lt.s32.totalorder %s30_s28, %s30_s28 }
   0x5   :  { %p9436_p0 = scmp.ne.s32.totalorder %s30_s28, %s9435_s29  ;;  %p9441_p2 = scmp.lt.s32.totalorder %s9435_s29, %s9435_s29 }
   0x7   :  { %p9442_p3 = por %p9441_p2, %p9440_p1 }
   0x9   :  { %p9443_p4 = pnand %p9442_p3, %p9436_p0 }
   0xb   :  { %9446 = shalt.err (!%p9443_p4)
}
   0xc   :  { %s9494_s30 = smov 128   ;;  %s9495_s9 = smov 8  }
   0xd   :  { %35 = dma.hbm_to_vmem [thread:$0]  %s11545_s4, 512, %s30_s28, [#allocation3], %s9494_s30, %s9494_s30, %s9495_s9  }
   0xe   :  { %s9496_s12 = smov [#allocation5]  }
   0xf   :  { %s43_s13 = sshll.u32 %s9496_s12, 4  ;;  %s44_s13 = int_to_ptr.vmem [resolvable:$true] %s43_s13 }
  0x10   :  { %s9455_s14 = scalar_lea.vmem %s44_s13, 512  ;;  %p9460_p6 = scmp.lt.s32.totalorder %s44_s13, %s44_s13 }
  0x11   :  { %p9456_p5 = scmp.ne.s32.totalorder %s44_s13, %s9455_s14  ;;  %p9461_p7 = scmp.lt.s32.totalorder %s9455_s14, %s9455_s14 }
  0x13   :  { %p9462_p8 = por %p9461_p7, %p9460_p6 }
  0x15   :  { %p9463_p9 = pnand %p9462_p8, %p9456_p5 }
  0x17   :  { %9466 = shalt.err (!%p9463_p9)
}
  0x18   :  { %49 = dma.hbm_to_vmem [thread:$0]  %s11547_s6, 512, %s44_s13, [#allocation6], %s9494_s30, %s9494_s30, %s9495_s9  }
  0x19   :  { %9487 = dma.done.wait [#allocation3], 512  }
  0x1a   :  { %9488 = vsyncadd [#allocation3], 4294966784 }
  0x1b   :  { %9489 = dma.done.wait [#allocation6], 512  }
  0x1c   :  { %9490 = vsyncadd [#allocation6], 4294966784  ;;  %v9497_v0 = vmov 0   ;;  %vm76_vm0 = vcmask 261120   ;;  %v58_v1 = vld [vmem:[%s11541_s0] sm:$0xff]  ;;  %v60_v2 = vld [vmem:[%s11541_s0 + $0x10] sm:$0xff] }
  0x1d   :  { %9138 = vset.pattern.permute.xlu1 %v9497_v0  ;;  %9137 = vset.pattern.permute.xlu0 %v9497_v0  ;;  %v9576_v3 = vld [vmem:[%s11541_s0 + $0x8] sm:$0xff]  ;;  %v77_v4 = vsel %vm76_vm0, %v58_v1, 0.0  ;;  %v83_v5 = vsel %vm76_vm0, %v60_v2, 0.0  ;;  %v9583_v6 = vld [vmem:[%s11541_s0 + $0x18] sm:$0xff]  ;;  %v9597_v10 = vld [vmem:[%s11541_s0 + $0x20] sm:$0xff]  ;;  %vm664_vm1 = vcmask 64512  }
  0x1e   :  { %78 = vadd.xlane.f32.xlu0 %v77_v4  ;;  %84 = vadd.xlane.f32.xlu1 %v83_v5  ;;  %v80_v7 = vsel %vm76_vm0, %v9576_v3, 0.0  ;;  %v86_v8 = vsel %vm76_vm0, %v9583_v6, 0.0  ;;  %v9592_v9 = vld [vmem:[%s11541_s0 + $0x28] sm:$0xff]  ;;  %v89_v12 = vsel %vm76_vm0, %v9597_v10, 0.0  ;;  %v9606_v13 = vld [vmem:[%s11541_s0 + $0x38] sm:$0xff]  ;;  %v9611_v14 = vld [vmem:[%s11541_s0 + $0x30] sm:$0xff] }
  0x1f   :  { %v92_v11 = vsel %vm76_vm0, %v9592_v9, 0.0  ;;  %v98_v15 = vsel %vm76_vm0, %v9606_v13, 0.0  ;;  %v95_v16 = vsel %vm76_vm0, %v9611_v14, 0.0  ;;  %v9620_v17 = vld [vmem:[%s11541_s0 + $0x48] sm:$0xff]  ;;  %v9625_v18 = vld [vmem:[%s11541_s0 + $0x40] sm:$0xff]  ;;  %v9634_v21 = vld [vmem:[%s11541_s0 + $0x58] sm:$0xff] }
  0x20   :  { %v104_v19 = vsel %vm76_vm0, %v9620_v17, 0.0  ;;  %v101_v20 = vsel %vm76_vm0, %v9625_v18, 0.0  ;;  %v9639_v22 = vld [vmem:[%s11541_s0 + $0x50] sm:$0xff]  ;;  %v110_v23 = vsel %vm76_vm0, %v9634_v21, 0.0  ;;  %v9648_v25 = vld [vmem:[%s11541_s0 + $0x68] sm:$0xff]  ;;  %v9653_v26 = vld [vmem:[%s11541_s0 + $0x60] sm:$0xff] }
  0x21   :  { %v107_v24 = vsel %vm76_vm0, %v9639_v22, 0.0  ;;  %v116_v27 = vsel %vm76_vm0, %v9648_v25, 0.0  ;;  %v113_v28 = vsel %vm76_vm0, %v9653_v26, 0.0  ;;  %v9662_v29 = vld [vmem:[%s11541_s0 + $0x78] sm:$0xff]  ;;  %v9667_v30 = vld [vmem:[%s11541_s0 + $0x70] sm:$0xff]  ;;  %v331_v33 = vld [vmem:[%s11542_s1 + $0x8] sm:$0xff] }
  0x22   :  { %81 = vadd.xlane.f32.xlu0 %v80_v7  ;;  %87 = vadd.xlane.f32.xlu1 %v86_v8  ;;  %v122_v31 = vsel %vm76_vm0, %v9662_v29, 0.0  ;;  %v119_v32 = vsel %vm76_vm0, %v9667_v30, 0.0  ;;  %v332_v34 = vld [vmem:[%s11542_s1 + $0x10] sm:$0xff]  ;;  %v330_v35 = vld [vmem:[%s11542_s1] sm:$0xff]  ;;  %v333_v36 = vld [vmem:[%s11542_s1 + $0x18] sm:$0xff]  ;;  %s9498_s16 = smov 96  }
  0x23   :  { %v334_v37 = vld [vmem:[%s11542_s1 + $0x20] sm:$0xff]  ;;  %v336_v53 = vld [vmem:[%s11542_s1 + $0x30] sm:$0xff]  ;;  %v337_v54 = vld [vmem:[%s11542_s1 + $0x38] sm:$0xff]  ;;  %vm1371_vm2 = vcmask 130048   ;;  %s9500_s4 = smov 88   ;;  %s9501_s17 = smov 120  }
  0x24   :  { %v335_v55 = vld [vmem:[%s11542_s1 + $0x28] sm:$0xff]  ;;  %v338_v58 = vld [vmem:[%s11542_s1 + $0x40] sm:$0xff]  ;;  %v445_v59 = vld [vmem:[#allocation2 + $0x18] sm:$0xff]  ;;  %s9502_s18 = smov 56   ;;  %s9503_s19 = smov 80  }
  0x25   :  { %v339_v60 = vld [vmem:[%s11542_s1 + $0x48] sm:$0xff]  ;;  %8534 = vmatprep.subr.mxu0 %v445_v59  ;;  %v444_v63 = vld [vmem:[#allocation2 + $0x10] sm:$0xff]  ;;  %s9504_s20 = smov 112   ;;  %s9505_s21 = smov 48  }
  0x26   :  { %93 = vadd.xlane.f32.xlu1 %v92_v11  ;;  %90 = vadd.xlane.f32.xlu0 %v89_v12  ;;  %v443_v0 = vld [vmem:[#allocation2 + $0x8] sm:$0xff]  ;;  %s9507_s23 = smov 104   ;;  %s9508_s24 = smov 40  }
  0x27   :  { %8535 = vmatpush3.msra.mxu0 %v445_v59  ;;  %s9509_s25 = smov [#allocation7]  }
  0x28   :  { %8536 = vmatprep.subr.mxu0 %v444_v63  ;;  %s7901_s26 = sshll.u32 %s9509_s25, 4  ;;  %s7902_s26 = int_to_ptr.vmem [resolvable:$true] %s7901_s26 }
  0x29   :  { %8537 = vmatpush3.msra.mxu0 %v444_v63  ;;  %s9467_s27 = scalar_lea.vmem %s7902_s26, 2048  ;;  %p9472_p11 = scmp.lt.s32.totalorder %s7902_s26, %s7902_s26 }
  0x2a   :  { %99 = vadd.xlane.f32.xlu1 %v98_v15  ;;  %96 = vadd.xlane.f32.xlu0 %v95_v16  ;;  %p9468_p10 = scmp.ne.s32.totalorder %s7902_s26, %s9467_s27  ;;  %p9473_p12 = scmp.lt.s32.totalorder %s9467_s27, %s9467_s27 }
  0x2b   :  { %8538 = vmatprep.subr.mxu0 %v443_v0 }
  0x2c   :  { %8539 = vmatpush3.msra.mxu0 %v443_v0  ;;  %p9474_p13 = por %p9473_p12, %p9472_p11 }
  0x2e   :  { %105 = vadd.xlane.f32.xlu1 %v104_v19  ;;  %102 = vadd.xlane.f32.xlu0 %v101_v20  ;;  %p9475_p0 = pnand %p9474_p13, %p9468_p10 }
  0x32   :  { %111 = vadd.xlane.f32.xlu1 %v110_v23  ;;  %108 = vadd.xlane.f32.xlu0 %v107_v24 }
  0x36   :  { %117 = vadd.xlane.f32.xlu1 %v116_v27  ;;  %114 = vadd.xlane.f32.xlu0 %v113_v28 }
  0x3a   :  { %123 = vadd.xlane.f32.xlu1 %v122_v31  ;;  %120 = vadd.xlane.f32.xlu0 %v119_v32 }
  0x4b   :  { %353 = vperm.xlu1 %9138, %v331_v33  }
  0x4f   :  { %358 = vperm.xlu1 %9138, %v332_v34  }
  0x50   :  { %348 = vperm.xlu0 %9137, %v330_v35  }
  0x53   :  { %363 = vperm.xlu1 %9138, %v333_v36  }
  0x57   :  { %368 = vperm.xlu1 %9138, %v334_v37  }
  0xa7   :  { %v79_v38 = vpop.xlane.xlu0 %78  ;;  %v85_v39 = vpop.xlane.xlu1 %84 }
  0xa8   :  { %v126_v40 = vmul.f32 0.03125, %v79_v38  ;;  %v128_v41 = vmul.f32 0.03125, %v85_v39 }
  0xaa   :  { %v9688_v42 = vsub.f32 %v58_v1, %v126_v40  ;;  %v9690_v43 = vsub.f32 %v60_v2, %v128_v41  ;;  %v340_v1 = vld [vmem:[%s11542_s1 + $0x50] sm:$0xff]  ;;  %v442_v2 = vld [vmem:[#allocation2] sm:$0xff] }
  0xab   :  { %v82_v44 = vpop.xlane.xlu0 %81  ;;  %v88_v56 = vpop.xlane.xlu1 %87  ;;  %8540 = vmatprep.subr.mxu0 %v442_v2 }
  0xac   :  { %v127_v45 = vmul.f32 0.03125, %v82_v44  ;;  %v158_v46 = vmul.f32 %v9688_v42, %v9688_v42  ;;  %v160_v47 = vmul.f32 %v9690_v43, %v9690_v43  ;;  %8541 = vmatpush3.msra.mxu0 %v442_v2 }
  0xae   :  { %v9697_v48 = vsub.f32 %v9576_v3, %v127_v45  ;;  %v174_v49 = vsel %vm76_vm0, %v158_v46, 0.0  ;;  %v180_v50 = vsel %vm76_vm0, %v160_v47, 0.0 }
  0xaf   :  { %175 = vadd.xlane.f32.xlu0 %v174_v49  ;;  %v91_v57 = vpop.xlane.xlu0 %90  ;;  %v94_v61 = vpop.xlane.xlu1 %93 }
  0xb0   :  { %v159_v51 = vmul.f32 %v9697_v48, %v9697_v48  ;;  %v130_v5 = vmul.f32 0.03125, %v91_v57 }
  0xb2   :  { %v177_v52 = vsel %vm76_vm0, %v159_v51, 0.0  ;;  %v9723_v11 = vsub.f32 %v9597_v10, %v130_v5  ;;  %v345_v5 = vld [vmem:[%s11542_s1 + $0x78] sm:$0xff] }
  0xb3   :  { %181 = vadd.xlane.f32.xlu0 %v180_v50  ;;  %178 = vadd.xlane.f32.xlu1 %v177_v52  ;;  %v97_v62 = vpop.xlane.xlu0 %96  ;;  %v100_v3 = vpop.xlane.xlu1 %99 }
  0xb4   :  { %v132_v12 = vmul.f32 0.03125, %v97_v62  ;;  %v162_v23 = vmul.f32 %v9723_v11, %v9723_v11 }
  0xb6   :  { %v9726_v19 = vsub.f32 %v9611_v14, %v132_v12  ;;  %v186_v27 = vsel %vm76_vm0, %v162_v23, 0.0 }
  0xb7   :  { %v103_v4 = vpop.xlane.xlu0 %102  ;;  %v106_v7 = vpop.xlane.xlu1 %105 }
  0xb8   :  { %v134_v20 = vmul.f32 0.03125, %v103_v4  ;;  %v164_v28 = vmul.f32 %v9726_v19, %v9726_v19  ;;  %v135_v51 = vmul.f32 0.03125, %v106_v7  ;;  %v341_v4 = vld [vmem:[%s11542_s1 + $0x58] sm:$0xff]  ;;  %v342_v7 = vld [vmem:[%s11542_s1 + $0x60] sm:$0xff] }
  0xba   :  { %v9731_v24 = vsub.f32 %v9625_v18, %v134_v20  ;;  %v192_v33 = vsel %vm76_vm0, %v164_v28, 0.0  ;;  %v129_v18 = vmul.f32 0.03125, %v88_v56 }
  0xbb   :  { %v109_v8 = vpop.xlane.xlu0 %108  ;;  %v112_v15 = vpop.xlane.xlu1 %111 }
  0xbc   :  { %v166_v34 = vmul.f32 %v9731_v24, %v9731_v24  ;;  %v9749_v41 = vsub.f32 %v9583_v6, %v129_v18 }
  0xbe   :  { %v198_v38 = vsel %vm76_vm0, %v166_v34, 0.0  ;;  %v161_v49 = vmul.f32 %v9749_v41, %v9749_v41 }
  0xbf   :  { %v115_v16 = vpop.xlane.xlu0 %114  ;;  %v118_v31 = vpop.xlane.xlu1 %117 }
  0xc0   :  { %v138_v10 = vmul.f32 0.03125, %v115_v16  ;;  %v183_v52 = vsel %vm76_vm0, %v161_v49, 0.0  ;;  %v139_v62 = vmul.f32 0.03125, %v118_v31 }
  0xc2   :  { %v9738_v14 = vsub.f32 %v9653_v26, %v138_v10  ;;  %v131_v26 = vmul.f32 0.03125, %v94_v61  ;;  %v9792_v0 = vsub.f32 %v9648_v25, %v139_v62  ;;  %v343_v25 = vld [vmem:[%s11542_s1 + $0x68] sm:$0xff] }
  0xc3   :  { %v121_v32 = vpop.xlane.xlu0 %120  ;;  %v124_v36 = vpop.xlane.xlu1 %123 }
  0xc4   :  { %378 = vperm.xlu1 %9138, %v336_v53   ;;  %v140_v35 = vmul.f32 0.03125, %v121_v32  ;;  %v141_v37 = vmul.f32 0.03125, %v124_v36  ;;  %v170_v40 = vmul.f32 %v9738_v14, %v9738_v14  ;;  %v9758_v47 = vsub.f32 %v9592_v9, %v131_v26 }
  0xc5   :  { %v136_v53 = vmul.f32 0.03125, %v109_v8  ;;  %v344_v8 = vld [vmem:[%s11542_s1 + $0x70] sm:$0xff] }
  0xc6   :  { %v9744_v39 = vsub.f32 %v9667_v30, %v140_v35  ;;  %v9752_v44 = vsub.f32 %v9662_v29, %v141_v37  ;;  %v210_v45 = vsel %vm76_vm0, %v170_v40, 0.0  ;;  %v133_v30 = vmul.f32 0.03125, %v100_v3  ;;  %v9822_v37 = vld [vmem:[%s11543_s2] ss:$0 sm:$0xff] }
  0xc7   :  { %v163_v9 = vmul.f32 %v9758_v47, %v9758_v47  ;;  %v9779_v57 = vsub.f32 %v9639_v22, %v136_v53  ;;  %v171_v3 = vmul.f32 %v9792_v0, %v9792_v0  ;;  %v354_v12 = vpop.permute.xlu1 %353  ;;  %v9828_v40 = vld [vmem:[%s11544_s3] ss:$0 sm:$0xff] }
  0xc8   :  { %383 = vperm.xlu1 %9138, %v337_v54   ;;  %v172_v46 = vmul.f32 %v9744_v39, %v9744_v39  ;;  %v173_v50 = vmul.f32 %v9752_v44, %v9752_v44  ;;  %v9766_v29 = vsub.f32 %v9606_v13, %v133_v30 }
  0xc9   :  { %373 = vperm.xlu0 %9137, %v335_v55   ;;  %v9773_v55 = vsub.f32 %v9620_v17, %v135_v51  ;;  %v189_v56 = vsel %vm76_vm0, %v163_v9, 0.0  ;;  %v168_v17 = vmul.f32 %v9779_v57, %v9779_v57 }
  0xca   :  { %v216_v6 = vsel %vm76_vm0, %v172_v46, 0.0  ;;  %v219_v54 = vsel %vm76_vm0, %v173_v50, 0.0  ;;  %v165_v13 = vmul.f32 %v9766_v29, %v9766_v29 }
  0xcb   :  { %v204_v22 = vsel %vm76_vm0, %v168_v17, 0.0  ;;  %v349_v20 = vpop.permute.xlu0 %348 }
  0xcc   :  { %388 = vperm.xlu1 %9138, %v338_v58   ;;  %v137_v58 = vmul.f32 0.03125, %v112_v15  ;;  %v195_v59 = vsel %vm76_vm0, %v165_v13, 0.0  ;;  %v359_v15 = vpop.permute.xlu1 %358 }
  0xce   :  { %v9787_v61 = vsub.f32 %v9634_v21, %v137_v58  ;;  %v213_v21 = vsel %vm76_vm0, %v171_v3, 0.0 }
  0xd0   :  { %393 = vperm.xlu1 %9138, %v339_v60   ;;  %v167_v60 = vmul.f32 %v9773_v55, %v9773_v55  ;;  %v9815_v16 = vpop.permute.xlu1 %363 }
  0xd2   :  { %v201_v63 = vsel %vm76_vm0, %v167_v60, 0.0 }
  0xd4   :  { %398 = vperm.xlu1 %9138, %v340_v1   ;;  %v169_v1 = vmul.f32 %v9787_v61, %v9787_v61  ;;  %v9817_v23 = vpop.permute.xlu1 %368 }
  0xd6   :  { %v207_v2 = vsel %vm76_vm0, %v169_v1, 0.0 }
  0xe8   :  { %187 = vadd.xlane.f32.xlu0 %v186_v27 }
  0xec   :  { %193 = vadd.xlane.f32.xlu0 %v192_v33 }
  0xf0   :  { %199 = vadd.xlane.f32.xlu0 %v198_v38 }
  0xf4   :  { %211 = vadd.xlane.f32.xlu0 %v210_v45 }
  0xf8   :  { %184 = vadd.xlane.f32.xlu1 %v183_v52  ;;  %217 = vadd.xlane.f32.xlu0 %v216_v6 }
  0xfc   :  { %190 = vadd.xlane.f32.xlu1 %v189_v56  ;;  %220 = vadd.xlane.f32.xlu0 %v219_v54 }
 0x100   :  { %196 = vadd.xlane.f32.xlu1 %v195_v59 }
 0x104   :  { %202 = vadd.xlane.f32.xlu1 %v201_v63 }
 0x108   :  { %205 = vadd.xlane.f32.xlu1 %v204_v22 }
 0x10c   :  { %208 = vadd.xlane.f32.xlu1 %v207_v2 }
 0x110   :  { %214 = vadd.xlane.f32.xlu1 %v213_v21 }
 0x112   :  { %403 = vperm.xlu0 %9137, %v341_v4  }
 0x116   :  { %413 = vperm.xlu0 %9137, %v343_v25  }
 0x11a   :  { %423 = vperm.xlu0 %9137, %v345_v5  }
 0x121   :  { %408 = vperm.xlu1 %9138, %v342_v7  }
 0x125   :  { %418 = vperm.xlu1 %9138, %v344_v8  }
 0x138   :  { %v176_v27 = vpop.xlane.xlu0 %175 }
 0x139   :  { %v222_v28 = vmul.f32 0.03125, %v176_v27 }
 0x13b   :  { %v238_v10 = vadd.f32 1e-05, %v222_v28 }
 0x13c   :  { %v179_v31 = vpop.xlane.xlu1 %178  ;;  %v182_v32 = vpop.xlane.xlu0 %181 }
 0x13d   :  { %9139 = vrsqrt.f32 %v238_v10  ;;  %v223_v33 = vmul.f32 0.03125, %v179_v31  ;;  %v224_v34 = vmul.f32 0.03125, %v182_v32 }
 0x13f   :  { %v239_v35 = vadd.f32 1e-05, %v223_v33  ;;  %v240_v18 = vadd.f32 1e-05, %v224_v34 }
 0x141   :  { %9141 = vrsqrt.f32 %v239_v35 }
 0x142   :  { %9143 = vrsqrt.f32 %v240_v18 }
 0x144   :  { %v9845_v56 = vpop.permute.xlu0 %373 }
 0x14a   :  { %v9140_v36 = vpop.eup %9139 }
 0x14b   :  { %v270_v38 = vmul.f32 %v9140_v36, %v9688_v42 }
 0x14d   :  { %v292_v26 = vmul.f32 %v9822_v37, %v270_v38 }
 0x14e   :  { %v9142_v45 = vpop.eup %9141 }
 0x14f   :  { %v9144_v46 = vpop.eup %9143  ;;  %v314_v30 = vadd.f32 %v9828_v40, %v292_v26  ;;  %v271_v49 = vmul.f32 %v9142_v45, %v9697_v48  ;;  %v9841_v48 = vpop.permute.xlu1 %378 }
 0x150   :  { %v272_v6 = vmul.f32 %v9144_v46, %v9690_v43 }
 0x151   :  { %v426_v50 = vmul.f32 %v349_v20, %v314_v30  ;;  %v293_v51 = vmul.f32 %v9822_v37, %v271_v49 }
 0x152   :  { %v294_v42 = vmul.f32 %v9822_v37, %v272_v6 }
 0x153   :  { %8542 = vmatprep.mubr.msk.f32.mxu0 %vm76_vm0, %v426_v50  ;;  %v315_v52 = vadd.f32 %v9828_v40, %v293_v51  ;;  %v9843_v43 = vpop.permute.xlu1 %383 }
 0x154   :  { %v316_v9 = vadd.f32 %v9828_v40, %v294_v42 }
 0x155   :  { %v427_v53 = vmul.f32 %v354_v12, %v315_v52 }
 0x156   :  { %v428_v54 = vmul.f32 %v359_v15, %v316_v9 }
 0x157   :  { %8543 = vmatmul.mubr.msk.f32.vlgmr.msra.gmra.mxu0 %vm76_vm0, %v427_v53  ;;  %v9847_v13 = vpop.permute.xlu1 %388 }
 0x158   :  { %8545 = vmatprep.mubr.msk.f32.mxu0 %vm76_vm0, %v428_v54 }
 0x15b   :  { %v9849_v60 = vpop.permute.xlu1 %393 }
 0x15f   :  { %v9851_v1 = vpop.permute.xlu1 %398 }
 0x171   :  { %v188_v58 = vpop.xlane.xlu0 %187 }
 0x172   :  { %v226_v17 = vmul.f32 0.03125, %v188_v58 }
 0x174   :  { %v242_v62 = vadd.f32 1e-05, %v226_v17 }
 0x175   :  { %v194_v59 = vpop.xlane.xlu0 %193 }
 0x176   :  { %v228_v63 = vmul.f32 0.03125, %v194_v59  ;;  %9145 = vrsqrt.f32 %v242_v62 }
 0x178   :  { %v244_v2 = vadd.f32 1e-05, %v228_v63 }
 0x179   :  { %v200_v22 = vpop.xlane.xlu0 %199 }
 0x17a   :  { %v230_v3 = vmul.f32 0.03125, %v200_v22  ;;  %9147 = vrsqrt.f32 %v244_v2 }
 0x17c   :  { %v246_v5 = vadd.f32 1e-05, %v230_v3 }
 0x17d   :  { %v212_v4 = vpop.xlane.xlu0 %211 }
 0x17e   :  { %v234_v32 = vmul.f32 0.03125, %v212_v4 }
 0x180   :  { %v250_v45 = vadd.f32 1e-05, %v234_v32 }
 0x181   :  { %v185_v21 = vpop.xlane.xlu1 %184  ;;  %v218_v15 = vpop.xlane.xlu0 %217 }
 0x182   :  { %v225_v25 = vmul.f32 0.03125, %v185_v21  ;;  %v236_v38 = vmul.f32 0.03125, %v218_v15 }
 0x183   :  { %v9146_v10 = vpop.eup %9145 }
 0x184   :  { %v241_v7 = vadd.f32 1e-05, %v225_v25  ;;  %v274_v18 = vmul.f32 %v9146_v10, %v9723_v11  ;;  %v252_v52 = vadd.f32 1e-05, %v236_v38 }
 0x185   :  { %v191_v8 = vpop.xlane.xlu1 %190  ;;  %v221_v34 = vpop.xlane.xlu0 %220 }
 0x186   :  { %9149 = vrsqrt.f32 %v241_v7  ;;  %v227_v12 = vmul.f32 0.03125, %v191_v8  ;;  %v237_v46 = vmul.f32 0.03125, %v221_v34  ;;  %v296_v50 = vmul.f32 %v9822_v37, %v274_v18 }
 0x187   :  { %9151 = vrsqrt.f32 %v246_v5  ;;  %v9148_v36 = vpop.eup %9147 }
 0x188   :  { %v243_v20 = vadd.f32 1e-05, %v227_v12  ;;  %v276_v51 = vmul.f32 %v9148_v36, %v9726_v19  ;;  %v253_v11 = vadd.f32 1e-05, %v237_v46  ;;  %v318_v62 = vadd.f32 %v9828_v40, %v296_v50 }
 0x189   :  { %v197_v27 = vpop.xlane.xlu1 %196 }
 0x18a   :  { %9153 = vrsqrt.f32 %v243_v20  ;;  %v229_v28 = vmul.f32 0.03125, %v197_v27  ;;  %v298_v63 = vmul.f32 %v9822_v37, %v276_v51  ;;  %v430_v7 = vmul.f32 %v9817_v23, %v318_v62 }
 0x18c   :  { %v245_v31 = vadd.f32 1e-05, %v229_v28  ;;  %v320_v8 = vadd.f32 %v9828_v40, %v298_v63  ;;  %v7916_v63 = vld [vmem:[%s11546_s5] ss:$0 sm:$0xff]  ;;  %s9499_s5 = smov 64  }
 0x18d   :  { %v203_v33 = vpop.xlane.xlu1 %202  ;;  %v404_v46 = vpop.permute.xlu0 %403 }
 0x18e   :  { %9155 = vrsqrt.f32 %v245_v31  ;;  %v231_v35 = vmul.f32 0.03125, %v203_v33  ;;  %v432_v23 = vmul.f32 %v9841_v48, %v320_v8 }
 0x190   :  { %v247_v26 = vadd.f32 1e-05, %v231_v35 }
 0x191   :  { %v206_v30 = vpop.xlane.xlu1 %205 }
 0x192   :  { %9157 = vrsqrt.f32 %v247_v26  ;;  %v232_v49 = vmul.f32 0.03125, %v206_v30 }
 0x193   :  { %v9150_v6 = vpop.eup %9149  ;;  %9159 = vrsqrt.f32 %v250_v45 }
 0x194   :  { %v9152_v42 = vpop.eup %9151  ;;  %v248_v9 = vadd.f32 1e-05, %v232_v49  ;;  %v273_v53 = vmul.f32 %v9150_v6, %v9749_v41 }
 0x195   :  { %v209_v54 = vpop.xlane.xlu1 %208  ;;  %v278_v22 = vmul.f32 %v9152_v42, %v9731_v24 }
 0x196   :  { %9161 = vrsqrt.f32 %v248_v9  ;;  %v233_v58 = vmul.f32 0.03125, %v209_v54  ;;  %v295_v59 = vmul.f32 %v9822_v37, %v273_v53  ;;  %v414_v53 = vpop.permute.xlu0 %413 }
 0x197   :  { %v9154_v17 = vpop.eup %9153  ;;  %9163 = vrsqrt.f32 %v252_v52  ;;  %v300_v24 = vmul.f32 %v9822_v37, %v278_v22 }
 0x198   :  { %v249_v19 = vadd.f32 1e-05, %v233_v58  ;;  %v317_v2 = vadd.f32 %v9828_v40, %v295_v59  ;;  %v275_v41 = vmul.f32 %v9154_v17, %v9758_v47  ;;  %9165 = vrsqrt.f32 %v253_v11 }
 0x199   :  { %v215_v3 = vpop.xlane.xlu1 %214  ;;  %v322_v28 = vadd.f32 %v9828_v40, %v300_v24 }
 0x19a   :  { %9167 = vrsqrt.f32 %v249_v19  ;;  %v235_v21 = vmul.f32 0.03125, %v215_v3  ;;  %v429_v4 = vmul.f32 %v9815_v16, %v317_v2  ;;  %v297_v25 = vmul.f32 %v9822_v37, %v275_v41  ;;  %v424_v62 = vpop.permute.xlu0 %423 }
 0x19b   :  { %v9156_v5 = vpop.eup %9155  ;;  %v434_v34 = vmul.f32 %v9847_v13, %v322_v28 }
 0x19c   :  { %v251_v12 = vadd.f32 1e-05, %v235_v21  ;;  %8546 = vmatmul.mubr.msk.f32.gmra.mxu0 %vm76_vm0, %v429_v4  ;;  %v319_v47 = vadd.f32 %v9828_v40, %v297_v25  ;;  %v277_v15 = vmul.f32 %v9156_v5, %v9766_v29 }
 0x19d   :  { %8548 = vmatprep.mubr.msk.f32.mxu0 %vm76_vm0, %v430_v7  ;;  %v409_v49 = vpop.permute.xlu1 %408 }
 0x19e   :  { %9169 = vrsqrt.f32 %v251_v12  ;;  %v431_v16 = vmul.f32 %v9845_v56, %v319_v47  ;;  %v299_v20 = vmul.f32 %v9822_v37, %v277_v15 }
 0x19f   :  { %v9158_v27 = vpop.eup %9157 }
 0x1a0   :  { %8549 = vmatmul.mubr.msk.f32.gmra.mxu0 %vm76_vm0, %v431_v16  ;;  %v321_v10 = vadd.f32 %v9828_v40, %v299_v20  ;;  %v279_v31 = vmul.f32 %v9158_v27, %v9773_v55  ;;  %v9160_v29 = vpop.eup %9159 }
 0x1a1   :  { %8551 = vmatprep.mubr.msk.f32.mxu0 %vm76_vm0, %v432_v23  ;;  %v282_v36 = vmul.f32 %v9160_v29, %v9738_v14  ;;  %v419_v11 = vpop.permute.xlu1 %418 }
 0x1a2   :  { %v433_v32 = vmul.f32 %v9843_v43, %v321_v10  ;;  %v301_v56 = vmul.f32 %v9822_v37, %v279_v31 }
 0x1a3   :  { %v9162_v33 = vpop.eup %9161 }
 0x1a4   :  { %8552 = vmatmul.mubr.msk.f32.gmra.mxu0 %vm76_vm0, %v433_v32  ;;  %v323_v48 = vadd.f32 %v9828_v40, %v301_v56  ;;  %v280_v35 = vmul.f32 %v9162_v33, %v9779_v57  ;;  %v9164_v18 = vpop.eup %9163  ;;  %v304_v57 = vmul.f32 %v9822_v37, %v282_v36 }
 0x1a5   :  { %8554 = vmatprep.mubr.msk.f32.mxu0 %vm76_vm0, %v434_v34  ;;  %v9166_v55 = vpop.eup %9165  ;;  %v284_v30 = vmul.f32 %v9164_v18, %v9744_v39 }
 0x1a6   :  { %v435_v38 = vmul.f32 %v9849_v60, %v323_v48  ;;  %v302_v43 = vmul.f32 %v9822_v37, %v280_v35  ;;  %v285_v14 = vmul.f32 %v9166_v55, %v9752_v44 }
 0x1a7   :  { %v9168_v26 = vpop.eup %9167  ;;  %v306_v52 = vmul.f32 %v9822_v37, %v284_v30 }
 0x1a8   :  { %8555 = vmatmul.mubr.msk.f32.gmra.mxu0 %vm76_vm0, %v435_v38  ;;  %v324_v13 = vadd.f32 %v9828_v40, %v302_v43  ;;  %v281_v45 = vmul.f32 %v9168_v26, %v9787_v61  ;;  %v326_v61 = vadd.f32 %v9828_v40, %v304_v57  ;;  %v307_v39 = vmul.f32 %v9822_v37, %v285_v14 }
 0x1a9   :  { %v328_v58 = vadd.f32 %v9828_v40, %v306_v52 }
 0x1aa   :  { %v436_v6 = vmul.f32 %v9851_v1, %v324_v13  ;;  %v303_v60 = vmul.f32 %v9822_v37, %v281_v45  ;;  %v438_v1 = vmul.f32 %v409_v49, %v326_v61 }
 0x1ab   :  { %v9170_v50 = vpop.eup %9169  ;;  %v440_v17 = vmul.f32 %v419_v11, %v328_v58 }
 0x1ac   :  { %8557 = vmatprep.mubr.msk.f32.mxu0 %vm76_vm0, %v436_v6  ;;  %v325_v51 = vadd.f32 %v9828_v40, %v303_v60  ;;  %v283_v42 = vmul.f32 %v9170_v50, %v9792_v0  ;;  %v329_v0 = vadd.f32 %v9828_v40, %v307_v39 }
 0x1ae   :  { %v437_v9 = vmul.f32 %v404_v46, %v325_v51  ;;  %v305_v44 = vmul.f32 %v9822_v37, %v283_v42  ;;  %v441_v37 = vmul.f32 %v424_v62, %v329_v0 }
 0x1b0   :  { %8558 = vmatmul.mubr.msk.f32.gmra.mxu0 %vm76_vm0, %v437_v9  ;;  %v327_v54 = vadd.f32 %v9828_v40, %v305_v44 }
 0x1b1   :  { %8560 = vmatprep.mubr.msk.f32.mxu0 %vm76_vm0, %v438_v1 }
 0x1b2   :  { %v439_v59 = vmul.f32 %v414_v53, %v327_v54 }
 0x1b4   :  { %8561 = vmatmul.mubr.msk.f32.gmra.mxu0 %vm76_vm0, %v439_v59 }
 0x1b5   :  { %8563 = vmatprep.mubr.msk.f32.mxu0 %vm76_vm0, %v440_v17 }
 0x1b8   :  { %8564 = vmatmul.mubr.msk.f32.gmra.mxu0 %vm76_vm0, %v441_v37 }
 0x217   :  { %v8544_v22 = vpop.f32.mrf.mxu0 }
 0x218   :  { %v9916_v19 = vadd.f32 %v8544_v22, %v7916_v63 }
 0x219   :  { %v567_v2 = vpop.f32.mrf.mxu0 }
 0x21a   :  { %v9918_v40 = vadd.f32 %v7916_v63, %v567_v2  ;;  %662 = vrot.lane.b32.xlu1 %v9916_v19, %s9498_s16 }
 0x21c   :  { %660 = vrot.lane.b32.xlu0 %v9918_v40, %s9498_s16  ;;  %8570 = vmatprep.mubr.msk.f32.mxu1 %vm664_vm1, %v9918_v40 }
 0x25c   :  { %v8547_v41 = vpop.f32.mrf.mxu0 }
 0x25d   :  { %v9926_v3 = vadd.f32 %v8547_v41, %v7916_v63 }
 0x25e   :  { %v577_v21 = vpop.f32.mrf.mxu0 }
 0x25f   :  { %v9928_v4 = vadd.f32 %v7916_v63, %v577_v21  ;;  %752 = vrot.lane.b32.xlu1 %v9926_v3, %s9498_s16 }
 0x260   :  { %v8550_v25 = vpop.f32.mrf.mxu0 }
 0x261   :  { %v9932_v5 = vadd.f32 %v8550_v25, %v7916_v63  ;;  %750 = vrot.lane.b32.xlu0 %v9928_v4, %s9498_s16 }
 0x262   :  { %v587_v7 = vpop.f32.mrf.mxu0 }
 0x263   :  { %v9936_v8 = vadd.f32 %v7916_v63, %v587_v7  ;;  %841 = vrot.lane.b32.xlu1 %v9932_v5, %s9498_s16 }
 0x264   :  { %v8553_v24 = vpop.f32.mrf.mxu0 }
 0x265   :  { %v9940_v12 = vadd.f32 %v8553_v24, %v7916_v63  ;;  %839 = vrot.lane.b32.xlu0 %v9936_v8, %s9498_s16 }
 0x266   :  { %v597_v47 = vpop.f32.mrf.mxu0 }
 0x267   :  { %v9944_v15 = vadd.f32 %v7916_v63, %v597_v47  ;;  %930 = vrot.lane.b32.xlu1 %v9940_v12, %s9498_s16 }
 0x268   :  { %v8556_v16 = vpop.f32.mrf.mxu0 }
 0x269   :  { %v9948_v20 = vadd.f32 %v8556_v16, %v7916_v63  ;;  %928 = vrot.lane.b32.xlu0 %v9944_v15, %s9498_s16 }
 0x26a   :  { %v607_v27 = vpop.f32.mrf.mxu0 }
 0x26b   :  { %v9952_v23 = vadd.f32 %v7916_v63, %v607_v27  ;;  %1019 = vrot.lane.b32.xlu1 %v9948_v20, %s9498_s16 }
 0x26d   :  { %1017 = vrot.lane.b32.xlu0 %v9952_v23, %s9498_s16  ;;  %8598 = vmatprep.mubr.msk.f32.mxu0 %vm664_vm1, %v9952_v23 }
 0x270   :  { %v8559_v28 = vpop.f32.mrf.mxu0 }
 0x271   :  { %v9960_v10 = vadd.f32 %v8559_v28, %v7916_v63 }
 0x272   :  { %v617_v31 = vpop.f32.mrf.mxu0 }
 0x273   :  { %v9962_v29 = vadd.f32 %v7916_v63, %v617_v31  ;;  %1108 = vrot.lane.b32.xlu1 %v9960_v10, %s9498_s16 }
 0x274   :  { %v8562_v32 = vpop.f32.mrf.mxu0 }
 0x275   :  { %v9966_v56 = vadd.f32 %v8562_v32, %v7916_v63  ;;  %1106 = vrot.lane.b32.xlu0 %v9962_v29, %s9498_s16 }
 0x276   :  { %v627_v33 = vpop.f32.mrf.mxu0 }
 0x277   :  { %v9970_v34 = vadd.f32 %v7916_v63, %v627_v33  ;;  %1197 = vrot.lane.b32.xlu1 %v9966_v56, %s9498_s16 }
 0x278   :  { %v8565_v48 = vpop.f32.mrf.mxu0 }
 0x279   :  { %v9974_v35 = vadd.f32 %v8565_v48, %v7916_v63  ;;  %1195 = vrot.lane.b32.xlu0 %v9970_v34, %s9498_s16 }
 0x27a   :  { %v637_v18 = vpop.f32.mrf.mxu0 }
 0x27b   :  { %v9978_v36 = vadd.f32 %v7916_v63, %v637_v18  ;;  %1286 = vrot.lane.b32.xlu1 %v9974_v35, %s9498_s16 }
 0x27d   :  { %1284 = vrot.lane.b32.xlu0 %v9978_v36, %s9498_s16 }
 0x27f   :  { %1548 = vrot.lane.b32.xlu1 %v9918_v40, %s9499_s5 }
 0x281   :  { %1550 = vrot.lane.b32.xlu0 %v9916_v19, %s9499_s5 }
 0x283   :  { %1635 = vrot.lane.b32.xlu1 %v9928_v4, %s9499_s5 }
 0x285   :  { %1637 = vrot.lane.b32.xlu0 %v9926_v3, %s9499_s5 }
 0x287   :  { %1724 = vrot.lane.b32.xlu1 %v9932_v5, %s9499_s5 }
 0x289   :  { %1722 = vrot.lane.b32.xlu0 %v9936_v8, %s9499_s5 }
 0x28b   :  { %1811 = vrot.lane.b32.xlu1 %v9940_v12, %s9499_s5 }
 0x28c   :  { %v663_v55 = vpop.permute.xlu1 %662 }
 0x28d   :  { %8566 = vmatprep.subr.msk.mxu1 %vm664_vm1, %v663_v55  ;;  %1809 = vrot.lane.b32.xlu0 %v9944_v15, %s9499_s5 }
 0x28e   :  { %8567 = vmatpush3.xpose.msk.msra.mxu1 %vm664_vm1, %v663_v55  ;;  %v661_v38 = vpop.permute.xlu0 %660 }
 0x28f   :  { %1898 = vrot.lane.b32.xlu1 %v9948_v20, %s9499_s5  ;;  %8568 = vmatprep.subr.msk.mxu1 %vm664_vm1, %v661_v38 }
 0x292   :  { %8569 = vmatpush3.xpose.msk.msra.mxu1 %vm664_vm1, %v661_v38 }
 0x295   :  { %8571 = vmatmul.mubr.msk.f32.vlgmr.msra.gmra.mxu1 %vm664_vm1, %v9916_v19 }
 0x296   :  { %8577 = vmatprep.mubr.msk.f32.mxu1 %vm664_vm1, %v9928_v4 }
 0x2d1   :  { %v753_v43 = vpop.permute.xlu1 %752 }
 0x2d2   :  { %8573 = vmatprep.subr.msk.mxu1 %vm664_vm1, %v753_v43 }
 0x2d3   :  { %8574 = vmatpush3.xpose.msk.msra.mxu1 %vm664_vm1, %v753_v43  ;;  %v751_v26 = vpop.permute.xlu0 %750 }
 0x2d4   :  { %8575 = vmatprep.subr.msk.mxu1 %vm664_vm1, %v751_v26 }
 0x2d5   :  { %v842_v13 = vpop.permute.xlu1 %841 }
 0x2d7   :  { %8576 = vmatpush3.xpose.msk.msra.mxu1 %vm664_vm1, %v751_v26  ;;  %v840_v45 = vpop.permute.xlu0 %839 }
 0x2d8   :  { %8580 = vmatprep.subr.msk.mxu1 %vm664_vm1, %v842_v13 }
 0x2d9   :  { %v931_v46 = vpop.permute.xlu1 %930 }
 0x2da   :  { %8578 = vmatmul.mubr.msk.f32.vlgmr.msra.gmra.mxu1 %vm664_vm1, %v9926_v3 }
 0x2db   :  { %8581 = vmatpush3.xpose.msk.msra.mxu1 %vm664_vm1, %v842_v13  ;;  %8584 = vmatprep.mubr.msk.f32.mxu1 %vm664_vm1, %v9936_v8  ;;  %v929_v57 = vpop.permute.xlu0 %928 }
 0x2dc   :  { %8582 = vmatprep.subr.msk.mxu1 %vm664_vm1, %v840_v45 }
 0x2dd   :  { %v1020_v30 = vpop.permute.xlu1 %1019 }
 0x2de   :  { %8594 = vmatprep.subr.msk.mxu0 %vm664_vm1, %v1020_v30 }
 0x2df   :  { %8583 = vmatpush3.xpose.msk.msra.mxu1 %vm664_vm1, %v840_v45  ;;  %8595 = vmatpush3.xpose.msk.msra.mxu0 %vm664_vm1, %v1020_v30  ;;  %v1018_v14 = vpop.permute.xlu0 %1017 }
 0x2e0   :  { %8587 = vmatprep.subr.msk.mxu1 %vm664_vm1, %v931_v46  ;;  %8596 = vmatprep.subr.msk.mxu0 %vm664_vm1, %v1018_v14 }
 0x2e2   :  { %8585 = vmatmul.mubr.msk.f32.vlgmr.msra.gmra.mxu1 %vm664_vm1, %v9932_v5 }
 0x2e3   :  { %8588 = vmatpush3.xpose.msk.msra.mxu1 %vm664_vm1, %v931_v46  ;;  %8591 = vmatprep.mubr.msk.f32.mxu1 %vm664_vm1, %v9944_v15 }
 0x2e4   :  { %8597 = vmatpush3.xpose.msk.msra.mxu0 %vm664_vm1, %v1018_v14  ;;  %8589 = vmatprep.subr.msk.mxu1 %vm664_vm1, %v929_v57 }
 0x2e5   :  { %v1109_v49 = vpop.permute.xlu1 %1108 }
 0x2e7   :  { %8599 = vmatmul.mubr.msk.f32.vlgmr.msra.gmra.mxu0 %vm664_vm1, %v9948_v20  ;;  %8590 = vmatpush3.xpose.msk.msra.mxu1 %vm664_vm1, %v929_v57  ;;  %v1107_v6 = vpop.permute.xlu0 %1106 }
 0x2e8   :  { %8612 = vmatprep.mubr.msk.f32.mxu0 %vm664_vm1, %v9970_v34  ;;  %8601 = vmatprep.subr.msk.mxu1 %vm664_vm1, %v1109_v49 }
 0x2e9   :  { %v1198_v60 = vpop.permute.xlu1 %1197 }
 0x2ea   :  { %8592 = vmatmul.mubr.msk.f32.vlgmr.msra.gmra.mxu1 %vm664_vm1, %v9940_v12  ;;  %8608 = vmatprep.subr.msk.mxu0 %vm664_vm1, %v1198_v60 }
 0x2eb   :  { %8602 = vmatpush3.xpose.msk.msra.mxu1 %vm664_vm1, %v1109_v49  ;;  %8605 = vmatprep.mubr.msk.f32.mxu1 %vm664_vm1, %v9962_v29  ;;  %v1196_v50 = vpop.permute.xlu0 %1195 }
 0x2ec   :  { %8609 = vmatpush3.xpose.msk.msra.mxu0 %vm664_vm1, %v1198_v60  ;;  %8603 = vmatprep.subr.msk.mxu1 %vm664_vm1, %v1107_v6 }
 0x2ed   :  { %8610 = vmatprep.subr.msk.mxu0 %vm664_vm1, %v1196_v50  ;;  %v1287_v51 = vpop.permute.xlu1 %1286 }
 0x2ef   :  { %8604 = vmatpush3.xpose.msk.msra.mxu1 %vm664_vm1, %v1107_v6  ;;  %v1285_v42 = vpop.permute.xlu0 %1284 }
 0x2f0   :  { %8611 = vmatpush3.xpose.msk.msra.mxu0 %vm664_vm1, %v1196_v50  ;;  %8615 = vmatprep.subr.msk.mxu1 %vm664_vm1, %v1287_v51 }
 0x2f1   :  { %v1549_v61 = vpop.permute.xlu1 %1548 }
 0x2f2   :  { %8606 = vmatmul.mubr.msk.f32.vlgmr.msra.gmra.mxu1 %vm664_vm1, %v9960_v10 }
 0x2f3   :  { %8613 = vmatmul.mubr.msk.f32.vlgmr.msra.gmra.mxu0 %vm664_vm1, %v9966_v56  ;;  %8616 = vmatpush3.xpose.msk.msra.mxu1 %vm664_vm1, %v1287_v51  ;;  %v1551_v52 = vpop.permute.xlu0 %1550 }
 0x2f4   :  { %8619 = vmatprep.mubr.msk.f32.mxu1 %vm664_vm1, %v9978_v36  ;;  %8617 = vmatprep.subr.msk.mxu1 %vm664_vm1, %v1285_v42 }
 0x2f5   :  { %8622 = vmatprep.subr.mxu0 %v1551_v52  ;;  %v1636_v39 = vpop.permute.xlu1 %1635 }
 0x2f6   :  { %8623 = vmatpush3.msra.mxu0 %v1551_v52 }
 0x2f7   :  { %8624 = vmatprep.subr.mxu0 %v1549_v61  ;;  %8618 = vmatpush3.xpose.msk.msra.mxu1 %vm664_vm1, %v1285_v42  ;;  %v1638_v9 = vpop.permute.xlu0 %1637 }
 0x2f8   :  { %8625 = vmatpush3.msra.mxu0 %v1549_v61  ;;  %8629 = vmatprep.subr.mxu1 %v1638_v9 }
 0x2f9   :  { %v10060_v44 = vpop.permute.xlu1 %1724 }
 0x2fa   :  { %8620 = vmatmul.mubr.msk.f32.vlgmr.msra.gmra.mxu1 %vm664_vm1, %v9974_v35  ;;  %8636 = vmatprep.subr.mxu0 %v10060_v44 }
 0x2fb   :  { %8630 = vmatpush3.msra.mxu1 %v1638_v9  ;;  %v10130_v46 = vpop.permute.xlu0 %1722 }
 0x2fc   :  { %8631 = vmatprep.subr.mxu1 %v1636_v39 }
 0x2fd   :  { %v10065_v53 = vpop.permute.xlu1 %1811  ;;  %8632 = vmatpush3.msra.mxu1 %v1636_v39 }
 0x2fe   :  { %8643 = vmatprep.subr.mxu1 %v10065_v53 }
 0x2ff   :  { %v10134_v57 = vpop.permute.xlu0 %1809 }
 0x301   :  { %v10138_v14 = vpop.permute.xlu1 %1898 }
 0x355   :  { %v8572_v1 = vpop.f32.mrf.mxu1 }
 0x356   :  { %v1375_v11 = vsel %vm1371_vm2, %v8572_v1, -inf }
 0x357   :  { %1376 = vmax.xlane.f32.xlu0 %v1375_v11  ;;  %v739_v54 = vpop.f32.mrf.mxu1 }
 0x358   :  { %v1372_v58 = vsel %vm1371_vm2, %v739_v54, -inf }
 0x359   :  { %1373 = vmax.xlane.f32.xlu1 %v1372_v58 }
 0x39a   :  { %v10070_v0 = vpop.f32.mrf.mxu1 }
 0x39b   :  { %v1381_v59 = vsel %vm1371_vm2, %v10070_v0, -inf }
 0x39c   :  { %1382 = vmax.xlane.f32.xlu1 %v1381_v59  ;;  %v10074_v17 = vpop.f32.mrf.mxu1 }
 0x39d   :  { %v1378_v62 = vsel %vm1371_vm2, %v10074_v17, -inf }
 0x39e   :  { %1379 = vmax.xlane.f32.xlu0 %v1378_v62 }
 0x3a2   :  { %v10078_v37 = vpop.f32.mrf.mxu1 }
 0x3a3   :  { %v1387_v63 = vsel %vm1371_vm2, %v10078_v37, -inf }
 0x3a4   :  { %1388 = vmax.xlane.f32.xlu1 %v1387_v63  ;;  %v10082_v22 = vpop.f32.mrf.mxu1 }
 0x3a5   :  { %v1384_v2 = vsel %vm1371_vm2, %v10082_v22, -inf }
 0x3a6   :  { %1385 = vmax.xlane.f32.xlu0 %v1384_v2 }
 0x3a7   :  { %v10086_v41 = vpop.f32.mrf.mxu0 }
 0x3a8   :  { %v1399_v21 = vsel %vm1371_vm2, %v10086_v41, -inf }
 0x3a9   :  { %1400 = vmax.xlane.f32.xlu1 %v1399_v21  ;;  %v10090_v25 = vpop.f32.mrf.mxu0 }
 0x3aa   :  { %v10092_v7 = vpop.f32.mrf.mxu1  ;;  %v1396_v24 = vsel %vm1371_vm2, %v10090_v25, -inf }
 0x3ab   :  { %1397 = vmax.xlane.f32.xlu0 %v1396_v24  ;;  %v1393_v47 = vsel %vm1371_vm2, %v10092_v7, -inf }
 0x3ac   :  { %v10098_v16 = vpop.f32.mrf.mxu1 }
 0x3ad   :  { %1394 = vmax.xlane.f32.xlu1 %v1393_v47  ;;  %v1390_v27 = vsel %vm1371_vm2, %v10098_v16, -inf }
 0x3af   :  { %1391 = vmax.xlane.f32.xlu0 %v1390_v27 }
 0x3b2   :  { %v10102_v28 = vpop.f32.mrf.mxu1 }
 0x3b3   :  { %v10104_v31 = vpop.f32.mrf.mxu0  ;;  %v1405_v55 = vsel %vm1371_vm2, %v10102_v28, -inf }
 0x3b4   :  { %v1411_v32 = vsel %vm1371_vm2, %v10104_v31, -inf  ;;  %v10112_v18 = vpop.f32.mrf.mxu1 }
 0x3b5   :  { %1412 = vmax.xlane.f32.xlu1 %v1411_v32  ;;  %v10108_v33 = vpop.f32.mrf.mxu0  ;;  %v1402_v38 = vsel %vm1371_vm2, %v10112_v18, -inf }
 0x3b6   :  { %v1408_v48 = vsel %vm1371_vm2, %v10108_v33, -inf }
 0x3b7   :  { %1409 = vmax.xlane.f32.xlu0 %v1408_v48 }
 0x3b9   :  { %1406 = vmax.xlane.f32.xlu1 %v1405_v55 }
 0x3ba   :  { %v10122_v43 = vpop.f32.mrf.mxu1 }
 0x3bb   :  { %1403 = vmax.xlane.f32.xlu0 %v1402_v38  ;;  %v1417_v13 = vsel %vm1371_vm2, %v10122_v43, -inf }
 0x3bc   :  { %v10124_v26 = vpop.f32.mrf.mxu1 }
 0x3bd   :  { %v1414_v45 = vsel %vm1371_vm2, %v10124_v26, -inf }
 0x3ca   :  { %1985 = vrot.lane.b32.xlu1 %v9960_v10, %s9499_s5 }
 0x3d1   :  { %1896 = vrot.lane.b32.xlu0 %v9952_v23, %s9499_s5 }
 0x3e0   :  { %v1377_v30 = vpop.xlane.xlu0 %1376 }
 0x3e1   :  { %v1421_v49 = vsub.f32 %v8572_v1, %v1377_v30 }
 0x3e2   :  { %v1374_v6 = vpop.xlane.xlu1 %1373 }
 0x3e3   :  { %v1438_v60 = vmul.f32 1.442695, %v1421_v49  ;;  %v1420_v50 = vsub.f32 %v739_v54, %v1374_v6 }
 0x3e5   :  { %9171 = vpow2.f32 %v1438_v60  ;;  %v1436_v51 = vmul.f32 1.442695, %v1420_v50 }
 0x3e7   :  { %9173 = vpow2.f32 %v1436_v51 }
 0x3ee   :  { %1418 = vmax.xlane.f32.xlu1 %v1417_v13 }
 0x3f0   :  { %1415 = vmax.xlane.f32.xlu0 %v1414_v45 }
 0x3f2   :  { %v10142_v42 = vpop.eup %9171 }
 0x3f3   :  { %v1471_v61 = vsel %vm1371_vm2, %v10142_v42, 0.0 }
 0x3f4   :  { %v10146_v52 = vpop.eup %9173 }
 0x3f5   :  { %v1468_v54 = vsel %vm1371_vm2, %v10146_v52, 0.0 }
 0x3ff   :  { %2072 = vrot.lane.b32.xlu1 %v9966_v56, %s9499_s5 }
 0x406   :  { %1983 = vrot.lane.b32.xlu0 %v9962_v29, %s9499_s5 }
 0x40a   :  { %2070 = vrot.lane.b32.xlu0 %v9970_v34, %s9499_s5 }
 0x423   :  { %1472 = vadd.xlane.f32.xlu1 %v1471_v61 }
 0x425   :  { %v1383_v39 = vpop.xlane.xlu1 %1382 }
 0x426   :  { %v1423_v9 = vsub.f32 %v10070_v0, %v1383_v39 }
 0x427   :  { %v1380_v1 = vpop.xlane.xlu0 %1379 }
 0x428   :  { %v1442_v11 = vmul.f32 1.442695, %v1423_v9  ;;  %v1422_v58 = vsub.f32 %v10074_v17, %v1380_v1 }
 0x429   :  { %1469 = vadd.xlane.f32.xlu0 %v1468_v54 }
 0x42a   :  { %9175 = vpow2.f32 %v1442_v11  ;;  %v1440_v59 = vmul.f32 1.442695, %v1422_v58 }
 0x42c   :  { %9177 = vpow2.f32 %v1440_v59 }
 0x42d   :  { %v1389_v62 = vpop.xlane.xlu1 %1388 }
 0x42e   :  { %v1425_v63 = vsub.f32 %v10078_v37, %v1389_v62 }
 0x42f   :  { %v1386_v2 = vpop.xlane.xlu0 %1385 }
 0x430   :  { %v1446_v21 = vmul.f32 1.442695, %v1425_v63  ;;  %v1424_v24 = vsub.f32 %v10082_v22, %v1386_v2 }
 0x432   :  { %9179 = vpow2.f32 %v1446_v21  ;;  %v1444_v0 = vmul.f32 1.442695, %v1424_v24  ;;  %v1401_v47 = vpop.xlane.xlu1 %1400 }
 0x433   :  { %v1429_v27 = vsub.f32 %v10086_v41, %v1401_v47 }
 0x434   :  { %9181 = vpow2.f32 %v1444_v0  ;;  %v1398_v17 = vpop.xlane.xlu0 %1397 }
 0x435   :  { %v1454_v32 = vmul.f32 1.442695, %v1429_v27  ;;  %v1428_v48 = vsub.f32 %v10090_v25, %v1398_v17 }
 0x436   :  { %v1395_v55 = vpop.xlane.xlu1 %1394 }
 0x437   :  { %v10156_v38 = vpop.eup %9175  ;;  %9183 = vpow2.f32 %v1454_v32  ;;  %v1452_v13 = vmul.f32 1.442695, %v1428_v48  ;;  %v1427_v37 = vsub.f32 %v10092_v7, %v1395_v55 }
 0x438   :  { %v1392_v45 = vpop.xlane.xlu0 %1391  ;;  %v1477_v22 = vsel %vm1371_vm2, %v10156_v38, 0.0 }
 0x439   :  { %v10161_v30 = vpop.eup %9177  ;;  %9185 = vpow2.f32 %v1452_v13  ;;  %v1450_v41 = vmul.f32 1.442695, %v1427_v37  ;;  %v1426_v49 = vsub.f32 %v10098_v16, %v1392_v45  ;;  %1478 = vadd.xlane.f32.xlu1 %v1477_v22 }
 0x43a   :  { %v1474_v25 = vsel %vm1371_vm2, %v10161_v30, 0.0 }
 0x43b   :  { %9187 = vpow2.f32 %v1450_v41  ;;  %v1448_v6 = vmul.f32 1.442695, %v1426_v49  ;;  %1475 = vadd.xlane.f32.xlu0 %v1474_v25 }
 0x43d   :  { %9189 = vpow2.f32 %v1448_v6 }
 0x43e   :  { %v1413_v60 = vpop.xlane.xlu1 %1412 }
 0x43f   :  { %v10166_v7 = vpop.eup %9179  ;;  %v1433_v50 = vsub.f32 %v10104_v31, %v1413_v60 }
 0x440   :  { %v1410_v51 = vpop.xlane.xlu0 %1409  ;;  %v1483_v61 = vsel %vm1371_vm2, %v10166_v7, 0.0 }
 0x441   :  { %v10171_v39 = vpop.eup %9181  ;;  %v1462_v16 = vmul.f32 1.442695, %v1433_v50  ;;  %v1432_v9 = vsub.f32 %v10108_v33, %v1410_v51  ;;  %1484 = vadd.xlane.f32.xlu1 %v1483_v61 }
 0x442   :  { %v1407_v1 = vpop.xlane.xlu1 %1406  ;;  %v1480_v11 = vsel %vm1371_vm2, %v10171_v39, 0.0 }
 0x443   :  { %9191 = vpow2.f32 %v1462_v16  ;;  %v1460_v58 = vmul.f32 1.442695, %v1432_v9  ;;  %v1431_v54 = vsub.f32 %v10102_v28, %v1407_v1  ;;  %1481 = vadd.xlane.f32.xlu0 %v1480_v11 }
 0x444   :  { %v10177_v31 = vpop.eup %9183  ;;  %v1404_v59 = vpop.xlane.xlu0 %1403 }
 0x445   :  { %9193 = vpow2.f32 %v1460_v58  ;;  %v1458_v62 = vmul.f32 1.442695, %v1431_v54  ;;  %v1430_v63 = vsub.f32 %v10112_v18, %v1404_v59  ;;  %v1495_v33 = vsel %vm1371_vm2, %v10177_v31, 0.0 }
 0x446   :  { %v10182_v2 = vpop.eup %9185  ;;  %1496 = vadd.xlane.f32.xlu1 %v1495_v33  ;;  %v10210_v22 = vpop.permute.xlu1 %1985 }
 0x447   :  { %9195 = vpow2.f32 %v1458_v62  ;;  %v1456_v21 = vmul.f32 1.442695, %v1430_v63  ;;  %v1492_v24 = vsel %vm1371_vm2, %v10182_v2, 0.0 }
 0x448   :  { %v10186_v28 = vpop.eup %9187  ;;  %1493 = vadd.xlane.f32.xlu0 %v1492_v24  ;;  %v10212_v41 = vpop.permute.xlu0 %1896 }
 0x449   :  { %9197 = vpow2.f32 %v1456_v21  ;;  %v1489_v0 = vsel %vm1371_vm2, %v10186_v28, 0.0 }
 0x44a   :  { %v10190_v47 = vpop.eup %9189  ;;  %1490 = vadd.xlane.f32.xlu1 %v1489_v0 }
 0x44b   :  { %v1486_v18 = vsel %vm1371_vm2, %v10190_v47, 0.0 }
 0x44c   :  { %1487 = vadd.xlane.f32.xlu0 %v1486_v18 }
 0x450   :  { %v10194_v27 = vpop.eup %9191 }
 0x451   :  { %v1507_v17 = vsel %vm1371_vm2, %v10194_v27, 0.0 }
 0x452   :  { %v10198_v32 = vpop.eup %9193  ;;  %1508 = vadd.xlane.f32.xlu1 %v1507_v17 }
 0x453   :  { %v1504_v48 = vsel %vm1371_vm2, %v10198_v32, 0.0 }
 0x454   :  { %v10202_v55 = vpop.eup %9195  ;;  %1505 = vadd.xlane.f32.xlu0 %v1504_v48 }
 0x455   :  { %v1501_v13 = vsel %vm1371_vm2, %v10202_v55, 0.0 }
 0x456   :  { %v10206_v37 = vpop.eup %9197  ;;  %1502 = vadd.xlane.f32.xlu1 %v1501_v13 }
 0x457   :  { %v1498_v45 = vsel %vm1371_vm2, %v10206_v37, 0.0 }
 0x458   :  { %1499 = vadd.xlane.f32.xlu0 %v1498_v45 }
 0x477   :  { %v1419_v49 = vpop.xlane.xlu1 %1418 }
 0x478   :  { %v1435_v25 = vsub.f32 %v10122_v43, %v1419_v49 }
 0x479   :  { %v1416_v6 = vpop.xlane.xlu0 %1415 }
 0x47a   :  { %v1466_v60 = vmul.f32 1.442695, %v1435_v25  ;;  %v1434_v50 = vsub.f32 %v10124_v26, %v1416_v6 }
 0x47b   :  { %v10240_v26 = vpop.permute.xlu1 %2072 }
 0x47c   :  { %9199 = vpow2.f32 %v1466_v60  ;;  %v1464_v51 = vmul.f32 1.442695, %v1434_v50 }
 0x47d   :  { %v10234_v43 = vpop.permute.xlu0 %1983 }
 0x47e   :  { %9201 = vpow2.f32 %v1464_v51 }
 0x481   :  { %v10244_v11 = vpop.permute.xlu0 %2070 }
 0x489   :  { %v10216_v61 = vpop.eup %9199 }
 0x48a   :  { %v1513_v16 = vsel %vm1371_vm2, %v10216_v61, 0.0 }
 0x48b   :  { %v10220_v9 = vpop.eup %9201  ;;  %1514 = vadd.xlane.f32.xlu0 %v1513_v16 }
 0x48c   :  { %v1510_v1 = vsel %vm1371_vm2, %v10220_v9, 0.0 }
 0x48d   :  { %1511 = vadd.xlane.f32.xlu1 %v1510_v1 }
 0x49e   :  { %2159 = vrot.lane.b32.xlu1 %v9974_v35, %s9499_s5 }
 0x4a1   :  { %2157 = vrot.lane.b32.xlu0 %v9978_v36, %s9499_s5 }
 0x4a2   :  { %2459 = vrot.lane.b32.xlu1 %v9916_v19, %s9500_s4 }
 0x4a5   :  { %2457 = vrot.lane.b32.xlu0 %v9918_v40, %s9500_s4 }
 0x4a6   :  { %2453 = vrot.lane.b32.xlu1 %v9918_v40, %s9501_s17 }
 0x4a9   :  { %2550 = vrot.lane.b32.xlu0 %v9926_v3, %s9500_s4 }
 0x4aa   :  { %2455 = vrot.lane.b32.xlu1 %v9916_v19, %s9501_s17 }
 0x4ac   :  { %v1473_v58 = vpop.xlane.xlu1 %1472 }
 0x4ad   :  { %2548 = vrot.lane.b32.xlu0 %v9928_v4, %s9500_s4  ;;  %9203 = vrcp.f32 %v1473_v58 }
 0x4ae   :  { %2544 = vrot.lane.b32.xlu1 %v9928_v4, %s9501_s17 }
 0x4b1   :  { %2641 = vrot.lane.b32.xlu0 %v9932_v5, %s9500_s4 }
 0x4b2   :  { %2546 = vrot.lane.b32.xlu1 %v9926_v3, %s9501_s17  ;;  %v1470_v54 = vpop.xlane.xlu0 %1469 }
 0x4b3   :  { %9205 = vrcp.f32 %v1470_v54 }
 0x4b5   :  { %2639 = vrot.lane.b32.xlu0 %v9936_v8, %s9500_s4 }
 0x4b6   :  { %2635 = vrot.lane.b32.xlu1 %v9936_v8, %s9501_s17 }
 0x4b9   :  { %2732 = vrot.lane.b32.xlu0 %v9940_v12, %s9500_s4 }
 0x4ba   :  { %2637 = vrot.lane.b32.xlu1 %v9932_v5, %s9501_s17  ;;  %v9204_v59 = vpop.eup %9203 }
 0x4bb   :  { %v1533_v21 = vmul.f32 %v9204_v59, %v10142_v42 }
 0x4bd   :  { %2730 = vrot.lane.b32.xlu0 %v9944_v15, %s9500_s4 }
 0x4be   :  { %2726 = vrot.lane.b32.xlu1 %v9944_v15, %s9501_s17 }
 0x4c0   :  { %v9206_v62 = vpop.eup %9205 }
 0x4c1   :  { %2728 = vrot.lane.b32.xlu0 %v9940_v12, %s9501_s17  ;;  %v1532_v63 = vmul.f32 %v9206_v62, %v10146_v52 }
 0x4c2   :  { %2823 = vrot.lane.b32.xlu1 %v9948_v20, %s9500_s4  ;;  %v1479_v33 = vpop.xlane.xlu1 %1478 }
 0x4c3   :  { %8626 = vmatprep.mubr.msk.f32.mxu0 %vm1371_vm2, %v1532_v63  ;;  %9207 = vrcp.f32 %v1479_v33 }
 0x4c4   :  { %8627 = vmatmul.mubr.msk.f32.vlgmr.msra.gmra.mxu0 %vm1371_vm2, %v1533_v21  ;;  %v1476_v24 = vpop.xlane.xlu0 %1475 }
 0x4c5   :  { %8637 = vmatpush3.msra.mxu0 %v10060_v44  ;;  %2821 = vrot.lane.b32.xlu0 %v9952_v23, %s9500_s4  ;;  %9209 = vrcp.f32 %v1476_v24 }
 0x4c6   :  { %8638 = vmatprep.subr.mxu0 %v10130_v46  ;;  %2914 = vrot.lane.b32.xlu1 %v9960_v10, %s9500_s4 }
 0x4c7   :  { %8639 = vmatpush3.msra.mxu0 %v10130_v46 }
 0x4c8   :  { %8650 = vmatprep.subr.mxu0 %v10138_v14 }
 0x4c9   :  { %2817 = vrot.lane.b32.xlu0 %v9952_v23, %s9501_s17 }
 0x4ca   :  { %2819 = vrot.lane.b32.xlu1 %v9948_v20, %s9501_s17  ;;  %v1485_v44 = vpop.xlane.xlu1 %1484 }
 0x4cb   :  { %9211 = vrcp.f32 %v1485_v44 }
 0x4cc   :  { %v1482_v42 = vpop.xlane.xlu0 %1481 }
 0x4cd   :  { %2912 = vrot.lane.b32.xlu0 %v9962_v29, %s9500_s4  ;;  %9213 = vrcp.f32 %v1482_v42 }
 0x4ce   :  { %3005 = vrot.lane.b32.xlu1 %v9966_v56, %s9500_s4 }
 0x4cf   :  { %v1497_v52 = vpop.xlane.xlu1 %1496 }
 0x4d0   :  { %v9208_v46 = vpop.eup %9207  ;;  %9215 = vrcp.f32 %v1497_v52 }
 0x4d1   :  { %2908 = vrot.lane.b32.xlu0 %v9962_v29, %s9501_s17  ;;  %v1494_v0 = vpop.xlane.xlu0 %1493  ;;  %v1535_v13 = vmul.f32 %v9208_v46, %v10156_v38 }
 0x4d2   :  { %v9210_v18 = vpop.eup %9209  ;;  %9217 = vrcp.f32 %v1494_v0  ;;  %2910 = vrot.lane.b32.xlu1 %v9960_v10, %s9501_s17 }
 0x4d3   :  { %v1491_v17 = vpop.xlane.xlu1 %1490  ;;  %v1534_v48 = vmul.f32 %v9210_v18, %v10161_v30 }
 0x4d4   :  { %9219 = vrcp.f32 %v1491_v17 }
 0x4d5   :  { %3003 = vrot.lane.b32.xlu0 %v9970_v34, %s9500_s4  ;;  %v1488_v45 = vpop.xlane.xlu0 %1487  ;;  %8633 = vmatprep.mubr.msk.f32.mxu1 %vm1371_vm2, %v1534_v48 }
 0x4d6   :  { %9221 = vrcp.f32 %v1488_v45  ;;  %3096 = vrot.lane.b32.xlu1 %v9974_v35, %s9500_s4  ;;  %8634 = vmatmul.mubr.msk.f32.vlgmr.msra.gmra.mxu1 %vm1371_vm2, %v1535_v13 }
 0x4d7   :  { %8644 = vmatpush3.msra.mxu1 %v10065_v53 }
 0x4d8   :  { %8645 = vmatprep.subr.mxu1 %v10134_v57  ;;  %v9212_v30 = vpop.eup %9211 }
 0x4d9   :  { %2999 = vrot.lane.b32.xlu0 %v9970_v34, %s9501_s17  ;;  %8646 = vmatpush3.msra.mxu1 %v10134_v57  ;;  %v1537_v6 = vmul.f32 %v9212_v30, %v10166_v7 }
 0x4da   :  { %v9214_v38 = vpop.eup %9213  ;;  %3001 = vrot.lane.b32.xlu1 %v9966_v56, %s9501_s17  ;;  %8657 = vmatprep.subr.mxu1 %v10210_v22 }
 0x4db   :  { %v1509_v49 = vpop.xlane.xlu1 %1508  ;;  %v1536_v25 = vmul.f32 %v9214_v38, %v10171_v39 }
 0x4dc   :  { %9223 = vrcp.f32 %v1509_v49 }
 0x4dd   :  { %3094 = vrot.lane.b32.xlu0 %v9978_v36, %s9500_s4  ;;  %v1506_v53 = vpop.xlane.xlu0 %1505  ;;  %8640 = vmatprep.mubr.msk.f32.mxu0 %vm1371_vm2, %v1536_v25  ;;  %v9216_v60 = vpop.eup %9215 }
 0x4de   :  { %9225 = vrcp.f32 %v1506_v53  ;;  %3090 = vrot.lane.b32.xlu1 %v9978_v36, %s9501_s17  ;;  %8641 = vmatmul.mubr.msk.f32.vlgmr.msra.gmra.mxu0 %vm1371_vm2, %v1537_v6  ;;  %v1541_v51 = vmul.f32 %v9216_v60, %v10177_v31 }
 0x4df   :  { %v9218_v57 = vpop.eup %9217  ;;  %v1503_v50 = vpop.xlane.xlu1 %1502  ;;  %8651 = vmatpush3.msra.mxu0 %v10138_v14 }
 0x4e0   :  { %8652 = vmatprep.subr.mxu0 %v10212_v41  ;;  %v1540_v7 = vmul.f32 %v9218_v57, %v10182_v2  ;;  %9227 = vrcp.f32 %v1503_v50 }
 0x4e1   :  { %3092 = vrot.lane.b32.xlu0 %v9974_v35, %s9501_s17  ;;  %8653 = vmatpush3.msra.mxu0 %v10212_v41  ;;  %v1500_v39 = vpop.xlane.xlu0 %1499  ;;  %v9220_v16 = vpop.eup %9219  ;;  %v646_v41 = vld [vmem:[#allocation5] sm:$0xff] }
 0x4e2   :  { %9229 = vrcp.f32 %v1500_v39  ;;  %3357 = vrot.lane.b32.xlu1 %v9918_v40, %s9502_s18  ;;  %8654 = vmatprep.mubr.msk.f32.mxu0 %vm1371_vm2, %v1540_v7  ;;  %v1539_v31 = vmul.f32 %v9220_v16, %v10186_v28 }
 0x4e3   :  { %v9222_v14 = vpop.eup %9221  ;;  %8664 = vmatprep.subr.mxu0 %v10240_v26  ;;  %8655 = vmatmul.mubr.msk.f32.vlgmr.msra.gmra.mxu0 %vm1371_vm2, %v1541_v51 }
 0x4e4   :  { %8665 = vmatpush3.msra.mxu0 %v10240_v26  ;;  %v1538_v2 = vmul.f32 %v9222_v14, %v10190_v47 }
 0x4e5   :  { %8666 = vmatprep.subr.mxu0 %v10244_v11  ;;  %3359 = vrot.lane.b32.xlu0 %v9916_v19, %s9502_s18 }
 0x4e6   :  { %8667 = vmatpush3.msra.mxu0 %v10244_v11  ;;  %3446 = vrot.lane.b32.xlu1 %v9926_v3, %s9502_s18 }
 0x4e7   :  { %8647 = vmatprep.mubr.msk.f32.mxu1 %vm1371_vm2, %v1538_v2  ;;  %8678 = vmatprep.subr.mxu0 %v646_v41 }
 0x4e8   :  { %8648 = vmatmul.mubr.msk.f32.vlgmr.msra.gmra.mxu1 %vm1371_vm2, %v1539_v31 }
 0x4e9   :  { %8658 = vmatpush3.msra.mxu1 %v10210_v22  ;;  %3444 = vrot.lane.b32.xlu0 %v9928_v4, %s9502_s18  ;;  %v9224_v47 = vpop.eup %9223 }
 0x4ea   :  { %8659 = vmatprep.subr.mxu1 %v10234_v43  ;;  %3533 = vrot.lane.b32.xlu1 %v9932_v5, %s9502_s18  ;;  %v1545_v26 = vmul.f32 %v9224_v47, %v10194_v27 }
 0x4eb   :  { %v9226_v1 = vpop.eup %9225  ;;  %8660 = vmatpush3.msra.mxu1 %v10234_v43 }
 0x4ec   :  { %v1544_v28 = vmul.f32 %v9226_v1, %v10198_v32 }
 0x4ed   :  { %v9228_v11 = vpop.eup %9227 }
 0x4ee   :  { %8668 = vmatprep.mubr.msk.f32.mxu0 %vm1371_vm2, %v1544_v28  ;;  %v1543_v54 = vmul.f32 %v9228_v11, %v10202_v55 }
 0x4ef   :  { %v9230_v22 = vpop.eup %9229  ;;  %8669 = vmatmul.mubr.msk.f32.vlgmr.msra.gmra.mxu0 %vm1371_vm2, %v1545_v26 }
 0x4f0   :  { %v1542_v58 = vmul.f32 %v9230_v22, %v10206_v37  ;;  %8679 = vmatpush3.msra.mxu0 %v646_v41 }
 0x4f2   :  { %8661 = vmatprep.mubr.msk.f32.mxu1 %vm1371_vm2, %v1542_v58 }
 0x4f3   :  { %8662 = vmatmul.mubr.msk.f32.vlgmr.msra.gmra.mxu1 %vm1371_vm2, %v1543_v54 }
 0x514   :  { %v1515_v43 = vpop.xlane.xlu0 %1514 }
 0x515   :  { %9231 = vrcp.f32 %v1515_v43 }
 0x516   :  { %v1512_v32 = vpop.xlane.xlu1 %1511 }
 0x517   :  { %9233 = vrcp.f32 %v1512_v32 }
 0x518   :  { %v2158_v27 = vpop.permute.xlu0 %2157 }
 0x51a   :  { %v2160_v59 = vpop.permute.xlu1 %2159 }
 0x51b   :  { %8671 = vmatprep.subr.mxu1 %v2160_v59 }
 0x51c   :  { %8672 = vmatpush3.msra.mxu1 %v2160_v59  ;;  %v2458_v62 = vpop.permute.xlu0 %2457 }
 0x51d   :  { %8673 = vmatprep.subr.mxu1 %v2158_v27 }
 0x51e   :  { %v2460_v63 = vpop.permute.xlu1 %2459  ;;  %8674 = vmatpush3.msra.mxu1 %v2158_v27 }
 0x51f   :  { %8704 = vmatprep.subr.msk.mxu1 %vm664_vm1, %v2460_v63 }
 0x520   :  { %v2551_v37 = vpop.permute.xlu0 %2550 }
 0x522   :  { %v2454_v55 = vpop.permute.xlu1 %2453  ;;  %v9232_v33 = vpop.eup %9231 }
 0x523   :  { %v1547_v52 = vmul.f32 %v9232_v33, %v10216_v61 }
 0x524   :  { %v9234_v21 = vpop.eup %9233  ;;  %v2549_v24 = vpop.permute.xlu0 %2548 }
 0x525   :  { %v1546_v44 = vmul.f32 %v9234_v21, %v10220_v9 }
 0x526   :  { %v2456_v42 = vpop.permute.xlu1 %2455 }
 0x527   :  { %8675 = vmatprep.mubr.msk.f32.mxu1 %vm1371_vm2, %v1546_v44 }
 0x528   :  { %8676 = vmatmul.mubr.msk.f32.vlgmr.msra.gmra.mxu1 %vm1371_vm2, %v1547_v52  ;;  %v2642_v46 = vpop.permute.xlu0 %2641 }
 0x529   :  { %8705 = vmatpush3.xpose.msk.msra.mxu1 %vm664_vm1, %v2460_v63  ;;  %8708 = vmatprep.mubr.msk.f32.mxu1 %vm664_vm1, %v2454_v55 }
 0x52a   :  { %8706 = vmatprep.subr.msk.mxu1 %vm664_vm1, %v2458_v62  ;;  %v2545_v0 = vpop.permute.xlu1 %2544 }
 0x52c   :  { %v2640_v18 = vpop.permute.xlu0 %2639 }
 0x52d   :  { %8707 = vmatpush3.xpose.msk.msra.mxu1 %vm664_vm1, %v2458_v62 }
 0x52e   :  { %8711 = vmatprep.subr.msk.mxu1 %vm664_vm1, %v2551_v37  ;;  %v2547_v9 = vpop.permute.xlu1 %2546 }
 0x530   :  { %8709 = vmatmul.mubr.msk.f32.vlgmr.msra.gmra.mxu1 %vm664_vm1, %v2456_v42  ;;  %v2733_v61 = vpop.permute.xlu0 %2732 }
 0x531   :  { %8712 = vmatpush3.xpose.msk.msra.mxu1 %vm664_vm1, %v2551_v37  ;;  %8715 = vmatprep.mubr.msk.f32.mxu1 %vm664_vm1, %v2545_v0 }
 0x532   :  { %8713 = vmatprep.subr.msk.mxu1 %vm664_vm1, %v2549_v24  ;;  %v2636_v17 = vpop.permute.xlu1 %2635 }
 0x534   :  { %v2731_v48 = vpop.permute.xlu0 %2730 }
 0x535   :  { %8714 = vmatpush3.xpose.msk.msra.mxu1 %vm664_vm1, %v2549_v24 }
 0x536   :  { %8718 = vmatprep.subr.msk.mxu1 %vm664_vm1, %v2642_v46  ;;  %v2638_v13 = vpop.permute.xlu1 %2637 }
 0x538   :  { %8716 = vmatmul.mubr.msk.f32.vlgmr.msra.gmra.mxu1 %vm664_vm1, %v2547_v9  ;;  %v2729_v45 = vpop.permute.xlu0 %2728 }
 0x539   :  { %8719 = vmatpush3.xpose.msk.msra.mxu1 %vm664_vm1, %v2642_v46  ;;  %8722 = vmatprep.mubr.msk.f32.mxu1 %vm664_vm1, %v2636_v17 }
 0x53a   :  { %8720 = vmatprep.subr.msk.mxu1 %vm664_vm1, %v2640_v18  ;;  %v2727_v30 = vpop.permute.xlu1 %2726 }
 0x53c   :  { %v2822_v38 = vpop.permute.xlu0 %2821 }
 0x53d   :  { %8721 = vmatpush3.xpose.msk.msra.mxu1 %vm664_vm1, %v2640_v18 }
 0x53e   :  { %8725 = vmatprep.subr.msk.mxu1 %vm664_vm1, %v2733_v61  ;;  %v2824_v49 = vpop.permute.xlu1 %2823 }
 0x53f   :  { %8732 = vmatprep.subr.msk.mxu0 %vm664_vm1, %v2824_v49 }
 0x540   :  { %8723 = vmatmul.mubr.msk.f32.vlgmr.msra.gmra.mxu1 %vm664_vm1, %v2638_v13  ;;  %v10378_v25 = vpop.permute.xlu0 %2817 }
 0x541   :  { %8726 = vmatpush3.xpose.msk.msra.mxu1 %vm664_vm1, %v2733_v61  ;;  %8729 = vmatprep.mubr.msk.f32.mxu1 %vm664_vm1, %v2727_v30 }
 0x542   :  { %8727 = vmatprep.subr.msk.mxu1 %vm664_vm1, %v2731_v48  ;;  %v2915_v6 = vpop.permute.xlu1 %2914 }
 0x544   :  { %v2913_v53 = vpop.permute.xlu0 %2912 }
 0x545   :  { %8728 = vmatpush3.xpose.msk.msra.mxu1 %vm664_vm1, %v2731_v48 }
 0x546   :  { %8739 = vmatprep.subr.msk.mxu1 %vm664_vm1, %v2915_v6  ;;  %v10385_v60 = vpop.permute.xlu1 %2819 }
 0x548   :  { %8730 = vmatmul.mubr.msk.f32.vlgmr.msra.gmra.mxu1 %vm664_vm1, %v2729_v45  ;;  %v2909_v57 = vpop.permute.xlu0 %2908 }
 0x549   :  { %8740 = vmatpush3.xpose.msk.msra.mxu1 %vm664_vm1, %v2915_v6  ;;  %8743 = vmatprep.mubr.msk.f32.mxu1 %vm664_vm1, %v2909_v57 }
 0x54a   :  { %8741 = vmatprep.subr.msk.mxu1 %vm664_vm1, %v2913_v53  ;;  %v3006_v50 = vpop.permute.xlu1 %3005 }
 0x54c   :  { %v10391_v7 = vpop.permute.xlu0 %3003 }
 0x54d   :  { %8742 = vmatpush3.xpose.msk.msra.mxu1 %vm664_vm1, %v2913_v53 }
 0x54e   :  { %v2911_v39 = vpop.permute.xlu1 %2910 }
 0x550   :  { %8744 = vmatmul.mubr.msk.f32.vlgmr.msra.gmra.mxu1 %vm664_vm1, %v2911_v39  ;;  %v3000_v51 = vpop.permute.xlu0 %2999 }
 0x552   :  { %v3097_v16 = vpop.permute.xlu1 %3096 }
 0x553   :  { %8753 = vmatprep.subr.msk.mxu1 %vm664_vm1, %v3097_v16 }
 0x554   :  { %8754 = vmatpush3.xpose.msk.msra.mxu1 %vm664_vm1, %v3097_v16  ;;  %v3095_v14 = vpop.permute.xlu0 %3094 }
 0x555   :  { %8755 = vmatprep.subr.msk.mxu1 %vm664_vm1, %v3095_v14 }
 0x556   :  { %v3002_v2 = vpop.permute.xlu1 %3001 }
 0x558   :  { %8756 = vmatpush3.xpose.msk.msra.mxu1 %vm664_vm1, %v3095_v14  ;;  %v3093_v31 = vpop.permute.xlu0 %3092 }
 0x55a   :  { %v3091_v41 = vpop.permute.xlu1 %3090 }
 0x55b   :  { %8757 = vmatprep.mubr.msk.f32.mxu1 %vm664_vm1, %v3091_v41 }
 0x55c   :  { %8758 = vmatmul.mubr.msk.f32.vlgmr.msra.gmra.mxu1 %vm664_vm1, %v3093_v31  ;;  %v3360_v0 = vpop.permute.xlu0 %3359 }
 0x55e   :  { %v3358_v47 = vpop.permute.xlu1 %3357 }
 0x560   :  { %v10462_v14 = vpop.permute.xlu0 %3444 }
 0x562   :  { %v10401_v1 = vpop.permute.xlu1 %3446 }
 0x566   :  { %v3534_v28 = vpop.permute.xlu1 %3533 }
 0x567   :  { %8774 = vmatprep.subr.mxu1 %v3534_v28 }
 0x568   :  { %8775 = vmatpush3.msra.mxu1 %v3534_v28 }
 0x584   :  { %v8628_v26 = vpop.f32.mrf.mxu0 }
 0x586   :  { %v1626_v11 = vpop.f32.mrf.mxu0 }
 0x587   :  { %8680 = vmatprep.mubr.msk.f32.mxu0 %vm664_vm1, %v1626_v11 }
 0x588   :  { %8681 = vmatmul.mubr.msk.f32.vlgmr.msra.gmra.mxu0 %vm664_vm1, %v8628_v26 }
 0x589   :  { %8733 = vmatpush3.xpose.msk.msra.mxu0 %vm664_vm1, %v2824_v49 }
 0x58a   :  { %8734 = vmatprep.subr.msk.mxu0 %vm664_vm1, %v2822_v38 }
 0x58d   :  { %8735 = vmatpush3.xpose.msk.msra.mxu0 %vm664_vm1, %v2822_v38 }
 0x58e   :  { %8746 = vmatprep.subr.msk.mxu0 %vm664_vm1, %v3006_v50 }
 0x596   :  { %v8635_v22 = vpop.f32.mrf.mxu1 }
 0x598   :  { %v1713_v58 = vpop.f32.mrf.mxu1 }
 0x599   :  { %8683 = vmatprep.mubr.msk.f32.mxu0 %vm664_vm1, %v1713_v58 }
 0x59a   :  { %8684 = vmatmul.mubr.msk.f32.gmra.mxu0 %vm664_vm1, %v8635_v22 }
 0x59e   :  { %v8642_v54 = vpop.f32.mrf.mxu0 }
 0x5a0   :  { %v1800_v43 = vpop.f32.mrf.mxu0 }
 0x5a1   :  { %8686 = vmatprep.mubr.msk.f32.mxu0 %vm664_vm1, %v1800_v43 }
 0x5a2   :  { %8687 = vmatmul.mubr.msk.f32.gmra.mxu0 %vm664_vm1, %v8642_v54 }
 0x5a3   :  { %v8656_v32 = vpop.f32.mrf.mxu0 }
 0x5a5   :  { %v1974_v62 = vpop.f32.mrf.mxu0 }
 0x5a8   :  { %v8649_v27 = vpop.f32.mrf.mxu1 }
 0x5aa   :  { %v1887_v59 = vpop.f32.mrf.mxu1 }
 0x5ab   :  { %8689 = vmatprep.mubr.msk.f32.mxu0 %vm664_vm1, %v1887_v59 }
 0x5ac   :  { %8690 = vmatmul.mubr.msk.f32.gmra.mxu0 %vm664_vm1, %v8649_v27 }
 0x5ad   :  { %8692 = vmatprep.mubr.msk.f32.mxu0 %vm664_vm1, %v1974_v62 }
 0x5af   :  { %v8670_v63 = vpop.f32.mrf.mxu0 }
 0x5b0   :  { %8693 = vmatmul.mubr.msk.f32.gmra.mxu0 %vm664_vm1, %v8656_v32 }
 0x5b1   :  { %v2148_v33 = vpop.f32.mrf.mxu0 }
 0x5b3   :  { %v8663_v37 = vpop.f32.mrf.mxu1 }
 0x5b5   :  { %v2061_v55 = vpop.f32.mrf.mxu1 }
 0x5b6   :  { %8695 = vmatprep.mubr.msk.f32.mxu0 %vm664_vm1, %v2061_v55 }
 0x5b7   :  { %8696 = vmatmul.mubr.msk.f32.gmra.mxu0 %vm664_vm1, %v8663_v37 }
 0x5b8   :  { %8698 = vmatprep.mubr.msk.f32.mxu0 %vm664_vm1, %v2148_v33 }
 0x5bb   :  { %8699 = vmatmul.mubr.msk.f32.gmra.mxu0 %vm664_vm1, %v8670_v63 }
 0x5e8   :  { %v8677_v21 = vpop.f32.mrf.mxu1 }
 0x5ea   :  { %v2235_v24 = vpop.f32.mrf.mxu1 }
 0x5eb   :  { %8701 = vmatprep.mubr.msk.f32.mxu0 %vm664_vm1, %v2235_v24 }
 0x5ec   :  { %8702 = vmatmul.mubr.msk.f32.gmra.mxu0 %vm664_vm1, %v8677_v21 }
 0x5ed   :  { %8736 = vmatprep.mubr.msk.f32.mxu0 %vm664_vm1, %v10378_v25 }
 0x5f0   :  { %v8710_v44 = vpop.f32.mrf.mxu1  ;;  %8737 = vmatmul.mubr.msk.f32.vlgmr.msra.gmra.mxu0 %vm664_vm1, %v10385_v60 }
 0x5f1   :  { %8747 = vmatpush3.xpose.msk.msra.mxu0 %vm664_vm1, %v3006_v50  ;;  %v3184_v42 = vsel %vm1371_vm2, %v8710_v44, -inf  ;;  %8750 = vmatprep.mubr.msk.f32.mxu0 %vm664_vm1, %v3000_v51 }
 0x5f2   :  { %3185 = vmax.xlane.f32.xlu0 %v3184_v42  ;;  %v2535_v52 = vpop.f32.mrf.mxu1  ;;  %8748 = vmatprep.subr.msk.mxu0 %vm664_vm1, %v10391_v7 }
 0x5f3   :  { %v3181_v46 = vsel %vm1371_vm2, %v2535_v52, -inf }
 0x5f4   :  { %3182 = vmax.xlane.f32.xlu1 %v3181_v46 }
 0x5f5   :  { %8749 = vmatpush3.xpose.msk.msra.mxu0 %vm664_vm1, %v10391_v7 }
 0x5f6   :  { %8760 = vmatprep.subr.mxu0 %v3360_v0 }
 0x5f8   :  { %v8717_v18 = vpop.f32.mrf.mxu1  ;;  %8751 = vmatmul.mubr.msk.f32.vlgmr.msra.gmra.mxu0 %vm664_vm1, %v3002_v2 }
 0x5f9   :  { %8761 = vmatpush3.msra.mxu0 %v3360_v0  ;;  %v3190_v9 = vsel %vm1371_vm2, %v8717_v18, -inf }
 0x5fa   :  { %3191 = vmax.xlane.f32.xlu1 %v3190_v9  ;;  %v2626_v61 = vpop.f32.mrf.mxu1  ;;  %8762 = vmatprep.subr.mxu0 %v3358_v47 }
 0x5fb   :  { %8763 = vmatpush3.msra.mxu0 %v3358_v47  ;;  %v3187_v17 = vsel %vm1371_vm2, %v2626_v61, -inf }
 0x5fc   :  { %3188 = vmax.xlane.f32.xlu0 %v3187_v17  ;;  %8767 = vmatprep.subr.mxu0 %v10401_v1 }
 0x600   :  { %v8724_v48 = vpop.f32.mrf.mxu1 }
 0x601   :  { %v3196_v13 = vsel %vm1371_vm2, %v8724_v48, -inf }
 0x602   :  { %3197 = vmax.xlane.f32.xlu1 %v3196_v13  ;;  %v2717_v45 = vpop.f32.mrf.mxu1 }
 0x603   :  { %v3193_v30 = vsel %vm1371_vm2, %v2717_v45, -inf }
 0x604   :  { %3194 = vmax.xlane.f32.xlu0 %v3193_v30 }
 0x608   :  { %v8731_v38 = vpop.f32.mrf.mxu1 }
 0x609   :  { %v3202_v49 = vsel %vm1371_vm2, %v8731_v38, -inf }
 0x60a   :  { %3203 = vmax.xlane.f32.xlu1 %v3202_v49  ;;  %v10442_v25 = vpop.f32.mrf.mxu1 }
 0x60b   :  { %v3199_v6 = vsel %vm1371_vm2, %v10442_v25, -inf }
 0x60c   :  { %3200 = vmax.xlane.f32.xlu0 %v3199_v6 }
 0x610   :  { %v10446_v53 = vpop.f32.mrf.mxu1 }
 0x611   :  { %v3214_v60 = vsel %vm1371_vm2, %v10446_v53, -inf }
 0x612   :  { %3215 = vmax.xlane.f32.xlu1 %v3214_v60  ;;  %v10450_v57 = vpop.f32.mrf.mxu1 }
 0x613   :  { %v3211_v50 = vsel %vm1371_vm2, %v10450_v57, -inf }
 0x614   :  { %3212 = vmax.xlane.f32.xlu0 %v3211_v50 }
 0x61c   :  { %v10454_v7 = vpop.f32.mrf.mxu1 }
 0x61d   :  { %v3226_v39 = vsel %vm1371_vm2, %v10454_v7, -inf }
 0x61e   :  { %3227 = vmax.xlane.f32.xlu1 %v3226_v39  ;;  %v10458_v51 = vpop.f32.mrf.mxu1 }
 0x61f   :  { %v3223_v16 = vsel %vm1371_vm2, %v10458_v51, -inf }
 0x620   :  { %3224 = vmax.xlane.f32.xlu0 %v3223_v16 }
 0x648   :  { %v10464_v47 = vpop.f32.mrf.mxu0 }
 0x64a   :  { %v10466_v22 = vpop.f32.mrf.mxu0 }
 0x65a   :  { %v10468_v54 = vpop.f32.mrf.mxu0 }
 0x65c   :  { %v10470_v62 = vpop.f32.mrf.mxu0 }
 0x662   :  { %v10472_v37 = vpop.f32.mrf.mxu0 }
 0x67b   :  { %v3186_v2 = vpop.xlane.xlu0 %3185 }
 0x67c   :  { %v3230_v41 = vsub.f32 %v8710_v44, %v3186_v2  ;;  %v10476_v44 = vpop.f32.mrf.mxu0 }
 0x67d   :  { %v3183_v31 = vpop.xlane.xlu1 %3182 }
 0x67e   :  { %v3247_v28 = vmul.f32 1.442695, %v3230_v41  ;;  %v3229_v26 = vsub.f32 %v2535_v52, %v3183_v31 }
 0x680   :  { %9235 = vpow2.f32 %v3247_v28  ;;  %v3245_v11 = vmul.f32 1.442695, %v3229_v26 }
 0x682   :  { %9237 = vpow2.f32 %v3245_v11 }
 0x683   :  { %v3192_v58 = vpop.xlane.xlu1 %3191 }
 0x684   :  { %v3232_v43 = vsub.f32 %v8717_v18, %v3192_v58  ;;  %v10482_v18 = vpop.f32.mrf.mxu0 }
 0x685   :  { %v3189_v32 = vpop.xlane.xlu0 %3188 }
 0x686   :  { %v3251_v27 = vmul.f32 1.442695, %v3232_v43  ;;  %v3231_v59 = vsub.f32 %v2626_v61, %v3189_v32 }
 0x688   :  { %9239 = vpow2.f32 %v3251_v27  ;;  %v3249_v63 = vmul.f32 1.442695, %v3231_v59 }
 0x68a   :  { %9241 = vpow2.f32 %v3249_v63 }
 0x68b   :  { %v3198_v55 = vpop.xlane.xlu1 %3197 }
 0x68c   :  { %v3234_v33 = vsub.f32 %v8724_v48, %v3198_v55  ;;  %v10486_v48 = vpop.f32.mrf.mxu0 }
 0x68d   :  { %v10474_v21 = vpop.eup %9235  ;;  %v3195_v24 = vpop.xlane.xlu0 %3194 }
 0x68e   :  { %v3255_v42 = vmul.f32 1.442695, %v3234_v33  ;;  %v3233_v52 = vsub.f32 %v2717_v45, %v3195_v24  ;;  %v3280_v46 = vsel %vm1371_vm2, %v10474_v21, 0.0  ;;  %v10495_v39 = vpop.f32.mrf.mxu0 }
 0x68f   :  { %v10480_v0 = vpop.eup %9237  ;;  %3281 = vadd.xlane.f32.xlu1 %v3280_v46 }
 0x690   :  { %9243 = vpow2.f32 %v3255_v42  ;;  %v3253_v9 = vmul.f32 1.442695, %v3233_v52  ;;  %v3277_v61 = vsel %vm1371_vm2, %v10480_v0, 0.0  ;;  %v10499_v41 = vpop.f32.mrf.mxu0 }
 0x691   :  { %3278 = vadd.xlane.f32.xlu0 %v3277_v61 }
 0x692   :  { %9245 = vpow2.f32 %v3253_v9  ;;  %v10504_v26 = vpop.f32.mrf.mxu0 }
 0x693   :  { %v3204_v17 = vpop.xlane.xlu1 %3203 }
 0x694   :  { %v3236_v13 = vsub.f32 %v8731_v38, %v3204_v17 }
 0x695   :  { %v10488_v45 = vpop.eup %9239  ;;  %v3201_v30 = vpop.xlane.xlu0 %3200 }
 0x696   :  { %v3259_v49 = vmul.f32 1.442695, %v3236_v13  ;;  %v3235_v6 = vsub.f32 %v10442_v25, %v3201_v30  ;;  %v3286_v60 = vsel %vm1371_vm2, %v10488_v45, 0.0 }
 0x697   :  { %v10493_v50 = vpop.eup %9241  ;;  %3287 = vadd.xlane.f32.xlu1 %v3286_v60 }
 0x698   :  { %9247 = vpow2.f32 %v3259_v49  ;;  %v3257_v16 = vmul.f32 1.442695, %v3235_v6  ;;  %v3283_v2 = vsel %vm1371_vm2, %v10493_v50, 0.0 }
 0x699   :  { %3284 = vadd.xlane.f32.xlu0 %v3283_v2 }
 0x69a   :  { %9249 = vpow2.f32 %v3257_v16 }
 0x69b   :  { %v3216_v38 = vpop.xlane.xlu1 %3215 }
 0x69c   :  { %v3240_v25 = vsub.f32 %v10446_v53, %v3216_v38  ;;  %v10513_v53 = vpop.f32.mrf.mxu0 }
 0x69d   :  { %v10502_v31 = vpop.eup %9243  ;;  %v3213_v28 = vpop.xlane.xlu0 %3212 }
 0x69e   :  { %v3267_v11 = vmul.f32 1.442695, %v3240_v25  ;;  %v3239_v58 = vsub.f32 %v10450_v57, %v3213_v28  ;;  %v3292_v43 = vsel %vm1371_vm2, %v10502_v31, 0.0  ;;  %v10517_v55 = vpop.f32.mrf.mxu0 }
 0x69f   :  { %v10509_v32 = vpop.eup %9245  ;;  %3293 = vadd.xlane.f32.xlu1 %v3292_v43 }
 0x6a0   :  { %9251 = vpow2.f32 %v3267_v11  ;;  %v3265_v27 = vmul.f32 1.442695, %v3239_v58  ;;  %v3289_v59 = vsel %vm1371_vm2, %v10509_v32, 0.0  ;;  %v10525_v42 = vpop.f32.mrf.mxu0 }
 0x6a1   :  { %3290 = vadd.xlane.f32.xlu0 %v3289_v59 }
 0x6a2   :  { %9253 = vpow2.f32 %v3265_v27 }
 0x6a5   :  { %v10515_v63 = vpop.eup %9247 }
 0x6a6   :  { %v3298_v57 = vsel %vm1371_vm2, %v10515_v63, 0.0 }
 0x6a7   :  { %v10521_v33 = vpop.eup %9249  ;;  %3299 = vadd.xlane.f32.xlu1 %v3298_v57  ;;  %v3228_v28 = vpop.xlane.xlu1 %3227 }
 0x6a8   :  { %v3295_v24 = vsel %vm1371_vm2, %v10521_v33, 0.0  ;;  %v3244_v11 = vsub.f32 %v10454_v7, %v3228_v28 }
 0x6a9   :  { %3296 = vadd.xlane.f32.xlu0 %v3295_v24  ;;  %v3225_v38 = vpop.xlane.xlu0 %3224 }
 0x6aa   :  { %v3243_v25 = vsub.f32 %v10458_v51, %v3225_v38  ;;  %v3275_v43 = vmul.f32 1.442695, %v3244_v11 }
 0x6ac   :  { %v10527_v52 = vpop.f32.mrf.mxu0  ;;  %v3273_v58 = vmul.f32 1.442695, %v3243_v25 }
 0x6ad   :  { %v10529_v46 = vpop.eup %9251 }
 0x6ae   :  { %v10531_v9 = vpop.f32.mrf.mxu0  ;;  %v3310_v61 = vsel %vm1371_vm2, %v10529_v46, 0.0  ;;  %9255 = vpow2.f32 %v3273_v58 }
 0x6af   :  { %v10535_v17 = vpop.eup %9253  ;;  %3311 = vadd.xlane.f32.xlu1 %v3310_v61  ;;  %9257 = vpow2.f32 %v3275_v43 }
 0x6b0   :  { %v10537_v13 = vpop.f32.mrf.mxu0  ;;  %v3307_v49 = vsel %vm1371_vm2, %v10535_v17, 0.0 }
 0x6b1   :  { %v3208_v60 = vsel %vm1371_vm2, %v10537_v13, -inf }
 0x6b2   :  { %v10539_v30 = vpop.f32.mrf.mxu0 }
 0x6b3   :  { %3308 = vadd.xlane.f32.xlu1 %v3307_v49  ;;  %v3205_v6 = vsel %vm1371_vm2, %v10539_v30, -inf }
 0x6b4   :  { %3206 = vmax.xlane.f32.xlu0 %v3205_v6 }
 0x6b7   :  { %3209 = vmax.xlane.f32.xlu1 %v3208_v60 }
 0x6b8   :  { %v10547_v16 = vpop.f32.mrf.mxu0 }
 0x6b9   :  { %v3220_v2 = vsel %vm1371_vm2, %v10547_v16, -inf }
 0x6ba   :  { %v10573_v24 = vpop.f32.mrf.mxu0 }
 0x6bb   :  { %3221 = vmax.xlane.f32.xlu1 %v3220_v2  ;;  %v10565_v27 = vpop.eup %9255  ;;  %v3217_v7 = vsel %vm1371_vm2, %v10573_v24, -inf }
 0x6bc   :  { %v3319_v59 = vsel %vm1371_vm2, %v10565_v27, 0.0  ;;  %v10569_v57 = vpop.eup %9257 }
 0x6bd   :  { %v3322_v51 = vsel %vm1371_vm2, %v10569_v57, 0.0 }
 0x6ca   :  { %3620 = vrot.lane.b32.xlu0 %v9940_v12, %s9502_s18 }
 0x6cc   :  { %3531 = vrot.lane.b32.xlu1 %v9936_v8, %s9502_s18 }
 0x6ce   :  { %3618 = vrot.lane.b32.xlu0 %v9944_v15, %s9502_s18 }
 0x6d2   :  { %3707 = vrot.lane.b32.xlu0 %v9948_v20, %s9502_s18 }
 0x6d6   :  { %3794 = vrot.lane.b32.xlu0 %v9960_v10, %s9502_s18 }
 0x6da   :  { %3792 = vrot.lane.b32.xlu0 %v9962_v29, %s9502_s18 }
 0x6f0   :  { %3320 = vadd.xlane.f32.xlu1 %v3319_v59 }
 0x6f4   :  { %3323 = vadd.xlane.f32.xlu1 %v3322_v51 }
 0x6f9   :  { %3218 = vmax.xlane.f32.xlu0 %v3217_v7 }
 0x705   :  { %3705 = vrot.lane.b32.xlu1 %v9952_v23, %s9502_s18 }
 0x70f   :  { %3881 = vrot.lane.b32.xlu0 %v9966_v56, %s9502_s18 }
 0x718   :  { %v3282_v61 = vpop.xlane.xlu1 %3281 }
 0x719   :  { %9259 = vrcp.f32 %v3282_v61 }
 0x71a   :  { %v3279_v49 = vpop.xlane.xlu0 %3278 }
 0x71b   :  { %9261 = vrcp.f32 %v3279_v49 }
 0x720   :  { %v3288_v6 = vpop.xlane.xlu1 %3287 }
 0x721   :  { %9263 = vrcp.f32 %v3288_v6 }
 0x722   :  { %v3285_v60 = vpop.xlane.xlu0 %3284 }
 0x723   :  { %9265 = vrcp.f32 %v3285_v60 }
 0x726   :  { %v9260_v2 = vpop.eup %9259 }
 0x727   :  { %v3342_v11 = vmul.f32 %v9260_v2, %v10474_v21 }
 0x728   :  { %v9262_v38 = vpop.eup %9261  ;;  %v3294_v43 = vpop.xlane.xlu1 %3293 }
 0x729   :  { %v3341_v25 = vmul.f32 %v9262_v38, %v10480_v0 }
 0x72a   :  { %v3291_v28 = vpop.xlane.xlu0 %3290 }
 0x72b   :  { %9267 = vrcp.f32 %v3291_v28  ;;  %8764 = vmatprep.mubr.msk.f32.mxu0 %vm1371_vm2, %v3341_v25 }
 0x72c   :  { %8765 = vmatmul.mubr.msk.f32.vlgmr.msra.gmra.mxu0 %vm1371_vm2, %v3342_v11 }
 0x72d   :  { %8768 = vmatpush3.msra.mxu0 %v10401_v1 }
 0x72e   :  { %8769 = vmatprep.subr.mxu0 %v10462_v14  ;;  %v9264_v58 = vpop.eup %9263 }
 0x72f   :  { %8770 = vmatpush3.msra.mxu0 %v10462_v14  ;;  %v3344_v7 = vmul.f32 %v9264_v58, %v10488_v45 }
 0x730   :  { %v9266_v59 = vpop.eup %9265  ;;  %v3300_v21 = vpop.xlane.xlu1 %3299 }
 0x731   :  { %v3343_v51 = vmul.f32 %v9266_v59, %v10493_v50 }
 0x732   :  { %v3297_v0 = vpop.xlane.xlu0 %3296 }
 0x733   :  { %9269 = vrcp.f32 %v3297_v0  ;;  %8771 = vmatprep.mubr.msk.f32.mxu0 %vm1371_vm2, %v3343_v51 }
 0x734   :  { %8772 = vmatmul.mubr.msk.f32.vlgmr.msra.gmra.mxu0 %vm1371_vm2, %v3344_v7  ;;  %9271 = vrcp.f32 %v3300_v21 }
 0x735   :  { %9273 = vrcp.f32 %v3294_v43 }
 0x738   :  { %v9268_v1 = vpop.eup %9267  ;;  %v3312_v61 = vpop.xlane.xlu1 %3311 }
 0x739   :  { %v3345_v49 = vmul.f32 %v9268_v1, %v10509_v32 }
 0x73b   :  { %8778 = vmatprep.mubr.msk.f32.mxu1 %vm1371_vm2, %v3345_v49 }
 0x73c   :  { %v3309_v14 = vpop.xlane.xlu1 %3308 }
 0x73d   :  { %9275 = vrcp.f32 %v3309_v14  ;;  %v3207_v50 = vpop.xlane.xlu0 %3206 }
 0x73e   :  { %v3237_v6 = vsub.f32 %v10539_v30, %v3207_v50  ;;  %9277 = vrcp.f32 %v3312_v61 }
 0x740   :  { %v9270_v45 = vpop.eup %9269  ;;  %v3261_v60 = vmul.f32 1.442695, %v3237_v6  ;;  %v3210_v2 = vpop.xlane.xlu1 %3209 }
 0x741   :  { %v3238_v38 = vsub.f32 %v10537_v13, %v3210_v2  ;;  %v3621_v25 = vpop.permute.xlu0 %3620  ;;  %v3347_v28 = vmul.f32 %v9270_v45, %v10521_v33  ;;  %v9272_v11 = vpop.eup %9271 }
 0x742   :  { %9279 = vpow2.f32 %v3261_v60  ;;  %8781 = vmatprep.subr.mxu0 %v3621_v25  ;;  %v9274_v59 = vpop.eup %9273  ;;  %v3348_v51 = vmul.f32 %v9272_v11, %v10515_v63 }
 0x743   :  { %v3263_v32 = vmul.f32 1.442695, %v3238_v38  ;;  %8785 = vmatprep.mubr.msk.f32.mxu0 %vm1371_vm2, %v3347_v28  ;;  %8782 = vmatpush3.msra.mxu0 %v3621_v25  ;;  %v3346_v7 = vmul.f32 %v9274_v59, %v10502_v31 }
 0x744   :  { %v3222_v58 = vpop.xlane.xlu1 %3221 }
 0x745   :  { %9281 = vpow2.f32 %v3263_v32  ;;  %v3242_v30 = vsub.f32 %v10547_v16, %v3222_v58  ;;  %v3619_v43 = vpop.permute.xlu0 %3618 }
 0x746   :  { %8783 = vmatprep.subr.mxu0 %v3619_v43 }
 0x747   :  { %v3271_v13 = vmul.f32 1.442695, %v3242_v30  ;;  %8784 = vmatpush3.msra.mxu0 %v3619_v43 }
 0x748   :  { %v3532_v0 = vpop.permute.xlu1 %3531  ;;  %8786 = vmatmul.mubr.msk.f32.vlgmr.msra.gmra.mxu0 %vm1371_vm2, %v3348_v51 }
 0x749   :  { %9283 = vpow2.f32 %v3271_v13  ;;  %8776 = vmatprep.subr.mxu1 %v3532_v0  ;;  %v3708_v33 = vpop.permute.xlu0 %3707 }
 0x74a   :  { %v9276_v21 = vpop.eup %9275  ;;  %8777 = vmatpush3.msra.mxu1 %v3532_v0 }
 0x74b   :  { %8779 = vmatmul.mubr.msk.f32.vlgmr.msra.gmra.mxu1 %vm1371_vm2, %v3346_v7  ;;  %8788 = vmatprep.subr.mxu1 %v3708_v33  ;;  %v3351_v16 = vmul.f32 %v9276_v21, %v10535_v17  ;;  %v9278_v1 = vpop.eup %9277 }
 0x74c   :  { %8789 = vmatpush3.msra.mxu1 %v3708_v33  ;;  %v3352_v50 = vmul.f32 %v9278_v1, %v10529_v46 }
 0x74d   :  { %8799 = vmatprep.mubr.msk.f32.mxu0 %vm1371_vm2, %v3351_v16  ;;  %v3795_v63 = vpop.permute.xlu0 %3794  ;;  %v647_v16 = vld [vmem:[#allocation5 + $0x8] sm:$0xff] }
 0x74e   :  { %8795 = vmatprep.subr.mxu0 %v3795_v63 }
 0x74f   :  { %v10605_v61 = vpop.eup %9279  ;;  %8796 = vmatpush3.msra.mxu0 %v3795_v63 }
 0x750   :  { %v3301_v49 = vsel %vm1371_vm2, %v10605_v61, 0.0 }
 0x751   :  { %3302 = vadd.xlane.f32.xlu1 %v3301_v49  ;;  %v3793_v31 = vpop.permute.xlu0 %3792 }
 0x752   :  { %v10609_v14 = vpop.eup %9281  ;;  %8797 = vmatprep.subr.mxu0 %v3793_v31 }
 0x753   :  { %v3304_v17 = vsel %vm1371_vm2, %v10609_v14, 0.0  ;;  %8798 = vmatpush3.msra.mxu0 %v3793_v31 }
 0x754   :  { %3305 = vadd.xlane.f32.xlu0 %v3304_v17  ;;  %8800 = vmatmul.mubr.msk.f32.vlgmr.msra.gmra.mxu0 %vm1371_vm2, %v3352_v50 }
 0x756   :  { %v10615_v6 = vpop.eup %9283 }
 0x757   :  { %v3316_v45 = vsel %vm1371_vm2, %v10615_v6, 0.0 }
 0x758   :  { %3317 = vadd.xlane.f32.xlu1 %v3316_v45 }
 0x769   :  { %3968 = vrot.lane.b32.xlu1 %v9974_v35, %s9502_s18 }
 0x76a   :  { %3879 = vrot.lane.b32.xlu0 %v9970_v34, %s9502_s18 }
 0x76d   :  { %4268 = vrot.lane.b32.xlu1 %v9916_v19, %s9503_s19 }
 0x771   :  { %4262 = vrot.lane.b32.xlu1 %v9918_v40, %s9504_s20 }
 0x775   :  { %4264 = vrot.lane.b32.xlu1 %v9916_v19, %s9504_s20 }
 0x779   :  { %v3321_v46 = vpop.xlane.xlu1 %3320  ;;  %4353 = vrot.lane.b32.xlu1 %v9928_v4, %s9504_s20 }
 0x77a   :  { %9285 = vrcp.f32 %v3321_v46 }
 0x77d   :  { %v10631_v60 = vpop.xlane.xlu1 %3323  ;;  %4355 = vrot.lane.b32.xlu1 %v9926_v3, %s9504_s20 }
 0x781   :  { %v3706_v2 = vpop.permute.xlu1 %3705  ;;  %4444 = vrot.lane.b32.xlu1 %v9936_v8, %s9504_s20 }
 0x782   :  { %8790 = vmatprep.subr.mxu1 %v3706_v2  ;;  %v3219_v38 = vpop.xlane.xlu0 %3218 }
 0x783   :  { %8791 = vmatpush3.msra.mxu1 %v3706_v2  ;;  %v3241_v25 = vsub.f32 %v10573_v24, %v3219_v38 }
 0x785   :  { %v3269_v28 = vmul.f32 1.442695, %v3241_v25  ;;  %4446 = vrot.lane.b32.xlu1 %v9932_v5, %s9504_s20 }
 0x786   :  { %v3882_v11 = vpop.permute.xlu0 %3881 }
 0x787   :  { %v9286_v32 = vpop.eup %9285  ;;  %9287 = vpow2.f32 %v3269_v28  ;;  %8802 = vmatprep.subr.mxu1 %v3882_v11 }
 0x788   :  { %v3355_v58 = vmul.f32 %v9286_v32, %v10565_v27 }
 0x789   :  { %4632 = vrot.lane.b32.xlu1 %v9948_v20, %s9503_s19 }
 0x78a   :  { %8813 = vmatprep.mubr.msk.f32.mxu0 %vm1371_vm2, %v3355_v58 }
 0x78d   :  { %4537 = vrot.lane.b32.xlu1 %v9940_v12, %s9504_s20 }
 0x791   :  { %4723 = vrot.lane.b32.xlu1 %v9960_v10, %s9503_s19 }
 0x794   :  { %v10648_v24 = vpop.eup %9287 }
 0x795   :  { %4628 = vrot.lane.b32.xlu1 %v9948_v20, %s9504_s20  ;;  %v3313_v30 = vsel %vm1371_vm2, %v10648_v24, 0.0 }
 0x796   :  { %3314 = vadd.xlane.f32.xlu0 %v3313_v30 }
 0x799   :  { %4814 = vrot.lane.b32.xlu1 %v9966_v56, %s9503_s19 }
 0x79d   :  { %4719 = vrot.lane.b32.xlu1 %v9960_v10, %s9504_s20 }
 0x7a1   :  { %4905 = vrot.lane.b32.xlu1 %v9974_v35, %s9503_s19 }
 0x7a5   :  { %4810 = vrot.lane.b32.xlu1 %v9966_v56, %s9504_s20 }
 0x7a9   :  { %4899 = vrot.lane.b32.xlu1 %v9978_v36, %s9504_s20 }
 0x7ac   :  { %3966 = vrot.lane.b32.xlu0 %v9978_v36, %s9502_s18 }
 0x7ad   :  { %5166 = vrot.lane.b32.xlu1 %v9918_v40, %s9505_s21 }
 0x7b0   :  { %4266 = vrot.lane.b32.xlu0 %v9918_v40, %s9503_s19 }
 0x7b1   :  { %5253 = vrot.lane.b32.xlu1 %v9928_v4, %s9505_s21 }
 0x7b4   :  { %4359 = vrot.lane.b32.xlu0 %v9926_v3, %s9503_s19 }
 0x7b5   :  { %5342 = vrot.lane.b32.xlu1 %v9932_v5, %s9505_s21 }
 0x7b8   :  { %4357 = vrot.lane.b32.xlu0 %v9928_v4, %s9503_s19 }
 0x7b9   :  { %5429 = vrot.lane.b32.xlu1 %v9940_v12, %s9505_s21 }
 0x7bc   :  { %4450 = vrot.lane.b32.xlu0 %v9932_v5, %s9503_s19 }
 0x7bd   :  { %5516 = vrot.lane.b32.xlu1 %v9948_v20, %s9505_s21 }
 0x7c0   :  { %4448 = vrot.lane.b32.xlu0 %v9936_v8, %s9503_s19 }
 0x7c4   :  { %4541 = vrot.lane.b32.xlu0 %v9940_v12, %s9503_s19 }
 0x7c8   :  { %4539 = vrot.lane.b32.xlu0 %v9944_v15, %s9503_s19 }
 0x7cc   :  { %4535 = vrot.lane.b32.xlu0 %v9944_v15, %s9504_s20 }
 0x7d0   :  { %4630 = vrot.lane.b32.xlu0 %v9952_v23, %s9503_s19 }
 0x7d4   :  { %4626 = vrot.lane.b32.xlu0 %v9952_v23, %s9504_s20 }
 0x7d8   :  { %4721 = vrot.lane.b32.xlu0 %v9962_v29, %s9503_s19 }
 0x7da   :  { %v3303_v27 = vpop.xlane.xlu1 %3302 }
 0x7db   :  { %9289 = vrcp.f32 %v3303_v27 }
 0x7dc   :  { %4717 = vrot.lane.b32.xlu0 %v9962_v29, %s9504_s20 }
 0x7dd   :  { %v3306_v43 = vpop.xlane.xlu0 %3305 }
 0x7de   :  { %9291 = vrcp.f32 %v3306_v43 }
 0x7df   :  { %9293 = vrcp.f32 %v10631_v60 }
 0x7e0   :  { %4812 = vrot.lane.b32.xlu0 %v9970_v34, %s9503_s19 }
 0x7e1   :  { %v3318_v59 = vpop.xlane.xlu1 %3317  ;;  %v3880_v21 = vpop.permute.xlu0 %3879 }
 0x7e2   :  { %9295 = vrcp.f32 %v3318_v59 }
 0x7e4   :  { %4808 = vrot.lane.b32.xlu0 %v9970_v34, %s9504_s20 }
 0x7e5   :  { %v3969_v51 = vpop.permute.xlu1 %3968 }
 0x7e6   :  { %8809 = vmatprep.subr.mxu0 %v3969_v51 }
 0x7e7   :  { %8810 = vmatpush3.msra.mxu0 %v3969_v51 }
 0x7e8   :  { %v9290_v13 = vpop.eup %9289  ;;  %4903 = vrot.lane.b32.xlu0 %v9978_v36, %s9503_s19 }
 0x7e9   :  { %v3349_v0 = vmul.f32 %v9290_v13, %v10605_v61  ;;  %v4269_v63 = vpop.permute.xlu1 %4268 }
 0x7eb   :  { %v9292_v33 = vpop.eup %9291  ;;  %8792 = vmatprep.mubr.msk.f32.mxu1 %vm1371_vm2, %v3349_v0 }
 0x7ec   :  { %4901 = vrot.lane.b32.xlu0 %v9974_v35, %s9504_s20  ;;  %v3350_v7 = vmul.f32 %v9292_v33, %v10609_v14  ;;  %v8766_v46 = vpop.f32.mrf.mxu0  ;;  %v9294_v2 = vpop.eup %9293 }
 0x7ed   :  { %v4263_v1 = vpop.permute.xlu1 %4262  ;;  %v3356_v28 = vmul.f32 %v9294_v2, %v10569_v57 }
 0x7ee   :  { %8793 = vmatmul.mubr.msk.f32.vlgmr.msra.gmra.mxu1 %vm1371_vm2, %v3350_v7  ;;  %v3435_v25 = vpop.f32.mrf.mxu0 }
 0x7ef   :  { %8803 = vmatpush3.msra.mxu1 %v3882_v11  ;;  %v9296_v43 = vpop.eup %9295 }
 0x7f0   :  { %8804 = vmatprep.subr.mxu1 %v3880_v21  ;;  %5168 = vrot.lane.b32.xlu0 %v9916_v19, %s9505_s21  ;;  %v3354_v7 = vmul.f32 %v9296_v43, %v10615_v6 }
 0x7f1   :  { %8805 = vmatpush3.msra.mxu1 %v3880_v21  ;;  %v4265_v61 = vpop.permute.xlu1 %4264 }
 0x7f2   :  { %9118 = vmatprep.subr.mxu1 %v647_v16 }
 0x7f4   :  { %5255 = vrot.lane.b32.xlu0 %v9926_v3, %s9505_s21  ;;  %v8773_v32 = vpop.f32.mrf.mxu0 }
 0x7f5   :  { %v4354_v49 = vpop.permute.xlu1 %4353 }
 0x7f6   :  { %v3522_v58 = vpop.f32.mrf.mxu0 }
 0x7f8   :  { %5340 = vrot.lane.b32.xlu0 %v9936_v8, %s9505_s21 }
 0x7f9   :  { %v10722_v31 = vpop.permute.xlu1 %4355 }
 0x7fc   :  { %5427 = vrot.lane.b32.xlu0 %v9944_v15, %s9505_s21 }
 0x7fd   :  { %v10724_v14 = vpop.permute.xlu1 %4444 }
 0x800   :  { %5514 = vrot.lane.b32.xlu0 %v9952_v23, %s9505_s21 }
 0x801   :  { %v10727_v50 = vpop.permute.xlu1 %4446 }
 0x805   :  { %v10729_v17 = vpop.permute.xlu1 %4632 }
 0x808   :  { %v8787_v51 = vpop.f32.mrf.mxu0 }
 0x809   :  { %v10732_v11 = vpop.permute.xlu1 %4537 }
 0x80b   :  { %v8780_v30 = vpop.f32.mrf.mxu1 }
 0x80d   :  { %v4724_v27 = vpop.permute.xlu1 %4723  ;;  %v3609_v13 = vpop.f32.mrf.mxu1 }
 0x811   :  { %v10748_v21 = vpop.permute.xlu1 %4628 }
 0x815   :  { %v10756_v6 = vpop.permute.xlu1 %4814 }
 0x81f   :  { %v3315_v45 = vpop.xlane.xlu0 %3314 }
 0x820   :  { %9297 = vrcp.f32 %v3315_v45 }
 0x823   :  { %v3967_v38 = vpop.permute.xlu0 %3966 }
 0x824   :  { %8811 = vmatprep.subr.mxu0 %v3967_v38 }
 0x825   :  { %8812 = vmatpush3.msra.mxu0 %v3967_v38 }
 0x826   :  { %8814 = vmatmul.mubr.msk.f32.vlgmr.msra.gmra.mxu0 %vm1371_vm2, %v3356_v28  ;;  %8816 = vmatprep.subr.mxu0 %v647_v16 }
 0x827   :  { %8817 = vmatpush3.msra.mxu0 %v647_v16  ;;  %8818 = vmatprep.mubr.msk.f32.mxu0 %vm664_vm1, %v3435_v25  ;;  %v4267_v60 = vpop.permute.xlu0 %4266 }
 0x828   :  { %8842 = vmatprep.subr.msk.mxu0 %vm664_vm1, %v4269_v63 }
 0x82a   :  { %8819 = vmatmul.mubr.msk.f32.vlgmr.msra.gmra.mxu0 %vm664_vm1, %v8766_v46  ;;  %v4720_v46 = vpop.permute.xlu1 %4719 }
 0x82b   :  { %8843 = vmatpush3.xpose.msk.msra.mxu0 %vm664_vm1, %v4269_v63  ;;  %8821 = vmatprep.mubr.msk.f32.mxu0 %vm664_vm1, %v3522_v58  ;;  %v4360_v57 = vpop.permute.xlu0 %4359  ;;  %v3696_v63 = vpop.f32.mrf.mxu0 }
 0x82c   :  { %8844 = vmatprep.subr.msk.mxu0 %vm664_vm1, %v4267_v60 }
 0x82d   :  { %v9298_v59 = vpop.eup %9297 }
 0x82e   :  { %8822 = vmatmul.mubr.msk.f32.gmra.mxu0 %vm664_vm1, %v8773_v32  ;;  %v3353_v0 = vmul.f32 %v9298_v59, %v10648_v24 }
 0x82f   :  { %8845 = vmatpush3.xpose.msk.msra.mxu0 %vm664_vm1, %v4267_v60  ;;  %8824 = vmatprep.mubr.msk.f32.mxu0 %vm664_vm1, %v3609_v13  ;;  %v4358_v33 = vpop.permute.xlu0 %4357 }
 0x830   :  { %8849 = vmatprep.subr.msk.mxu0 %vm664_vm1, %v4360_v57  ;;  %8806 = vmatprep.mubr.msk.f32.mxu1 %vm1371_vm2, %v3353_v0  ;;  %v8801_v0 = vpop.f32.mrf.mxu0 }
 0x831   :  { %8807 = vmatmul.mubr.msk.f32.vlgmr.msra.gmra.mxu1 %vm1371_vm2, %v3354_v7 }
 0x832   :  { %9119 = vmatpush3.msra.mxu1 %v647_v16  ;;  %8825 = vmatmul.mubr.msk.f32.gmra.mxu0 %vm664_vm1, %v8780_v30 }
 0x833   :  { %8870 = vmatprep.subr.msk.mxu1 %vm664_vm1, %v10729_v17  ;;  %8827 = vmatprep.mubr.msk.f32.mxu0 %vm664_vm1, %v3696_v63  ;;  %v4451_v24 = vpop.permute.xlu0 %4450  ;;  %v3870_v63 = vpop.f32.mrf.mxu0 }
 0x836   :  { %8828 = vmatmul.mubr.msk.f32.gmra.mxu0 %vm664_vm1, %v8787_v51 }
 0x837   :  { %8846 = vmatprep.mubr.msk.f32.mxu0 %vm664_vm1, %v4263_v1  ;;  %v4449_v45 = vpop.permute.xlu0 %4448  ;;  %v4906_v1 = vpop.permute.xlu1 %4905 }
 0x83a   :  { %8847 = vmatmul.mubr.msk.f32.vlgmr.msra.gmra.mxu0 %vm664_vm1, %v4265_v61 }
 0x83b   :  { %8850 = vmatpush3.xpose.msk.msra.mxu0 %vm664_vm1, %v4360_v57  ;;  %8853 = vmatprep.mubr.msk.f32.mxu0 %vm664_vm1, %v4354_v49  ;;  %v4542_v16 = vpop.permute.xlu0 %4541  ;;  %v10773_v38 = vpop.permute.xlu1 %4810 }
 0x83c   :  { %8851 = vmatprep.subr.msk.mxu0 %vm664_vm1, %v4358_v33 }
 0x83f   :  { %8852 = vmatpush3.xpose.msk.msra.mxu0 %vm664_vm1, %v4358_v33  ;;  %v4540_v2 = vpop.permute.xlu0 %4539 }
 0x840   :  { %8856 = vmatprep.subr.msk.mxu0 %vm664_vm1, %v4451_v24 }
 0x842   :  { %8854 = vmatmul.mubr.msk.f32.vlgmr.msra.gmra.mxu0 %vm664_vm1, %v10722_v31 }
 0x843   :  { %8857 = vmatpush3.xpose.msk.msra.mxu0 %vm664_vm1, %v4451_v24  ;;  %8860 = vmatprep.mubr.msk.f32.mxu0 %vm664_vm1, %v10724_v14  ;;  %v4536_v61 = vpop.permute.xlu0 %4535  ;;  %v4900_v14 = vpop.permute.xlu1 %4899  ;;  %v10827_v24 = vld [vmem:[%s11548_s7] ss:$0 sm:$0xff]  ;;  %s9506_s7 = smov 72  }
 0x844   :  { %8858 = vmatprep.subr.msk.mxu0 %vm664_vm1, %v4449_v45 }
 0x847   :  { %8859 = vmatpush3.xpose.msk.msra.mxu0 %vm664_vm1, %v4449_v45  ;;  %v4631_v49 = vpop.permute.xlu0 %4630  ;;  %v10789_v28 = vpop.permute.xlu1 %5166 }
 0x848   :  { %8863 = vmatprep.subr.msk.mxu0 %vm664_vm1, %v4542_v16 }
 0x84a   :  { %8861 = vmatmul.mubr.msk.f32.vlgmr.msra.gmra.mxu0 %vm664_vm1, %v10727_v50 }
 0x84b   :  { %8864 = vmatpush3.xpose.msk.msra.mxu0 %vm664_vm1, %v4542_v16  ;;  %8867 = vmatprep.mubr.msk.f32.mxu0 %vm664_vm1, %v4536_v61  ;;  %v10779_v31 = vpop.permute.xlu0 %4626  ;;  %v10796_v60 = vpop.permute.xlu1 %5253 }
 0x84c   :  { %8865 = vmatprep.subr.msk.mxu0 %vm664_vm1, %v4540_v2 }
 0x84f   :  { %8866 = vmatpush3.xpose.msk.msra.mxu0 %vm664_vm1, %v4540_v2  ;;  %v4722_v25 = vpop.permute.xlu0 %4721  ;;  %v5343_v30 = vpop.permute.xlu1 %5342  ;;  %v2437_v2 = vadd.f32 %v10827_v24, %v10466_v22 }
 0x850   :  { %8877 = vmatprep.subr.msk.mxu0 %vm664_vm1, %v4724_v27 }
 0x852   :  { %8868 = vmatmul.mubr.msk.f32.vlgmr.msra.gmra.mxu0 %vm664_vm1, %v10732_v11 }
 0x853   :  { %8878 = vmatpush3.xpose.msk.msra.mxu0 %vm664_vm1, %v4724_v27  ;;  %v4718_v50 = vpop.permute.xlu0 %4717  ;;  %v10807_v43 = vpop.permute.xlu1 %5429 }
 0x854   :  { %8879 = vmatprep.subr.msk.mxu0 %vm664_vm1, %v4722_v25  ;;  %8881 = vmatprep.mubr.msk.f32.mxu0 %vm664_vm1, %v4718_v50  ;;  %v2439_v50 = vadd.f32 %v10827_v24, %v10470_v62  ;;  %v2444_v62 = vadd.f32 %v10482_v18, %v10827_v24 }
 0x857   :  { %8880 = vmatpush3.xpose.msk.msra.mxu0 %vm664_vm1, %v4722_v25  ;;  %v10792_v32 = vpop.permute.xlu0 %4812  ;;  %v10811_v13 = vpop.permute.xlu1 %5516 }
 0x858   :  { %8891 = vmatprep.subr.msk.mxu0 %vm664_vm1, %v4906_v1 }
 0x85a   :  { %8882 = vmatmul.mubr.msk.f32.vlgmr.msra.gmra.mxu0 %vm664_vm1, %v4720_v46 }
 0x85b   :  { %8892 = vmatpush3.xpose.msk.msra.mxu0 %vm664_vm1, %v4906_v1  ;;  %8895 = vmatprep.mubr.msk.f32.mxu0 %vm664_vm1, %v4900_v14  ;;  %v10800_v11 = vpop.permute.xlu0 %4808 }
 0x85f   :  { %v4904_v58 = vpop.permute.xlu0 %4903 }
 0x860   :  { %8893 = vmatprep.subr.msk.mxu0 %vm664_vm1, %v4904_v58 }
 0x861   :  { %8894 = vmatpush3.xpose.msk.msra.mxu0 %vm664_vm1, %v4904_v58 }
 0x862   :  { %8912 = vmatprep.subr.mxu0 %v5343_v30 }
 0x863   :  { %v4902_v27 = vpop.permute.xlu0 %4901 }
 0x864   :  { %8896 = vmatmul.mubr.msk.f32.vlgmr.msra.gmra.mxu0 %vm664_vm1, %v4902_v27 }
 0x865   :  { %8913 = vmatpush3.msra.mxu0 %v5343_v30 }
 0x867   :  { %v10805_v57 = vpop.permute.xlu0 %5168 }
 0x86b   :  { %v10809_v59 = vpop.permute.xlu0 %5255 }
 0x86f   :  { %v5341_v51 = vpop.permute.xlu0 %5340 }
 0x870   :  { %8914 = vmatprep.subr.mxu0 %v5341_v51 }
 0x871   :  { %8915 = vmatpush3.msra.mxu0 %v5341_v51 }
 0x872   :  { %8926 = vmatprep.subr.mxu0 %v10811_v13 }
 0x8ae   :  { %v8794_v33 = vpop.f32.mrf.mxu1 }
 0x8b0   :  { %v3783_v7 = vpop.f32.mrf.mxu1 }
 0x8b1   :  { %8830 = vmatprep.mubr.msk.f32.mxu1 %vm664_vm1, %v3783_v7 }
 0x8b2   :  { %8831 = vmatmul.mubr.msk.f32.vlgmr.msra.gmra.mxu1 %vm664_vm1, %v8794_v33 }
 0x8b3   :  { %8871 = vmatpush3.xpose.msk.msra.mxu1 %vm664_vm1, %v10729_v17  ;;  %8833 = vmatprep.mubr.msk.f32.mxu1 %vm664_vm1, %v3870_v63  ;;  %v2438_v17 = vadd.f32 %v10464_v47, %v10827_v24  ;;  %v2442_v47 = vadd.f32 %v10472_v37, %v10827_v24 }
 0x8b4   :  { %8872 = vmatprep.subr.msk.mxu1 %vm664_vm1, %v4631_v49 }
 0x8b6   :  { %8834 = vmatmul.mubr.msk.f32.gmra.mxu1 %vm664_vm1, %v8801_v0  ;;  %v2441_v0 = vadd.f32 %v10827_v24, %v10476_v44 }
 0x8b7   :  { %8873 = vmatpush3.xpose.msk.msra.mxu1 %vm664_vm1, %v4631_v49  ;;  %v2440_v49 = vadd.f32 %v10468_v54, %v10827_v24 }
 0x8b8   :  { %8884 = vmatprep.subr.msk.mxu1 %vm664_vm1, %v10756_v6 }
 0x8e6   :  { %v8815_v45 = vpop.f32.mrf.mxu0 }
 0x8e8   :  { %v4044_v16 = vpop.f32.mrf.mxu0 }
 0x8ea   :  { %v8820_v46 = vpop.f32.mrf.mxu0 }
 0x8eb   :  { %v10833_v1 = vadd.f32 %v8820_v46, %v2438_v17  ;;  %v2443_v17 = vadd.f32 %v10827_v24, %v10486_v48 }
 0x8ec   :  { %v4167_v61 = vpop.f32.mrf.mxu0 }
 0x8ed   :  { %v10837_v14 = vadd.f32 %v4167_v61, %v2437_v2 }
 0x8ee   :  { %v8823_v25 = vpop.f32.mrf.mxu0 }
 0x8ef   :  { %v10841_v58 = vadd.f32 %v8823_v25, %v2440_v49 }
 0x8f0   :  { %v4177_v30 = vpop.f32.mrf.mxu0 }
 0x8f1   :  { %v10845_v27 = vadd.f32 %v4177_v30, %v2439_v50  ;;  %v8808_v22 = vpop.f32.mrf.mxu1 }
 0x8f2   :  { %v8826_v51 = vpop.f32.mrf.mxu0 }
 0x8f3   :  { %v10849_v54 = vadd.f32 %v8826_v51, %v2442_v47  ;;  %v3957_v33 = vpop.f32.mrf.mxu1 }
 0x8f4   :  { %v4187_v7 = vpop.f32.mrf.mxu0  ;;  %8836 = vmatprep.mubr.msk.f32.mxu1 %vm664_vm1, %v3957_v33 }
 0x8f5   :  { %v10854_v63 = vadd.f32 %v4187_v7, %v2441_v0  ;;  %8837 = vmatmul.mubr.msk.f32.gmra.mxu1 %vm664_vm1, %v8808_v22 }
 0x8f6   :  { %v8829_v37 = vpop.f32.mrf.mxu0  ;;  %8839 = vmatprep.mubr.msk.f32.mxu1 %vm664_vm1, %v4044_v16 }
 0x8f7   :  { %v10860_v44 = vadd.f32 %v8829_v37, %v2444_v62  ;;  %v2446_v37 = vadd.f32 %v10495_v39, %v10827_v24 }
 0x8f8   :  { %v4197_v46 = vpop.f32.mrf.mxu0 }
 0x8f9   :  { %v10862_v2 = vadd.f32 %v4197_v46, %v2443_v17  ;;  %8840 = vmatmul.mubr.msk.f32.gmra.mxu1 %vm664_vm1, %v8815_v45  ;;  %v2445_v46 = vadd.f32 %v10827_v24, %v10499_v41 }
 0x8fa   :  { %v10865_v61 = vpop.f32.mrf.mxu0  ;;  %8874 = vmatprep.mubr.msk.f32.mxu1 %vm664_vm1, %v10779_v31 }
 0x8fb   :  { %11550 = vst [vmem:[#allocation11_spill] sm:$0xff] %v10862_v2  ;;  %v4993_v18 = vsel %vm1371_vm2, %v10865_v61, -inf }
 0x8fc   :  { %4994 = vmax.xlane.f32.xlu0 %v4993_v18  ;;  %v10871_v16 = vpop.f32.mrf.mxu0 }
 0x8fd   :  { %8875 = vmatmul.mubr.msk.f32.vlgmr.msra.gmra.mxu1 %vm664_vm1, %v10748_v21  ;;  %v4990_v48 = vsel %vm1371_vm2, %v10871_v16, -inf }
 0x8fe   :  { %8885 = vmatpush3.xpose.msk.msra.mxu1 %vm664_vm1, %v10756_v6  ;;  %4991 = vmax.xlane.f32.xlu1 %v4990_v48 }
 0x8ff   :  { %8886 = vmatprep.subr.msk.mxu1 %vm664_vm1, %v10792_v32  ;;  %8888 = vmatprep.mubr.msk.f32.mxu1 %vm664_vm1, %v10800_v11 }
 0x902   :  { %v8855_v31 = vpop.f32.mrf.mxu0  ;;  %8887 = vmatpush3.xpose.msk.msra.mxu1 %vm664_vm1, %v10792_v32 }
 0x903   :  { %8898 = vmatprep.subr.mxu1 %v10805_v57  ;;  %v4999_v21 = vsel %vm1371_vm2, %v8855_v31, -inf }
 0x904   :  { %5000 = vmax.xlane.f32.xlu1 %v4999_v21  ;;  %v4435_v45 = vpop.f32.mrf.mxu0  ;;  %v2448_v21 = vadd.f32 %v10504_v26, %v10827_v24 }
 0x905   :  { %8889 = vmatmul.mubr.msk.f32.vlgmr.msra.gmra.mxu1 %vm664_vm1, %v10773_v38  ;;  %v4996_v6 = vsel %vm1371_vm2, %v4435_v45, -inf }
 0x906   :  { %4997 = vmax.xlane.f32.xlu0 %v4996_v6  ;;  %8899 = vmatpush3.msra.mxu1 %v10805_v57 }
 0x907   :  { %8900 = vmatprep.subr.mxu1 %v10789_v28 }
 0x908   :  { %8901 = vmatpush3.msra.mxu1 %v10789_v28 }
 0x909   :  { %8905 = vmatprep.subr.mxu1 %v10809_v59 }
 0x90a   :  { %v8862_v32 = vpop.f32.mrf.mxu0 }
 0x90b   :  { %v5005_v11 = vsel %vm1371_vm2, %v8862_v32, -inf }
 0x90c   :  { %5006 = vmax.xlane.f32.xlu1 %v5005_v11  ;;  %v4526_v49 = vpop.f32.mrf.mxu0 }
 0x90d   :  { %v5002_v25 = vsel %vm1371_vm2, %v4526_v49, -inf }
 0x90e   :  { %5003 = vmax.xlane.f32.xlu0 %v5002_v25  ;;  %v2447_v25 = vadd.f32 %v10827_v24, %v10513_v53 }
 0x912   :  { %v10896_v38 = vpop.f32.mrf.mxu0 }
 0x913   :  { %v5011_v50 = vsel %vm1371_vm2, %v10896_v38, -inf }
 0x914   :  { %5012 = vmax.xlane.f32.xlu1 %v5011_v50  ;;  %v10900_v57 = vpop.f32.mrf.mxu0 }
 0x915   :  { %v5008_v28 = vsel %vm1371_vm2, %v10900_v57, -inf }
 0x916   :  { %5009 = vmax.xlane.f32.xlu0 %v5008_v28 }
 0x91a   :  { %v10904_v30 = vpop.f32.mrf.mxu0 }
 0x91b   :  { %v5023_v47 = vsel %vm1371_vm2, %v10904_v30, -inf }
 0x91c   :  { %5024 = vmax.xlane.f32.xlu1 %v5023_v47  ;;  %v10908_v22 = vpop.f32.mrf.mxu0  ;;  %v10936_v47 = vpop.permute.xlu0 %5427 }
 0x91d   :  { %v5020_v51 = vsel %vm1371_vm2, %v10908_v22, -inf }
 0x91e   :  { %5021 = vmax.xlane.f32.xlu0 %v5020_v51 }
 0x920   :  { %v10938_v41 = vpop.permute.xlu0 %5514 }
 0x924   :  { %v10912_v0 = vpop.f32.mrf.mxu0 }
 0x925   :  { %v5035_v33 = vsel %vm1371_vm2, %v10912_v0, -inf }
 0x926   :  { %5036 = vmax.xlane.f32.xlu1 %v5035_v33  ;;  %v10916_v7 = vpop.f32.mrf.mxu0 }
 0x927   :  { %v5032_v62 = vsel %vm1371_vm2, %v10916_v7, -inf }
 0x928   :  { %5033 = vmax.xlane.f32.xlu0 %v5032_v62 }
 0x972   :  { %v8832_v17 = vpop.f32.mrf.mxu1 }
 0x973   :  { %v10924_v18 = vadd.f32 %v8832_v17, %v2446_v37 }
 0x974   :  { %v4207_v48 = vpop.f32.mrf.mxu1 }
 0x975   :  { %v10928_v6 = vadd.f32 %v4207_v48, %v2445_v46 }
 0x976   :  { %v8835_v11 = vpop.f32.mrf.mxu1 }
 0x977   :  { %v10932_v50 = vadd.f32 %v8835_v11, %v2448_v21 }
 0x978   :  { %v4217_v28 = vpop.f32.mrf.mxu1 }
 0x979   :  { %v10934_v39 = vadd.f32 %v4217_v28, %v2447_v25 }
 0x97b   :  { %11551 = vst [vmem:[#allocation12_spill] sm:$0xff] %v10934_v39 }
 0x985   :  { %v4995_v51 = vpop.xlane.xlu0 %4994 }
 0x986   :  { %v5039_v33 = vsub.f32 %v10865_v61, %v4995_v51 }
 0x987   :  { %v4992_v62 = vpop.xlane.xlu1 %4991 }
 0x988   :  { %v5056_v26 = vmul.f32 1.442695, %v5039_v33  ;;  %v5038_v37 = vsub.f32 %v10871_v16, %v4992_v62 }
 0x98a   :  { %9299 = vpow2.f32 %v5056_v26  ;;  %v5054_v17 = vmul.f32 1.442695, %v5038_v37 }
 0x98c   :  { %9301 = vpow2.f32 %v5054_v17 }
 0x98d   :  { %v5001_v53 = vpop.xlane.xlu1 %5000 }
 0x98e   :  { %v5041_v46 = vsub.f32 %v8855_v31, %v5001_v53 }
 0x98f   :  { %v4998_v48 = vpop.xlane.xlu0 %4997 }
 0x990   :  { %v5060_v21 = vmul.f32 1.442695, %v5041_v46  ;;  %v5040_v11 = vsub.f32 %v4435_v45, %v4998_v48 }
 0x992   :  { %9303 = vpow2.f32 %v5060_v21  ;;  %v5058_v25 = vmul.f32 1.442695, %v5040_v11 }
 0x994   :  { %9305 = vpow2.f32 %v5058_v25 }
 0x995   :  { %v5007_v28 = vpop.xlane.xlu1 %5006 }
 0x996   :  { %v5043_v2 = vsub.f32 %v8862_v32, %v5007_v28 }
 0x997   :  { %v10942_v39 = vpop.eup %9299  ;;  %v5004_v61 = vpop.xlane.xlu0 %5003 }
 0x998   :  { %v5064_v51 = vmul.f32 1.442695, %v5043_v2  ;;  %v5042_v33 = vsub.f32 %v4526_v49, %v5004_v61  ;;  %v5089_v16 = vsel %vm1371_vm2, %v10942_v39, 0.0 }
 0x999   :  { %v10946_v62 = vpop.eup %9301  ;;  %5090 = vadd.xlane.f32.xlu1 %v5089_v16  ;;  %v2450_v16 = vadd.f32 %v10517_v55, %v10827_v24 }
 0x99a   :  { %9307 = vpow2.f32 %v5064_v51  ;;  %v5062_v31 = vmul.f32 1.442695, %v5042_v33  ;;  %v5086_v45 = vsel %vm1371_vm2, %v10946_v62, 0.0 }
 0x99b   :  { %5087 = vadd.xlane.f32.xlu0 %v5086_v45  ;;  %v2449_v45 = vadd.f32 %v10827_v24, %v10525_v42 }
 0x99c   :  { %9309 = vpow2.f32 %v5062_v31 }
 0x99d   :  { %v5013_v26 = vpop.xlane.xlu1 %5012 }
 0x99e   :  { %v5045_v32 = vsub.f32 %v10896_v38, %v5013_v26 }
 0x99f   :  { %v10951_v37 = vpop.eup %9303  ;;  %v5010_v2 = vpop.xlane.xlu0 %5009 }
 0x9a0   :  { %v5068_v49 = vmul.f32 1.442695, %v5045_v32  ;;  %v5044_v17 = vsub.f32 %v10900_v57, %v5010_v2  ;;  %v5095_v53 = vsel %vm1371_vm2, %v10951_v37, 0.0  ;;  %v2452_v2 = vadd.f32 %v10527_v52, %v10827_v24 }
 0x9a1   :  { %v10956_v46 = vpop.eup %9305  ;;  %5096 = vadd.xlane.f32.xlu1 %v5095_v53  ;;  %v2451_v53 = vadd.f32 %v10827_v24, %v10531_v9 }
 0x9a2   :  { %9311 = vpow2.f32 %v5068_v49  ;;  %v5066_v48 = vmul.f32 1.442695, %v5044_v17  ;;  %v5092_v21 = vsel %vm1371_vm2, %v10956_v46, 0.0 }
 0x9a3   :  { %5093 = vadd.xlane.f32.xlu0 %v5092_v21 }
 0x9a4   :  { %9313 = vpow2.f32 %v5066_v48 }
 0x9a7   :  { %v10960_v38 = vpop.eup %9307 }
 0x9a8   :  { %v5101_v11 = vsel %vm1371_vm2, %v10960_v38, 0.0 }
 0x9a9   :  { %v10964_v25 = vpop.eup %9309  ;;  %5102 = vadd.xlane.f32.xlu1 %v5101_v11 }
 0x9aa   :  { %v5098_v57 = vsel %vm1371_vm2, %v10964_v25, 0.0 }
 0x9ab   :  { %5099 = vadd.xlane.f32.xlu0 %v5098_v57 }
 0x9af   :  { %v10968_v28 = vpop.eup %9311 }
 0x9b0   :  { %v5107_v61 = vsel %vm1371_vm2, %v10968_v28, 0.0 }
 0x9b1   :  { %v10972_v51 = vpop.eup %9313  ;;  %5108 = vadd.xlane.f32.xlu1 %v5107_v61 }
 0x9b2   :  { %v5104_v33 = vsel %vm1371_vm2, %v10972_v51, 0.0 }
 0x9b3   :  { %5105 = vadd.xlane.f32.xlu0 %v5104_v33 }
 0x9b5   :  { %v8838_v31 = vpop.f32.mrf.mxu1 }
 0x9b6   :  { %v10980_v26 = vadd.f32 %v8838_v31, %v2450_v16  ;;  %v5025_v16 = vpop.xlane.xlu1 %5024  ;;  %v5022_v31 = vpop.xlane.xlu0 %5021 }
 0x9b7   :  { %v4227_v32 = vpop.f32.mrf.mxu1 }
 0x9b8   :  { %v10984_v49 = vadd.f32 %v4227_v32, %v2449_v45  ;;  %v5049_v45 = vsub.f32 %v10904_v30, %v5025_v16  ;;  %v5048_v32 = vsub.f32 %v10908_v22, %v5022_v31 }
 0x9b9   :  { %v8841_v17 = vpop.f32.mrf.mxu1 }
 0x9ba   :  { %v10988_v48 = vadd.f32 %v8841_v17, %v2452_v2  ;;  %v5037_v2 = vpop.xlane.xlu1 %5036  ;;  %v5076_v17 = vmul.f32 1.442695, %v5049_v45  ;;  %v5034_v16 = vpop.xlane.xlu0 %5033 }
 0x9bb   :  { %v4237_v21 = vpop.f32.mrf.mxu1  ;;  %v5052_v31 = vsub.f32 %v10916_v7, %v5034_v16 }
 0x9bc   :  { %v10990_v55 = vadd.f32 %v4237_v21, %v2451_v53  ;;  %v5074_v53 = vmul.f32 1.442695, %v5048_v32  ;;  %v5053_v21 = vsub.f32 %v10912_v0, %v5037_v2  ;;  %9315 = vpow2.f32 %v5076_v17 }
 0x9bd   :  { %v10992_v11 = vpop.f32.mrf.mxu1  ;;  %v5082_v45 = vmul.f32 1.442695, %v5052_v31 }
 0x9be   :  { %v5017_v42 = vsel %vm1371_vm2, %v10992_v11, -inf  ;;  %9317 = vpow2.f32 %v5074_v53 }
 0x9bf   :  { %v10996_v57 = vpop.f32.mrf.mxu1  ;;  %5018 = vmax.xlane.f32.xlu1 %v5017_v42  ;;  %v5084_v42 = vmul.f32 1.442695, %v5053_v21 }
 0x9c0   :  { %v5014_v52 = vsel %vm1371_vm2, %v10996_v57, -inf }
 0x9c1   :  { %5015 = vmax.xlane.f32.xlu0 %v5014_v52  ;;  %9319 = vpow2.f32 %v5084_v42 }
 0x9c2   :  { %9321 = vpow2.f32 %v5082_v45 }
 0x9c5   :  { %v11000_v61 = vpop.f32.mrf.mxu1 }
 0x9c6   :  { %v5029_v9 = vsel %vm1371_vm2, %v11000_v61, -inf }
 0x9c7   :  { %v11004_v24 = vpop.f32.mrf.mxu1  ;;  %5030 = vmax.xlane.f32.xlu1 %v5029_v9 }
 0x9c8   :  { %v5026_v33 = vsel %vm1371_vm2, %v11004_v24, -inf }
 0x9c9   :  { %5027 = vmax.xlane.f32.xlu0 %v5026_v33  ;;  %v11015_v52 = vpop.eup %9315 }
 0x9ca   :  { %v5119_v33 = vsel %vm1371_vm2, %v11015_v52, 0.0 }
 0x9cb   :  { %v11017_v9 = vpop.eup %9317 }
 0x9cc   :  { %v5116_v30 = vsel %vm1371_vm2, %v11017_v9, 0.0 }
 0x9ce   :  { %v11023_v22 = vpop.eup %9319 }
 0x9cf   :  { %v5131_v0 = vsel %vm1371_vm2, %v11023_v22, 0.0  ;;  %v11030_v21 = vpop.eup %9321 }
 0x9d0   :  { %v5128_v42 = vsel %vm1371_vm2, %v11030_v21, 0.0 }
 0x9d8   :  { %5603 = vrot.lane.b32.xlu1 %v9960_v10, %s9505_s21 }
 0x9df   :  { %5601 = vrot.lane.b32.xlu0 %v9962_v29, %s9505_s21 }
 0x9fc   :  { %5120 = vadd.xlane.f32.xlu1 %v5119_v33 }
 0x9fe   :  { %5117 = vadd.xlane.f32.xlu0 %v5116_v30 }
 0xa02   :  { %5132 = vadd.xlane.f32.xlu0 %v5131_v0 }
 0xa0d   :  { %5690 = vrot.lane.b32.xlu1 %v9966_v56, %s9505_s21 }
 0xa22   :  { %v5091_v32 = vpop.xlane.xlu1 %5090 }
 0xa23   :  { %9323 = vrcp.f32 %v5091_v32 }
 0xa24   :  { %v5088_v2 = vpop.xlane.xlu0 %5087 }
 0xa25   :  { %9325 = vrcp.f32 %v5088_v2 }
 0xa2a   :  { %v5097_v17 = vpop.xlane.xlu1 %5096 }
 0xa2b   :  { %9327 = vrcp.f32 %v5097_v17 }
 0xa2c   :  { %v5094_v53 = vpop.xlane.xlu0 %5093 }
 0xa2d   :  { %9329 = vrcp.f32 %v5094_v53 }
 0xa30   :  { %v9324_v33 = vpop.eup %9323 }
 0xa31   :  { %5129 = vadd.xlane.f32.xlu1 %v5128_v42  ;;  %v5151_v31 = vmul.f32 %v9324_v33, %v10942_v39 }
 0xa32   :  { %v9326_v30 = vpop.eup %9325  ;;  %v5103_v0 = vpop.xlane.xlu1 %5102 }
 0xa33   :  { %v5150_v7 = vmul.f32 %v9326_v30, %v10946_v62  ;;  %9331 = vrcp.f32 %v5103_v0 }
 0xa34   :  { %v5100_v16 = vpop.xlane.xlu0 %5099 }
 0xa35   :  { %9333 = vrcp.f32 %v5100_v16  ;;  %8902 = vmatprep.mubr.msk.f32.mxu1 %vm1371_vm2, %v5150_v7 }
 0xa36   :  { %8903 = vmatmul.mubr.msk.f32.vlgmr.msra.gmra.mxu1 %vm1371_vm2, %v5151_v31 }
 0xa37   :  { %8906 = vmatpush3.msra.mxu1 %v10809_v59 }
 0xa38   :  { %8907 = vmatprep.subr.mxu1 %v10796_v60  ;;  %v9328_v45 = vpop.eup %9327 }
 0xa39   :  { %8908 = vmatpush3.msra.mxu1 %v10796_v60  ;;  %v5153_v17 = vmul.f32 %v9328_v45, %v10951_v37 }
 0xa3a   :  { %v9330_v32 = vpop.eup %9329  ;;  %v5109_v2 = vpop.xlane.xlu1 %5108  ;;  %8919 = vmatprep.subr.mxu1 %v10807_v43 }
 0xa3b   :  { %v5152_v62 = vmul.f32 %v9330_v32, %v10956_v46  ;;  %9335 = vrcp.f32 %v5109_v2 }
 0xa3c   :  { %v5106_v39 = vpop.xlane.xlu0 %5105 }
 0xa3d   :  { %9337 = vrcp.f32 %v5106_v39  ;;  %8909 = vmatprep.mubr.msk.f32.mxu1 %vm1371_vm2, %v5152_v62 }
 0xa3e   :  { %8910 = vmatmul.mubr.msk.f32.vlgmr.msra.gmra.mxu1 %vm1371_vm2, %v5153_v17 }
 0xa3f   :  { %8920 = vmatpush3.msra.mxu1 %v10807_v43 }
 0xa40   :  { %8921 = vmatprep.subr.mxu1 %v10936_v47  ;;  %v9332_v60 = vpop.eup %9331 }
 0xa41   :  { %8922 = vmatpush3.msra.mxu1 %v10936_v47  ;;  %v5155_v46 = vmul.f32 %v9332_v60, %v10960_v38 }
 0xa42   :  { %v9334_v59 = vpop.eup %9333 }
 0xa43   :  { %v5154_v53 = vmul.f32 %v9334_v59, %v10964_v25 }
 0xa45   :  { %8916 = vmatprep.mubr.msk.f32.mxu0 %vm1371_vm2, %v5154_v53 }
 0xa46   :  { %8917 = vmatmul.mubr.msk.f32.vlgmr.msra.gmra.mxu0 %vm1371_vm2, %v5155_v46 }
 0xa47   :  { %8927 = vmatpush3.msra.mxu0 %v10811_v13 }
 0xa48   :  { %8928 = vmatprep.subr.mxu0 %v10938_v41  ;;  %v5019_v37 = vpop.xlane.xlu1 %5018  ;;  %v9336_v43 = vpop.eup %9335 }
 0xa49   :  { %8929 = vmatpush3.msra.mxu0 %v10938_v41  ;;  %v5047_v42 = vsub.f32 %v10992_v11, %v5019_v37  ;;  %v5157_v0 = vmul.f32 %v9336_v43, %v10968_v28 }
 0xa4a   :  { %v9338_v47 = vpop.eup %9337  ;;  %v5016_v33 = vpop.xlane.xlu0 %5015 }
 0xa4b   :  { %v5072_v30 = vmul.f32 1.442695, %v5047_v42  ;;  %v5046_v25 = vsub.f32 %v10996_v57, %v5016_v33  ;;  %v5156_v38 = vmul.f32 %v9338_v47, %v10972_v51 }
 0xa4d   :  { %9339 = vpow2.f32 %v5072_v30  ;;  %v5070_v7 = vmul.f32 1.442695, %v5046_v25  ;;  %8923 = vmatprep.mubr.msk.f32.mxu1 %vm1371_vm2, %v5156_v38 }
 0xa4e   :  { %8924 = vmatmul.mubr.msk.f32.vlgmr.msra.gmra.mxu1 %vm1371_vm2, %v5157_v0 }
 0xa4f   :  { %9341 = vpow2.f32 %v5070_v7 }
 0xa50   :  { %v5031_v13 = vpop.xlane.xlu1 %5030 }
 0xa51   :  { %v5051_v41 = vsub.f32 %v11000_v61, %v5031_v13 }
 0xa52   :  { %v5028_v11 = vpop.xlane.xlu0 %5027 }
 0xa53   :  { %v5080_v16 = vmul.f32 1.442695, %v5051_v41  ;;  %v5050_v62 = vsub.f32 %v11004_v24, %v5028_v11 }
 0xa54   :  { %v5604_v31 = vpop.permute.xlu1 %5603 }
 0xa55   :  { %9343 = vpow2.f32 %v5080_v16  ;;  %8933 = vmatprep.subr.mxu1 %v5604_v31  ;;  %v5078_v39 = vmul.f32 1.442695, %v5050_v62 }
 0xa56   :  { %8934 = vmatpush3.msra.mxu1 %v5604_v31  ;;  %v5602_v57 = vpop.permute.xlu0 %5601  ;;  %v648_v31 = vld [vmem:[#allocation5 + $0x10] sm:$0xff] }
 0xa57   :  { %8935 = vmatprep.subr.mxu1 %v5602_v57  ;;  %9345 = vpow2.f32 %v5078_v39 }
 0xa58   :  { %8936 = vmatpush3.msra.mxu1 %v5602_v57 }
 0xa5a   :  { %v11063_v28 = vpop.eup %9339 }
 0xa5b   :  { %v5113_v51 = vsel %vm1371_vm2, %v11063_v28, 0.0 }
 0xa5c   :  { %v11067_v45 = vpop.eup %9341  ;;  %5114 = vadd.xlane.f32.xlu1 %v5113_v51 }
 0xa5d   :  { %v5110_v61 = vsel %vm1371_vm2, %v11067_v45, 0.0 }
 0xa5e   :  { %5111 = vadd.xlane.f32.xlu0 %v5110_v61 }
 0xa62   :  { %v11071_v32 = vpop.eup %9343 }
 0xa63   :  { %v5125_v2 = vsel %vm1371_vm2, %v11071_v32, 0.0 }
 0xa64   :  { %5126 = vadd.xlane.f32.xlu1 %v5125_v2  ;;  %v11095_v24 = vpop.eup %9345 }
 0xa65   :  { %v5122_v53 = vsel %vm1371_vm2, %v11095_v24, 0.0 }
 0xa74   :  { %5688 = vrot.lane.b32.xlu0 %v9970_v34, %s9505_s21 }
 0xa75   :  { %5777 = vrot.lane.b32.xlu1 %v9974_v35, %s9505_s21 }
 0xa79   :  { %6077 = vrot.lane.b32.xlu1 %v9916_v19, %s9506_s7 }
 0xa7d   :  { %6071 = vrot.lane.b32.xlu1 %v9918_v40, %s9507_s23 }
 0xa81   :  { %6073 = vrot.lane.b32.xlu1 %v9916_v19, %s9507_s23 }
 0xa85   :  { %v5121_v17 = vpop.xlane.xlu1 %5120  ;;  %6162 = vrot.lane.b32.xlu1 %v9928_v4, %s9507_s23 }
 0xa86   :  { %9347 = vrcp.f32 %v5121_v17 }
 0xa87   :  { %v5118_v60 = vpop.xlane.xlu0 %5117 }
 0xa88   :  { %9349 = vrcp.f32 %v5118_v60 }
 0xa89   :  { %v11088_v59 = vpop.permute.xlu1 %5690  ;;  %6164 = vrot.lane.b32.xlu1 %v9926_v3, %s9507_s23 }
 0xa8a   :  { %8940 = vmatprep.subr.mxu0 %v11088_v59 }
 0xa8d   :  { %6253 = vrot.lane.b32.xlu1 %v9936_v8, %s9507_s23 }
 0xa91   :  { %6255 = vrot.lane.b32.xlu1 %v9932_v5, %s9507_s23 }
 0xa93   :  { %5123 = vadd.xlane.f32.xlu0 %v5122_v53  ;;  %v9348_v46 = vpop.eup %9347 }
 0xa94   :  { %v5161_v42 = vmul.f32 %v9348_v46, %v11015_v52 }
 0xa95   :  { %v9350_v37 = vpop.eup %9349  ;;  %6441 = vrot.lane.b32.xlu1 %v9948_v20, %s9506_s7 }
 0xa96   :  { %v5160_v43 = vmul.f32 %v9350_v37, %v11017_v9 }
 0xa98   :  { %8937 = vmatprep.mubr.msk.f32.mxu1 %vm1371_vm2, %v5160_v43 }
 0xa99   :  { %6346 = vrot.lane.b32.xlu1 %v9940_v12, %s9507_s23  ;;  %8938 = vmatmul.mubr.msk.f32.vlgmr.msra.gmra.mxu1 %vm1371_vm2, %v5161_v42 }
 0xa9d   :  { %6532 = vrot.lane.b32.xlu1 %v9960_v10, %s9506_s7 }
 0xaa1   :  { %6437 = vrot.lane.b32.xlu1 %v9948_v20, %s9507_s23 }
 0xaa5   :  { %6623 = vrot.lane.b32.xlu1 %v9966_v56, %s9506_s7 }
 0xaa9   :  { %6528 = vrot.lane.b32.xlu1 %v9960_v10, %s9507_s23  ;;  %5775 = vrot.lane.b32.xlu0 %v9978_v36, %s9505_s21 }
 0xaad   :  { %6714 = vrot.lane.b32.xlu1 %v9974_v35, %s9506_s7  ;;  %6075 = vrot.lane.b32.xlu0 %v9918_v40, %s9506_s7 }
 0xab1   :  { %6619 = vrot.lane.b32.xlu1 %v9966_v56, %s9507_s23  ;;  %6168 = vrot.lane.b32.xlu0 %v9926_v3, %s9506_s7 }
 0xab5   :  { %6708 = vrot.lane.b32.xlu1 %v9978_v36, %s9507_s23  ;;  %6166 = vrot.lane.b32.xlu0 %v9928_v4, %s9506_s7 }
 0xab9   :  { %6259 = vrot.lane.b32.xlu0 %v9932_v5, %s9506_s7 }
 0xaba   :  { %v5130_v52 = vpop.xlane.xlu1 %5129 }
 0xabb   :  { %9351 = vrcp.f32 %v5130_v52 }
 0xabd   :  { %6257 = vrot.lane.b32.xlu0 %v9936_v8, %s9506_s7 }
 0xac1   :  { %6350 = vrot.lane.b32.xlu0 %v9940_v12, %s9506_s7 }
 0xac5   :  { %6348 = vrot.lane.b32.xlu0 %v9944_v15, %s9506_s7 }
 0xac8   :  { %v9352_v9 = vpop.eup %9351 }
 0xac9   :  { %6344 = vrot.lane.b32.xlu0 %v9944_v15, %s9507_s23  ;;  %v5164_v47 = vmul.f32 %v9352_v9, %v11030_v21  ;;  %v5133_v21 = vpop.xlane.xlu0 %5132 }
 0xacb   :  { %8951 = vmatprep.mubr.msk.f32.mxu1 %vm1371_vm2, %v5164_v47 }
 0xacd   :  { %6439 = vrot.lane.b32.xlu0 %v9952_v23, %s9506_s7 }
 0xad1   :  { %6435 = vrot.lane.b32.xlu0 %v9952_v23, %s9507_s23 }
 0xad5   :  { %6530 = vrot.lane.b32.xlu0 %v9962_v29, %s9506_s7 }
 0xad9   :  { %6526 = vrot.lane.b32.xlu0 %v9962_v29, %s9507_s23 }
 0xadd   :  { %6621 = vrot.lane.b32.xlu0 %v9970_v34, %s9506_s7 }
 0xae1   :  { %6617 = vrot.lane.b32.xlu0 %v9970_v34, %s9507_s23 }
 0xae5   :  { %v5115_v33 = vpop.xlane.xlu1 %5114  ;;  %6712 = vrot.lane.b32.xlu0 %v9978_v36, %s9506_s7 }
 0xae6   :  { %9353 = vrcp.f32 %v5115_v33 }
 0xae7   :  { %v5112_v30 = vpop.xlane.xlu0 %5111 }
 0xae8   :  { %9355 = vrcp.f32 %v5112_v30 }
 0xae9   :  { %6710 = vrot.lane.b32.xlu0 %v9974_v35, %s9507_s23  ;;  %9357 = vrcp.f32 %v5133_v21 }
 0xaeb   :  { %v5689_v16 = vpop.permute.xlu0 %5688 }
 0xaed   :  { %v5127_v25 = vpop.xlane.xlu1 %5126  ;;  %6977 = vrot.lane.b32.xlu0 %v9916_v19, %s9508_s24 }
 0xaee   :  { %9359 = vrcp.f32 %v5127_v25 }
 0xaf1   :  { %v5778_v38 = vpop.permute.xlu1 %5777 }
 0xaf2   :  { %8947 = vmatprep.subr.mxu1 %v5778_v38 }
 0xaf3   :  { %8948 = vmatpush3.msra.mxu1 %v5778_v38  ;;  %v9354_v0 = vpop.eup %9353 }
 0xaf4   :  { %v5159_v41 = vmul.f32 %v9354_v0, %v11063_v28 }
 0xaf5   :  { %v9356_v7 = vpop.eup %9355  ;;  %v6078_v11 = vpop.permute.xlu1 %6077 }
 0xaf6   :  { %v5158_v13 = vmul.f32 %v9356_v7, %v11067_v45  ;;  %v9358_v62 = vpop.eup %9357  ;;  %v8904_v53 = vpop.f32.mrf.mxu1 }
 0xaf7   :  { %v5165_v17 = vmul.f32 %v9358_v62, %v11023_v22 }
 0xaf8   :  { %8930 = vmatprep.mubr.msk.f32.mxu0 %vm1371_vm2, %v5158_v13  ;;  %v5244_v52 = vpop.f32.mrf.mxu1 }
 0xaf9   :  { %8931 = vmatmul.mubr.msk.f32.vlgmr.msra.gmra.mxu0 %vm1371_vm2, %v5159_v41  ;;  %v6072_v19 = vpop.permute.xlu1 %6071 }
 0xafa   :  { %8941 = vmatpush3.msra.mxu0 %v11088_v59 }
 0xafb   :  { %8942 = vmatprep.subr.mxu0 %v5689_v16  ;;  %v9360_v43 = vpop.eup %9359 }
 0xafc   :  { %8943 = vmatpush3.msra.mxu0 %v5689_v16  ;;  %v5163_v47 = vmul.f32 %v9360_v43, %v11071_v32 }
 0xafd   :  { %8954 = vmatprep.subr.mxu0 %v648_v31  ;;  %v6074_v57 = vpop.permute.xlu1 %6073 }
 0xafe   :  { %v8911_v21 = vpop.f32.mrf.mxu1 }
 0xb00   :  { %v5331_v30 = vpop.f32.mrf.mxu1 }
 0xb01   :  { %v6163_v51 = vpop.permute.xlu1 %6162 }
 0xb05   :  { %v6165_v61 = vpop.permute.xlu1 %6164 }
 0xb06   :  { %v8918_v32 = vpop.f32.mrf.mxu0 }
 0xb08   :  { %v5418_v0 = vpop.f32.mrf.mxu0 }
 0xb09   :  { %v6254_v45 = vpop.permute.xlu1 %6253 }
 0xb0d   :  { %v6256_v28 = vpop.permute.xlu1 %6255 }
 0xb0e   :  { %v8925_v7 = vpop.f32.mrf.mxu1 }
 0xb10   :  { %v5505_v41 = vpop.f32.mrf.mxu1 }
 0xb11   :  { %v6442_v60 = vpop.permute.xlu1 %6441 }
 0xb15   :  { %v6347_v46 = vpop.permute.xlu1 %6346 }
 0xb19   :  { %v6533_v33 = vpop.permute.xlu1 %6532 }
 0xb1c   :  { %v5124_v2 = vpop.xlane.xlu0 %5123 }
 0xb1d   :  { %9361 = vrcp.f32 %v5124_v2  ;;  %v11189_v25 = vpop.permute.xlu1 %6437 }
 0xb20   :  { %v5776_v39 = vpop.permute.xlu0 %5775 }
 0xb21   :  { %8949 = vmatprep.subr.mxu1 %v5776_v39 }
 0xb22   :  { %8950 = vmatpush3.msra.mxu1 %v5776_v39 }
 0xb23   :  { %8952 = vmatmul.mubr.msk.f32.vlgmr.msra.gmra.mxu1 %vm1371_vm2, %v5165_v17  ;;  %8980 = vmatprep.subr.msk.mxu1 %vm664_vm1, %v6078_v11 }
 0xb24   :  { %8981 = vmatpush3.xpose.msk.msra.mxu1 %vm664_vm1, %v6078_v11  ;;  %8984 = vmatprep.mubr.msk.f32.mxu1 %vm664_vm1, %v6072_v19  ;;  %v6076_v59 = vpop.permute.xlu0 %6075  ;;  %v11198_v11 = vpop.permute.xlu1 %6623 }
 0xb25   :  { %8982 = vmatprep.subr.msk.mxu1 %vm664_vm1, %v6076_v59 }
 0xb28   :  { %8983 = vmatpush3.xpose.msk.msra.mxu1 %vm664_vm1, %v6076_v59  ;;  %v6169_v37 = vpop.permute.xlu0 %6168 }
 0xb29   :  { %8987 = vmatprep.subr.msk.mxu1 %vm664_vm1, %v6169_v37 }
 0xb2a   :  { %v9362_v22 = vpop.eup %9361 }
 0xb2b   :  { %8985 = vmatmul.mubr.msk.f32.vlgmr.msra.gmra.mxu1 %vm664_vm1, %v6074_v57  ;;  %v5162_v42 = vmul.f32 %v9362_v22, %v11095_v24 }
 0xb2c   :  { %8988 = vmatpush3.xpose.msk.msra.mxu1 %vm664_vm1, %v6169_v37  ;;  %8991 = vmatprep.mubr.msk.f32.mxu1 %vm664_vm1, %v6163_v51  ;;  %v6167_v9 = vpop.permute.xlu0 %6166 }
 0xb2d   :  { %8944 = vmatprep.mubr.msk.f32.mxu0 %vm1371_vm2, %v5162_v42  ;;  %8989 = vmatprep.subr.msk.mxu1 %vm664_vm1, %v6167_v9 }
 0xb2e   :  { %8945 = vmatmul.mubr.msk.f32.vlgmr.msra.gmra.mxu0 %vm1371_vm2, %v5163_v47 }
 0xb2f   :  { %8955 = vmatpush3.msra.mxu0 %v648_v31  ;;  %8956 = vmatprep.mubr.msk.f32.mxu0 %vm664_vm1, %v5244_v52  ;;  %v6529_v31 = vpop.permute.xlu1 %6528 }
 0xb30   :  { %9008 = vmatprep.subr.msk.mxu0 %vm664_vm1, %v6442_v60  ;;  %8990 = vmatpush3.xpose.msk.msra.mxu1 %vm664_vm1, %v6167_v9  ;;  %v6260_v24 = vpop.permute.xlu0 %6259 }
 0xb31   :  { %8994 = vmatprep.subr.msk.mxu1 %vm664_vm1, %v6260_v24 }
 0xb32   :  { %8957 = vmatmul.mubr.msk.f32.vlgmr.msra.gmra.mxu0 %vm664_vm1, %v8904_v53 }
 0xb33   :  { %9009 = vmatpush3.xpose.msk.msra.mxu0 %vm664_vm1, %v6442_v60  ;;  %8959 = vmatprep.mubr.msk.f32.mxu0 %vm664_vm1, %v5331_v30  ;;  %v6715_v51 = vpop.permute.xlu1 %6714 }
 0xb34   :  { %8992 = vmatmul.mubr.msk.f32.vlgmr.msra.gmra.mxu1 %vm664_vm1, %v6165_v61  ;;  %v6258_v38 = vpop.permute.xlu0 %6257 }
 0xb35   :  { %8995 = vmatpush3.xpose.msk.msra.mxu1 %vm664_vm1, %v6260_v24  ;;  %8998 = vmatprep.mubr.msk.f32.mxu1 %vm664_vm1, %v6254_v45 }
 0xb36   :  { %8996 = vmatprep.subr.msk.mxu1 %vm664_vm1, %v6258_v38  ;;  %8960 = vmatmul.mubr.msk.f32.gmra.mxu0 %vm664_vm1, %v8911_v21 }
 0xb37   :  { %8962 = vmatprep.mubr.msk.f32.mxu0 %vm664_vm1, %v5418_v0  ;;  %v11216_v45 = vpop.permute.xlu1 %6619 }
 0xb38   :  { %v6351_v13 = vpop.permute.xlu0 %6350 }
 0xb39   :  { %8997 = vmatpush3.xpose.msk.msra.mxu1 %vm664_vm1, %v6258_v38 }
 0xb3a   :  { %9001 = vmatprep.subr.msk.mxu1 %vm664_vm1, %v6351_v13  ;;  %8963 = vmatmul.mubr.msk.f32.gmra.mxu0 %vm664_vm1, %v8918_v32 }
 0xb3b   :  { %8965 = vmatprep.mubr.msk.f32.mxu0 %vm664_vm1, %v5505_v41  ;;  %v6709_v62 = vpop.permute.xlu1 %6708 }
 0xb3c   :  { %8999 = vmatmul.mubr.msk.f32.vlgmr.msra.gmra.mxu1 %vm664_vm1, %v6256_v28  ;;  %v6349_v16 = vpop.permute.xlu0 %6348 }
 0xb3d   :  { %9002 = vmatpush3.xpose.msk.msra.mxu1 %vm664_vm1, %v6351_v13 }
 0xb3e   :  { %9003 = vmatprep.subr.msk.mxu1 %vm664_vm1, %v6349_v16  ;;  %8966 = vmatmul.mubr.msk.f32.gmra.mxu0 %vm664_vm1, %v8925_v7 }
 0xb40   :  { %v6345_v19 = vpop.permute.xlu0 %6344 }
 0xb41   :  { %9004 = vmatpush3.xpose.msk.msra.mxu1 %vm664_vm1, %v6349_v16  ;;  %9005 = vmatprep.mubr.msk.f32.mxu1 %vm664_vm1, %v6345_v19 }
 0xb42   :  { %9015 = vmatprep.subr.msk.mxu1 %vm664_vm1, %v6533_v33 }
 0xb44   :  { %9006 = vmatmul.mubr.msk.f32.vlgmr.msra.gmra.mxu1 %vm664_vm1, %v6347_v46  ;;  %v6440_v57 = vpop.permute.xlu0 %6439 }
 0xb45   :  { %9016 = vmatpush3.xpose.msk.msra.mxu1 %vm664_vm1, %v6533_v33  ;;  %9010 = vmatprep.subr.msk.mxu0 %vm664_vm1, %v6440_v57 }
 0xb46   :  { %9011 = vmatpush3.xpose.msk.msra.mxu0 %vm664_vm1, %v6440_v57 }
 0xb47   :  { %9022 = vmatprep.subr.msk.mxu0 %vm664_vm1, %v11198_v11 }
 0xb48   :  { %v6436_v61 = vpop.permute.xlu0 %6435 }
 0xb4c   :  { %v6531_v28 = vpop.permute.xlu0 %6530 }
 0xb4d   :  { %9017 = vmatprep.subr.msk.mxu1 %vm664_vm1, %v6531_v28 }
 0xb4e   :  { %9018 = vmatpush3.xpose.msk.msra.mxu1 %vm664_vm1, %v6531_v28 }
 0xb4f   :  { %9029 = vmatprep.subr.msk.mxu1 %vm664_vm1, %v6715_v51 }
 0xb50   :  { %v6527_v2 = vpop.permute.xlu0 %6526 }
 0xb51   :  { %9019 = vmatprep.mubr.msk.f32.mxu1 %vm664_vm1, %v6527_v2 }
 0xb52   :  { %9020 = vmatmul.mubr.msk.f32.vlgmr.msra.gmra.mxu1 %vm664_vm1, %v6529_v31 }
 0xb53   :  { %9030 = vmatpush3.xpose.msk.msra.mxu1 %vm664_vm1, %v6715_v51  ;;  %9033 = vmatprep.mubr.msk.f32.mxu1 %vm664_vm1, %v6709_v62 }
 0xb54   :  { %v6622_v39 = vpop.permute.xlu0 %6621 }
 0xb58   :  { %v6618_v17 = vpop.permute.xlu0 %6617 }
 0xb59   :  { %v8939_v53 = vpop.f32.mrf.mxu1 }
 0xb5b   :  { %v5679_v43 = vpop.f32.mrf.mxu1 }
 0xb5c   :  { %v6713_v60 = vpop.permute.xlu0 %6712 }
 0xb5d   :  { %9031 = vmatprep.subr.msk.mxu1 %vm664_vm1, %v6713_v60 }
 0xb5e   :  { %9032 = vmatpush3.xpose.msk.msra.mxu1 %vm664_vm1, %v6713_v60 }
 0xb60   :  { %v6711_v59 = vpop.permute.xlu0 %6710 }
 0xb61   :  { %9034 = vmatmul.mubr.msk.f32.vlgmr.msra.gmra.mxu1 %vm664_vm1, %v6711_v59 }
 0xb64   :  { %v6978_v2 = vpop.permute.xlu0 %6977 }
 0xbb9   :  { %v8932_v46 = vpop.f32.mrf.mxu0 }
 0xbbb   :  { %v5592_v37 = vpop.f32.mrf.mxu0 }
 0xbbc   :  { %8968 = vmatprep.mubr.msk.f32.mxu0 %vm664_vm1, %v5592_v37 }
 0xbbd   :  { %8969 = vmatmul.mubr.msk.f32.gmra.mxu0 %vm664_vm1, %v8932_v46 }
 0xbbe   :  { %8971 = vmatprep.mubr.msk.f32.mxu0 %vm664_vm1, %v5679_v43 }
 0xbc1   :  { %8972 = vmatmul.mubr.msk.f32.gmra.mxu0 %vm664_vm1, %v8939_v53 }
 0xbe3   :  { %v8953_v22 = vpop.f32.mrf.mxu1 }
 0xbe5   :  { %v5853_v42 = vpop.f32.mrf.mxu1 }
 0xbeb   :  { %v11232_v52 = vpop.f32.mrf.mxu1 }
 0xbec   :  { %v6802_v9 = vsel %vm1371_vm2, %v11232_v52, -inf }
 0xbed   :  { %6803 = vmax.xlane.f32.xlu0 %v6802_v9  ;;  %v11236_v47 = vpop.f32.mrf.mxu1 }
 0xbee   :  { %v8946_v21 = vpop.f32.mrf.mxu0  ;;  %v6799_v33 = vsel %vm1371_vm2, %v11236_v47, -inf }
 0xbef   :  { %6800 = vmax.xlane.f32.xlu1 %v6799_v33 }
 0xbf0   :  { %v5766_v24 = vpop.f32.mrf.mxu0 }
 0xbf1   :  { %8974 = vmatprep.mubr.msk.f32.mxu0 %vm664_vm1, %v5766_v24 }
 0xbf2   :  { %v8958_v30 = vpop.f32.mrf.mxu0  ;;  %8975 = vmatmul.mubr.msk.f32.gmra.mxu0 %vm664_vm1, %v8946_v21 }
 0xbf3   :  { %v11243_v32 = vadd.f32 %v8958_v30, %v10833_v1  ;;  %8977 = vmatprep.mubr.msk.f32.mxu0 %vm664_vm1, %v5853_v42 }
 0xbf4   :  { %v11246_v38 = vpop.f32.mrf.mxu1  ;;  %v5976_v0 = vpop.f32.mrf.mxu0 }
 0xbf5   :  { %v11249_v7 = vadd.f32 %v5976_v0, %v10837_v14  ;;  %v6808_v13 = vsel %vm1371_vm2, %v11246_v38, -inf }
 0xbf6   :  { %6809 = vmax.xlane.f32.xlu1 %v6808_v13  ;;  %v11253_v41 = vpop.f32.mrf.mxu1  ;;  %v8961_v16 = vpop.f32.mrf.mxu0  ;;  %8978 = vmatmul.mubr.msk.f32.gmra.mxu0 %vm664_vm1, %v8953_v22 }
 0xbf7   :  { %v11257_v1 = vadd.f32 %v8961_v16, %v10841_v58  ;;  %v6805_v31 = vsel %vm1371_vm2, %v11253_v41, -inf  ;;  %9012 = vmatprep.mubr.msk.f32.mxu0 %vm664_vm1, %v6436_v61 }
 0xbf8   :  { %6806 = vmax.xlane.f32.xlu0 %v6805_v31  ;;  %v5986_v14 = vpop.f32.mrf.mxu0 }
 0xbf9   :  { %v11263_v19 = vadd.f32 %v5986_v14, %v10845_v27 }
 0xbfa   :  { %v8964_v57 = vpop.f32.mrf.mxu0  ;;  %9013 = vmatmul.mubr.msk.f32.vlgmr.msra.gmra.mxu0 %vm664_vm1, %v11189_v25 }
 0xbfb   :  { %v11268_v51 = vadd.f32 %v8964_v57, %v10849_v54  ;;  %9023 = vmatpush3.xpose.msk.msra.mxu0 %vm664_vm1, %v11198_v11  ;;  %9026 = vmatprep.mubr.msk.f32.mxu0 %vm664_vm1, %v6618_v17 }
 0xbfc   :  { %v11273_v58 = vpop.f32.mrf.mxu1  ;;  %9024 = vmatprep.subr.msk.mxu0 %vm664_vm1, %v6622_v39  ;;  %v5996_v61 = vpop.f32.mrf.mxu0 }
 0xbfd   :  { %v11277_v27 = vadd.f32 %v5996_v61, %v10854_v63  ;;  %v6814_v28 = vsel %vm1371_vm2, %v11273_v58, -inf }
 0xbfe   :  { %6815 = vmax.xlane.f32.xlu1 %v6814_v28  ;;  %v11281_v25 = vpop.f32.mrf.mxu1  ;;  %v8967_v54 = vpop.f32.mrf.mxu0 }
 0xbff   :  { %v11284_v11 = vadd.f32 %v8967_v54, %v10860_v44  ;;  %9025 = vmatpush3.xpose.msk.msra.mxu0 %vm664_vm1, %v6622_v39  ;;  %v6811_v62 = vsel %vm1371_vm2, %v11281_v25, -inf }
 0xc00   :  { %6812 = vmax.xlane.f32.xlu0 %v6811_v62  ;;  %9036 = vmatprep.subr.mxu0 %v6978_v2  ;;  %v11314_v30 = vpop.f32.mrf.mxu0 }
 0xc02   :  { %9027 = vmatmul.mubr.msk.f32.vlgmr.msra.gmra.mxu0 %vm664_vm1, %v11216_v45 }
 0xc03   :  { %9037 = vmatpush3.msra.mxu0 %v6978_v2 }
 0xc04   :  { %v9007_v63 = vpop.f32.mrf.mxu1 }
 0xc05   :  { %v6820_v17 = vsel %vm1371_vm2, %v9007_v63, -inf }
 0xc06   :  { %6821 = vmax.xlane.f32.xlu1 %v6820_v17  ;;  %v11292_v60 = vpop.f32.mrf.mxu1 }
 0xc07   :  { %v6817_v44 = vsel %vm1371_vm2, %v11292_v60, -inf }
 0xc08   :  { %6818 = vmax.xlane.f32.xlu0 %v6817_v44 }
 0xc12   :  { %v11296_v39 = vpop.f32.mrf.mxu1 }
 0xc13   :  { %v6832_v59 = vsel %vm1371_vm2, %v11296_v39, -inf }
 0xc14   :  { %6833 = vmax.xlane.f32.xlu1 %v6832_v59  ;;  %v11300_v53 = vpop.f32.mrf.mxu1 }
 0xc15   :  { %v6829_v45 = vsel %vm1371_vm2, %v11300_v53, -inf }
 0xc16   :  { %6830 = vmax.xlane.f32.xlu0 %v6829_v45 }
 0xc21   :  { %v11304_v46 = vpop.f32.mrf.mxu1 }
 0xc22   :  { %v6844_v37 = vsel %vm1371_vm2, %v11304_v46, -inf }
 0xc23   :  { %6845 = vmax.xlane.f32.xlu1 %v6844_v37  ;;  %v11308_v43 = vpop.f32.mrf.mxu1 }
 0xc24   :  { %v6841_v22 = vsel %vm1371_vm2, %v11308_v43, -inf }
 0xc25   :  { %6842 = vmax.xlane.f32.xlu0 %v6841_v22 }
 0xc76   :  { %v6804_v42 = vpop.xlane.xlu0 %6803 }
 0xc77   :  { %v6848_v9 = vsub.f32 %v11232_v52, %v6804_v42 }
 0xc78   :  { %v6801_v21 = vpop.xlane.xlu1 %6800 }
 0xc79   :  { %v6865_v33 = vmul.f32 1.442695, %v6848_v9  ;;  %v6847_v24 = vsub.f32 %v11236_v47, %v6801_v21 }
 0xc7b   :  { %9363 = vpow2.f32 %v6865_v33  ;;  %v6863_v0 = vmul.f32 1.442695, %v6847_v24 }
 0xc7d   :  { %9365 = vpow2.f32 %v6863_v0  ;;  %v8970_v13 = vpop.f32.mrf.mxu0 }
 0xc7e   :  { %v11317_v16 = vadd.f32 %v8970_v13, %v10924_v18  ;;  %v11552_v18 = vld [vmem:[#allocation12_spill] sm:$0xff] }
 0xc7f   :  { %v6810_v31 = vpop.xlane.xlu1 %6809  ;;  %v6016_v14 = vpop.f32.mrf.mxu0 }
 0xc80   :  { %v6850_v57 = vsub.f32 %v11246_v38, %v6810_v31  ;;  %v11321_v61 = vadd.f32 %v6016_v14, %v10928_v6 }
 0xc81   :  { %v6807_v52 = vpop.xlane.xlu0 %6806  ;;  %v8973_v28 = vpop.f32.mrf.mxu0 }
 0xc82   :  { %v6869_v54 = vmul.f32 1.442695, %v6850_v57  ;;  %v6849_v47 = vsub.f32 %v11253_v41, %v6807_v52  ;;  %v11325_v2 = vadd.f32 %v8973_v28, %v10932_v50 }
 0xc83   :  { %v6026_v62 = vpop.f32.mrf.mxu0 }
 0xc84   :  { %9367 = vpow2.f32 %v6869_v54  ;;  %v6867_v17 = vmul.f32 1.442695, %v6849_v47  ;;  %v11328_v44 = vadd.f32 %v6026_v62, %v11552_v18 }
 0xc86   :  { %9369 = vpow2.f32 %v6867_v17 }
 0xc87   :  { %v6816_v59 = vpop.xlane.xlu1 %6815 }
 0xc88   :  { %v11330_v38 = vpop.eup %9363  ;;  %v6852_v6 = vsub.f32 %v11273_v58, %v6816_v59 }
 0xc89   :  { %v6813_v45 = vpop.xlane.xlu0 %6812  ;;  %v6898_v37 = vsel %vm1371_vm2, %v11330_v38, 0.0 }
 0xc8a   :  { %v11335_v41 = vpop.eup %9365  ;;  %v6873_v50 = vmul.f32 1.442695, %v6852_v6  ;;  %v6851_v22 = vsub.f32 %v11281_v25, %v6813_v45  ;;  %6899 = vadd.xlane.f32.xlu1 %v6898_v37 }
 0xc8b   :  { %v6895_v42 = vsel %vm1371_vm2, %v11335_v41, 0.0 }
 0xc8c   :  { %9371 = vpow2.f32 %v6873_v50  ;;  %v6871_v9 = vmul.f32 1.442695, %v6851_v22  ;;  %6896 = vadd.xlane.f32.xlu0 %v6895_v42 }
 0xc8e   :  { %9373 = vpow2.f32 %v6871_v9 }
 0xc8f   :  { %v6822_v21 = vpop.xlane.xlu1 %6821 }
 0xc90   :  { %v6854_v33 = vsub.f32 %v9007_v63, %v6822_v21 }
 0xc91   :  { %v11340_v58 = vpop.eup %9367  ;;  %v6819_v24 = vpop.xlane.xlu0 %6818 }
 0xc92   :  { %v6877_v0 = vmul.f32 1.442695, %v6854_v33  ;;  %v6853_v13 = vsub.f32 %v11292_v60, %v6819_v24  ;;  %v6904_v31 = vsel %vm1371_vm2, %v11340_v58, 0.0 }
 0xc93   :  { %v11345_v25 = vpop.eup %9369  ;;  %6905 = vadd.xlane.f32.xlu1 %v6904_v31 }
 0xc94   :  { %9375 = vpow2.f32 %v6877_v0  ;;  %v6875_v14 = vmul.f32 1.442695, %v6853_v13  ;;  %v6901_v57 = vsel %vm1371_vm2, %v11345_v25, 0.0 }
 0xc95   :  { %6902 = vadd.xlane.f32.xlu0 %v6901_v57 }
 0xc96   :  { %9377 = vpow2.f32 %v6875_v14 }
 0xc99   :  { %v11349_v63 = vpop.eup %9371 }
 0xc9a   :  { %v6910_v52 = vsel %vm1371_vm2, %v11349_v63, 0.0 }
 0xc9b   :  { %v11353_v28 = vpop.eup %9373  ;;  %6911 = vadd.xlane.f32.xlu1 %v6910_v52 }
 0xc9c   :  { %v6907_v60 = vsel %vm1371_vm2, %v11353_v28, 0.0 }
 0xc9d   :  { %6908 = vadd.xlane.f32.xlu0 %v6907_v60  ;;  %v6834_v54 = vpop.xlane.xlu1 %6833 }
 0xc9e   :  { %v6858_v47 = vsub.f32 %v11296_v39, %v6834_v54 }
 0xc9f   :  { %v6831_v62 = vpop.xlane.xlu0 %6830 }
 0xca0   :  { %v6885_v17 = vmul.f32 1.442695, %v6858_v47  ;;  %v6857_v18 = vsub.f32 %v11300_v53, %v6831_v62 }
 0xca1   :  { %v11359_v59 = vpop.eup %9375 }
 0xca2   :  { %9379 = vpow2.f32 %v6885_v17  ;;  %v6883_v6 = vmul.f32 1.442695, %v6857_v18  ;;  %v6916_v45 = vsel %vm1371_vm2, %v11359_v59, 0.0 }
 0xca3   :  { %v11363_v37 = vpop.eup %9377  ;;  %6917 = vadd.xlane.f32.xlu1 %v6916_v45 }
 0xca4   :  { %9381 = vpow2.f32 %v6883_v6  ;;  %v6913_v50 = vsel %vm1371_vm2, %v11363_v37, 0.0 }
 0xca5   :  { %6914 = vadd.xlane.f32.xlu0 %v6913_v50 }
 0xcac   :  { %v6846_v39 = vpop.xlane.xlu1 %6845 }
 0xcad   :  { %v6862_v22 = vsub.f32 %v11304_v46, %v6846_v39 }
 0xcaf   :  { %v11368_v42 = vpop.eup %9379  ;;  %v6893_v53 = vmul.f32 1.442695, %v6862_v22 }
 0xcb0   :  { %v6928_v9 = vsel %vm1371_vm2, %v11368_v42, 0.0 }
 0xcb1   :  { %v11372_v21 = vpop.eup %9381  ;;  %9383 = vpow2.f32 %v6893_v53  ;;  %6929 = vadd.xlane.f32.xlu1 %v6928_v9 }
 0xcb2   :  { %v8976_v33 = vpop.f32.mrf.mxu0  ;;  %v6925_v24 = vsel %vm1371_vm2, %v11372_v21, 0.0 }
 0xcb3   :  { %v11377_v0 = vadd.f32 %v8976_v33, %v10980_v26  ;;  %6926 = vadd.xlane.f32.xlu0 %v6925_v24 }
 0xcb4   :  { %v6036_v13 = vpop.f32.mrf.mxu0 }
 0xcb5   :  { %v11380_v46 = vadd.f32 %v6036_v13, %v10984_v49 }
 0xcb6   :  { %v8979_v31 = vpop.f32.mrf.mxu0 }
 0xcb7   :  { %v11383_v14 = vadd.f32 %v8979_v31, %v10988_v48  ;;  %v6843_v48 = vpop.xlane.xlu0 %6842 }
 0xcb8   :  { %v6046_v57 = vpop.f32.mrf.mxu0 }
 0xcb9   :  { %v11386_v52 = vadd.f32 %v6046_v57, %v10990_v55  ;;  %v6861_v55 = vsub.f32 %v11308_v43, %v6843_v48 }
 0xcba   :  { %v9014_v60 = vpop.f32.mrf.mxu0 }
 0xcbb   :  { %v6826_v54 = vsel %vm1371_vm2, %v9014_v60, -inf  ;;  %v6891_v17 = vmul.f32 1.442695, %v6861_v55 }
 0xcbc   :  { %v6517_v47 = vpop.f32.mrf.mxu0  ;;  %6827 = vmax.xlane.f32.xlu1 %v6826_v54 }
 0xcbd   :  { %v6823_v26 = vsel %vm1371_vm2, %v6517_v47, -inf  ;;  %9385 = vpow2.f32 %v6891_v17 }
 0xcbe   :  { %v11390_v62 = vpop.eup %9383  ;;  %6824 = vmax.xlane.f32.xlu0 %v6823_v26 }
 0xcbf   :  { %v6940_v49 = vsel %vm1371_vm2, %v11390_v62, 0.0 }
 0xcc2   :  { %6941 = vadd.xlane.f32.xlu0 %v6940_v49  ;;  %v11405_v18 = vpop.f32.mrf.mxu0 }
 0xccd   :  { %6975 = vrot.lane.b32.xlu1 %v9918_v40, %s9508_s24  ;;  %v6838_v40 = vsel %vm1371_vm2, %v11405_v18, -inf }
 0xcd8   :  { %7064 = vrot.lane.b32.xlu0 %v9926_v3, %s9508_s24  ;;  %v11409_v3 = vpop.eup %9385 }
 0xcd9   :  { %v6937_v43 = vsel %vm1371_vm2, %v11409_v3, 0.0 }
 0xcdc   :  { %7149 = vrot.lane.b32.xlu0 %v9936_v8, %s9508_s24  ;;  %v11413_v8 = vpop.f32.mrf.mxu0 }
 0xce0   :  { %7236 = vrot.lane.b32.xlu0 %v9944_v15, %s9508_s24  ;;  %v6835_v15 = vsel %vm1371_vm2, %v11413_v8, -inf }
 0xce4   :  { %7323 = vrot.lane.b32.xlu0 %v9952_v23, %s9508_s24 }
 0xcf1   :  { %6839 = vmax.xlane.f32.xlu1 %v6838_v40 }
 0xcf5   :  { %6938 = vadd.xlane.f32.xlu1 %v6937_v43 }
 0xd03   :  { %6836 = vmax.xlane.f32.xlu0 %v6835_v15 }
 0xd06   :  { %7062 = vrot.lane.b32.xlu1 %v9928_v4, %s9508_s24 }
 0xd0a   :  { %7151 = vrot.lane.b32.xlu1 %v9932_v5, %s9508_s24 }
 0xd0e   :  { %7238 = vrot.lane.b32.xlu1 %v9940_v12, %s9508_s24 }
 0xd12   :  { %7325 = vrot.lane.b32.xlu1 %v9948_v20, %s9508_s24 }
 0xd13   :  { %v6900_v12 = vpop.xlane.xlu1 %6899 }
 0xd15   :  { %v6897_v23 = vpop.xlane.xlu0 %6896 }
 0xd16   :  { %9387 = vrcp.f32 %v6897_v23  ;;  %7412 = vrot.lane.b32.xlu1 %v9960_v10, %s9508_s24 }
 0xd19   :  { %7410 = vrot.lane.b32.xlu0 %v9962_v29, %s9508_s24 }
 0xd1a   :  { %7499 = vrot.lane.b32.xlu1 %v9966_v56, %s9508_s24 }
 0xd1c   :  { %v6906_v50 = vpop.xlane.xlu1 %6905 }
 0xd1e   :  { %v6903_v4 = vpop.xlane.xlu0 %6902 }
 0xd23   :  { %v9388_v6 = vpop.eup %9387 }
 0xd24   :  { %v6959_v5 = vmul.f32 %v9388_v6, %v11335_v41  ;;  %v6912_v10 = vpop.xlane.xlu1 %6911 }
 0xd26   :  { %v6909_v45 = vpop.xlane.xlu0 %6908  ;;  %9040 = vmatprep.mubr.msk.f32.mxu0 %vm1371_vm2, %v6959_v5 }
 0xd27   :  { %9389 = vrcp.f32 %v6909_v45 }
 0xd28   :  { %9391 = vrcp.f32 %v6900_v12 }
 0xd29   :  { %9393 = vrcp.f32 %v6903_v4 }
 0xd2c   :  { %v6918_v29 = vpop.xlane.xlu1 %6917 }
 0xd2e   :  { %v6915_v56 = vpop.xlane.xlu0 %6914 }
 0xd34   :  { %v9390_v20 = vpop.eup %9389 }
 0xd35   :  { %v6963_v39 = vmul.f32 %v9390_v20, %v11353_v28  ;;  %v9392_v33 = vpop.eup %9391 }
 0xd36   :  { %v9394_v13 = vpop.eup %9393  ;;  %v6960_v28 = vmul.f32 %v9392_v33, %v11330_v38 }
 0xd37   :  { %9054 = vmatprep.mubr.msk.f32.mxu1 %vm1371_vm2, %v6963_v39  ;;  %v6961_v48 = vmul.f32 %v9394_v13, %v11345_v25 }
 0xd3a   :  { %v6930_v22 = vpop.xlane.xlu1 %6929 }
 0xd3c   :  { %v6927_v53 = vpop.xlane.xlu0 %6926 }
 0xd45   :  { %v6828_v9 = vpop.xlane.xlu1 %6827 }
 0xd46   :  { %v6856_v41 = vsub.f32 %v9014_v60, %v6828_v9 }
 0xd47   :  { %v6825_v24 = vpop.xlane.xlu0 %6824 }
 0xd48   :  { %v6881_v31 = vmul.f32 1.442695, %v6856_v41  ;;  %v6855_v57 = vsub.f32 %v6517_v47, %v6825_v24 }
 0xd49   :  { %v6976_v54 = vpop.permute.xlu1 %6975 }
 0xd4a   :  { %9395 = vpow2.f32 %v6881_v31  ;;  %v6879_v26 = vmul.f32 1.442695, %v6855_v57  ;;  %9038 = vmatprep.subr.mxu0 %v6976_v54 }
 0xd4b   :  { %9039 = vmatpush3.msra.mxu0 %v6976_v54  ;;  %v11436_v49 = vpop.xlane.xlu0 %6941 }
 0xd4c   :  { %9397 = vpow2.f32 %v6879_v26  ;;  %9041 = vmatmul.mubr.msk.f32.vlgmr.msra.gmra.mxu0 %vm1371_vm2, %v6960_v28 }
 0xd4d   :  { %9047 = vmatprep.mubr.msk.f32.mxu0 %vm1371_vm2, %v6961_v48  ;;  %9399 = vrcp.f32 %v6906_v50 }
 0xd4e   :  { %9401 = vrcp.f32 %v6915_v56 }
 0xd4f   :  { %v7065_v60 = vpop.permute.xlu0 %7064  ;;  %9403 = vrcp.f32 %v6912_v10 }
 0xd50   :  { %9043 = vmatprep.subr.mxu0 %v7065_v60  ;;  %9405 = vrcp.f32 %v6918_v29 }
 0xd51   :  { %9044 = vmatpush3.msra.mxu0 %v7065_v60  ;;  %9407 = vrcp.f32 %v6927_v53 }
 0xd53   :  { %v7150_v43 = vpop.permute.xlu0 %7149 }
 0xd57   :  { %v11441_v47 = vpop.eup %9395  ;;  %v7237_v5 = vpop.permute.xlu0 %7236 }
 0xd58   :  { %v6922_v55 = vsel %vm1371_vm2, %v11441_v47, 0.0 }
 0xd59   :  { %v11445_v17 = vpop.eup %9397  ;;  %6923 = vadd.xlane.f32.xlu1 %v6922_v55 }
 0xd5a   :  { %v6919_v38 = vsel %vm1371_vm2, %v11445_v17, 0.0  ;;  %v9400_v4 = vpop.eup %9399 }
 0xd5b   :  { %6920 = vadd.xlane.f32.xlu0 %v6919_v38  ;;  %v9402_v6 = vpop.eup %9401  ;;  %v6962_v12 = vmul.f32 %v9400_v4, %v11340_v58  ;;  %v7324_v50 = vpop.permute.xlu0 %7323  ;;  %v649_v38 = vld [vmem:[#allocation5 + $0x18] sm:$0xff] }
 0xd71   :  { %7497 = vrot.lane.b32.xlu0 %v9970_v34, %s9508_s24  ;;  %v6965_v34 = vmul.f32 %v9402_v6, %v11363_v37 }
 0xd7a   :  { %v6840_v25 = vpop.xlane.xlu1 %6839 }
 0xd7b   :  { %v6860_v40 = vsub.f32 %v11405_v18, %v6840_v25  ;;  %v9404_v18 = vpop.eup %9403 }
 0xd7c   :  { %v6964_v39 = vmul.f32 %v9404_v18, %v11349_v63  ;;  %v9406_v10 = vpop.eup %9405 }
 0xd7d   :  { %v6889_v15 = vmul.f32 1.442695, %v6860_v40  ;;  %v9408_v58 = vpop.eup %9407  ;;  %v6966_v9 = vmul.f32 %v9406_v10, %v11359_v59 }
 0xd7e   :  { %v6939_v23 = vpop.xlane.xlu1 %6938  ;;  %v6969_v41 = vmul.f32 %v9408_v58, %v11372_v21 }
 0xd7f   :  { %9409 = vpow2.f32 %v6889_v15 }
 0xd80   :  { %9411 = vrcp.f32 %v6930_v22 }
 0xd81   :  { %9413 = vrcp.f32 %v6939_v23 }
 0xd82   :  { %v7063_v45 = vpop.permute.xlu1 %7062 }
 0xd83   :  { %9045 = vmatprep.subr.mxu0 %v7063_v45 }
 0xd84   :  { %9046 = vmatpush3.msra.mxu0 %v7063_v45 }
 0xd85   :  { %9048 = vmatmul.mubr.msk.f32.vlgmr.msra.gmra.mxu0 %vm1371_vm2, %v6962_v12 }
 0xd86   :  { %v7152_v20 = vpop.permute.xlu1 %7151  ;;  %9061 = vmatprep.mubr.msk.f32.mxu0 %vm1371_vm2, %v6965_v34 }
 0xd87   :  { %9050 = vmatprep.subr.mxu1 %v7152_v20 }
 0xd88   :  { %9051 = vmatpush3.msra.mxu1 %v7152_v20 }
 0xd89   :  { %9052 = vmatprep.subr.mxu1 %v7150_v43 }
 0xd8a   :  { %v7239_v29 = vpop.permute.xlu1 %7238  ;;  %9053 = vmatpush3.msra.mxu1 %v7150_v43 }
 0xd8b   :  { %9055 = vmatmul.mubr.msk.f32.vlgmr.msra.gmra.mxu1 %vm1371_vm2, %v6964_v39  ;;  %9057 = vmatprep.subr.mxu0 %v7239_v29 }
 0xd8c   :  { %v11458_v37 = vpop.eup %9409  ;;  %9058 = vmatpush3.msra.mxu0 %v7239_v29  ;;  %v6837_v56 = vpop.xlane.xlu0 %6836 }
 0xd8d   :  { %v6859_v22 = vsub.f32 %v11413_v8, %v6837_v56  ;;  %9059 = vmatprep.subr.mxu0 %v7237_v5  ;;  %v6934_v53 = vsel %vm1371_vm2, %v11458_v37, 0.0  ;;  %v9412_v8 = vpop.eup %9411 }
 0xd8e   :  { %6935 = vadd.xlane.f32.xlu1 %v6934_v53  ;;  %v7326_v63 = vpop.permute.xlu1 %7325  ;;  %9060 = vmatpush3.msra.mxu0 %v7237_v5  ;;  %v9414_v13 = vpop.eup %9413  ;;  %v6970_v31 = vmul.f32 %v9412_v8, %v11368_v42 }
 0xd8f   :  { %v6887_v33 = vmul.f32 1.442695, %v6859_v22  ;;  %9062 = vmatmul.mubr.msk.f32.vlgmr.msra.gmra.mxu0 %vm1371_vm2, %v6966_v9  ;;  %9064 = vmatprep.subr.mxu1 %v7326_v63  ;;  %v6973_v57 = vmul.f32 %v9414_v13, %v11409_v3 }
 0xd90   :  { %9065 = vmatpush3.msra.mxu1 %v7326_v63  ;;  %9075 = vmatprep.mubr.msk.f32.mxu0 %vm1371_vm2, %v6969_v41  ;;  %v7411_v59 = vpop.permute.xlu0 %7410 }
 0xd91   :  { %9415 = vpow2.f32 %v6887_v33  ;;  %9066 = vmatprep.subr.mxu1 %v7324_v50 }
 0xd92   :  { %v7413_v24 = vpop.permute.xlu1 %7412  ;;  %9067 = vmatpush3.msra.mxu1 %v7324_v50 }
 0xd93   :  { %9071 = vmatprep.subr.mxu0 %v7413_v24 }
 0xd94   :  { %9072 = vmatpush3.msra.mxu0 %v7413_v24 }
 0xd95   :  { %9073 = vmatprep.subr.mxu0 %v7411_v59 }
 0xd96   :  { %v7500_v21 = vpop.permute.xlu1 %7499  ;;  %9074 = vmatpush3.msra.mxu0 %v7411_v59 }
 0xd97   :  { %9076 = vmatmul.mubr.msk.f32.vlgmr.msra.gmra.mxu0 %vm1371_vm2, %v6970_v31  ;;  %9078 = vmatprep.subr.mxu1 %v7500_v21 }
 0xd98   :  { %9089 = vmatprep.mubr.msk.f32.mxu0 %vm1371_vm2, %v6973_v57  ;;  %v11553_v57 = vld [vmem:[#allocation11_spill] sm:$0xff] }
 0xd9e   :  { %v9416_v54 = vpop.eup %9415 }
 0xd9f   :  { %7586 = vrot.lane.b32.xlu1 %v9974_v35, %s9508_s24  ;;  %v6931_v26 = vsel %vm1371_vm2, %v9416_v54, 0.0 }
 0xda0   :  { %6932 = vadd.xlane.f32.xlu0 %v6931_v26 }
 0xdb6   :  { %7584 = vrot.lane.b32.xlu0 %v9978_v36, %s9508_s24 }
 0xde2   :  { %v6924_v42 = vpop.xlane.xlu1 %6923 }
 0xde3   :  { %9417 = vrcp.f32 %v6924_v42 }
 0xde4   :  { %v6921_v28 = vpop.xlane.xlu0 %6920 }
 0xde5   :  { %9419 = vrcp.f32 %v6921_v28 }
 0xde6   :  { %9421 = vrcp.f32 %v11436_v49 }
 0xde8   :  { %v7498_v35 = vpop.permute.xlu0 %7497 }
 0xdf0   :  { %v9418_v3 = vpop.eup %9417 }
 0xdf1   :  { %v6968_v55 = vmul.f32 %v9418_v3, %v11441_v47 }
 0xdf2   :  { %v9420_v48 = vpop.eup %9419 }
 0xdf3   :  { %v6967_v60 = vmul.f32 %v9420_v48, %v11445_v17  ;;  %v9422_v47 = vpop.eup %9421 }
 0xdf4   :  { %v6974_v43 = vmul.f32 %v9422_v47, %v11390_v62 }
 0xdf5   :  { %9068 = vmatprep.mubr.msk.f32.mxu1 %vm1371_vm2, %v6967_v60 }
 0xdf6   :  { %9069 = vmatmul.mubr.msk.f32.vlgmr.msra.gmra.mxu1 %vm1371_vm2, %v6968_v55 }
 0xdf7   :  { %9079 = vmatpush3.msra.mxu1 %v7500_v21 }
 0xdf8   :  { %9080 = vmatprep.subr.mxu1 %v7498_v35 }
 0xdf9   :  { %9081 = vmatpush3.msra.mxu1 %v7498_v35 }
 0xdfa   :  { %9092 = vmatprep.subr.mxu1 %v649_v38 }
 0xe0c   :  { %v9042_v4 = vpop.f32.mrf.mxu0 }
 0xe0e   :  { %v7053_v49 = vpop.f32.mrf.mxu0 }
 0xe17   :  { %v6936_v36 = vpop.xlane.xlu1 %6935 }
 0xe18   :  { %9423 = vrcp.f32 %v6936_v36 }
 0xe1b   :  { %v7587_v25 = vpop.permute.xlu1 %7586 }
 0xe1c   :  { %9085 = vmatprep.subr.mxu0 %v7587_v25 }
 0xe1d   :  { %9086 = vmatpush3.msra.mxu0 %v7587_v25 }
 0xe25   :  { %v9424_v15 = vpop.eup %9423 }
 0xe26   :  { %v6972_v5 = vmul.f32 %v9424_v15, %v11458_v37 }
 0xe29   :  { %v6933_v17 = vpop.xlane.xlu0 %6932 }
 0xe2a   :  { %9425 = vrcp.f32 %v6933_v17 }
 0xe2d   :  { %v7585_v40 = vpop.permute.xlu0 %7584 }
 0xe2e   :  { %9087 = vmatprep.subr.mxu0 %v7585_v40 }
 0xe2f   :  { %9088 = vmatpush3.msra.mxu0 %v7585_v40 }
 0xe30   :  { %9090 = vmatmul.mubr.msk.f32.vlgmr.msra.gmra.mxu0 %vm1371_vm2, %v6974_v43 }
 0xe37   :  { %v9426_v23 = vpop.eup %9425 }
 0xe38   :  { %v6971_v6 = vmul.f32 %v9426_v23, %v9416_v54  ;;  %v6061_v54 = vadd.f32 %v11314_v30, %v11553_v57 }
 0xe3a   :  { %9082 = vmatprep.mubr.msk.f32.mxu1 %vm1371_vm2, %v6971_v6 }
 0xe3b   :  { %9083 = vmatmul.mubr.msk.f32.vlgmr.msra.gmra.mxu1 %vm1371_vm2, %v6972_v5 }
 0xe3c   :  { %9094 = vmatprep.mubr.msk.f32.mxu1 %vm664_vm1, %v7053_v49  ;;  %9093 = vmatpush3.msra.mxu1 %v649_v38 }
 0xe3f   :  { %9095 = vmatmul.mubr.msk.f32.vlgmr.msra.gmra.mxu1 %vm664_vm1, %v9042_v4 }
 0xe45   :  { %v9049_v62 = vpop.f32.mrf.mxu0 }
 0xe47   :  { %v7140_v45 = vpop.f32.mrf.mxu0 }
 0xe48   :  { %9097 = vmatprep.mubr.msk.f32.mxu1 %vm664_vm1, %v7140_v45 }
 0xe49   :  { %9098 = vmatmul.mubr.msk.f32.gmra.mxu1 %vm664_vm1, %v9049_v62 }
 0xe4b   :  { %v9056_v12 = vpop.f32.mrf.mxu1 }
 0xe4d   :  { %v7227_v34 = vpop.f32.mrf.mxu1 }
 0xe4e   :  { %9100 = vmatprep.mubr.msk.f32.mxu1 %vm664_vm1, %v7227_v34 }
 0xe4f   :  { %v9063_v18 = vpop.f32.mrf.mxu0  ;;  %9101 = vmatmul.mubr.msk.f32.gmra.mxu1 %vm664_vm1, %v9056_v12 }
 0xe51   :  { %v7314_v20 = vpop.f32.mrf.mxu0 }
 0xe52   :  { %9103 = vmatprep.mubr.msk.f32.mxu1 %vm664_vm1, %v7314_v20 }
 0xe53   :  { %9104 = vmatmul.mubr.msk.f32.gmra.mxu1 %vm664_vm1, %v9063_v18 }
 0xe57   :  { %v9077_v50 = vpop.f32.mrf.mxu0 }
 0xe59   :  { %v7488_v29 = vpop.f32.mrf.mxu0 }
 0xeb6   :  { %v9070_v39 = vpop.f32.mrf.mxu1 }
 0xeb8   :  { %v7401_v10 = vpop.f32.mrf.mxu1 }
 0xeb9   :  { %9106 = vmatprep.mubr.msk.f32.mxu1 %vm664_vm1, %v7401_v10 }
 0xeba   :  { %9107 = vmatmul.mubr.msk.f32.gmra.mxu1 %vm664_vm1, %v9070_v39 }
 0xebb   :  { %9109 = vmatprep.mubr.msk.f32.mxu1 %vm664_vm1, %v7488_v29 }
 0xebe   :  { %9110 = vmatmul.mubr.msk.f32.gmra.mxu1 %vm664_vm1, %v9077_v50 }
 0xef0   :  { %v9091_v58 = vpop.f32.mrf.mxu0 }
 0xef2   :  { %v7662_v22 = vpop.f32.mrf.mxu0 }
 0xefb   :  { %v9084_v37 = vpop.f32.mrf.mxu1 }
 0xefd   :  { %v7575_v56 = vpop.f32.mrf.mxu1 }
 0xefe   :  { %9112 = vmatprep.mubr.msk.f32.mxu1 %vm664_vm1, %v7575_v56 }
 0xeff   :  { %v9096_v53 = vpop.f32.mrf.mxu1  ;;  %9113 = vmatmul.mubr.msk.f32.gmra.mxu1 %vm664_vm1, %v9084_v37 }
 0xf00   :  { %v7865_v9 = vadd.f32 %v9096_v53, %v11243_v32  ;;  %9115 = vmatprep.mubr.msk.f32.mxu1 %vm664_vm1, %v7662_v22 }
 0xf01   :  { %v7785_v63 = vpop.f32.mrf.mxu1 }
 0xf02   :  { %7881 = vst.msk [vmem:[#allocation7 + $0x8] sm:$0xff] %vm76_vm0, %v7865_v9  ;;  %v7864_v41 = vadd.f32 %v7785_v63, %v11249_v7 }
 0xf03   :  { %9116 = vmatmul.mubr.msk.f32.gmra.mxu1 %vm664_vm1, %v9091_v58 }
 0xf04   :  { %7880 = vst.msk [vmem:[#allocation7] sm:$0xff] %vm76_vm0, %v7864_v41 }
 0xf09   :  { %v9099_v33 = vpop.f32.mrf.mxu1 }
 0xf0a   :  { %v7867_v8 = vadd.f32 %v9099_v33, %v11257_v1 }
 0xf0b   :  { %v7795_v24 = vpop.f32.mrf.mxu1 }
 0xf0c   :  { %7883 = vst.msk [vmem:[#allocation7 + $0x18] sm:$0xff] %vm76_vm0, %v7867_v8  ;;  %v7866_v13 = vadd.f32 %v7795_v24, %v11263_v19 }
 0xf0e   :  { %7882 = vst.msk [vmem:[#allocation7 + $0x10] sm:$0xff] %vm76_vm0, %v7866_v13 }
 0xf0f   :  { %v9102_v32 = vpop.f32.mrf.mxu1 }
 0xf10   :  { %v7869_v59 = vadd.f32 %v9102_v32, %v11268_v51 }
 0xf11   :  { %v7805_v31 = vpop.f32.mrf.mxu1 }
 0xf12   :  { %7885 = vst.msk [vmem:[#allocation7 + $0x28] sm:$0xff] %vm76_vm0, %v7869_v59  ;;  %v7868_v7 = vadd.f32 %v7805_v31, %v11277_v27 }
 0xf13   :  { %v9105_v21 = vpop.f32.mrf.mxu1 }
 0xf14   :  { %7884 = vst.msk [vmem:[#allocation7 + $0x20] sm:$0xff] %vm76_vm0, %v7868_v7  ;;  %v7871_v1 = vadd.f32 %v9105_v21, %v11284_v11 }
 0xf15   :  { %v7815_v26 = vpop.f32.mrf.mxu1 }
 0xf16   :  { %7887 = vst.msk [vmem:[#allocation7 + $0x38] sm:$0xff] %vm76_vm0, %v7871_v1  ;;  %v7870_v19 = vadd.f32 %v7815_v26, %v6061_v54 }
 0xf18   :  { %7886 = vst.msk [vmem:[#allocation7 + $0x30] sm:$0xff] %vm76_vm0, %v7870_v19 }
 0xf7a   :  { %v9108_v51 = vpop.f32.mrf.mxu1 }
 0xf7b   :  { %v7873_v42 = vadd.f32 %v9108_v51, %v11317_v16 }
 0xf7c   :  { %v7825_v28 = vpop.f32.mrf.mxu1 }
 0xf7d   :  { %7889 = vst.msk [vmem:[#allocation7 + $0x48] sm:$0xff] %vm76_vm0, %v7873_v42  ;;  %v7872_v27 = vadd.f32 %v7825_v28, %v11321_v61 }
 0xf7e   :  { %v9111_v3 = vpop.f32.mrf.mxu1 }
 0xf7f   :  { %7888 = vst.msk [vmem:[#allocation7 + $0x40] sm:$0xff] %vm76_vm0, %v7872_v27  ;;  %v7875_v30 = vadd.f32 %v9111_v3, %v11325_v2 }
 0xf80   :  { %v7835_v11 = vpop.f32.mrf.mxu1 }
 0xf81   :  { %7891 = vst.msk [vmem:[#allocation7 + $0x58] sm:$0xff] %vm76_vm0, %v7875_v30  ;;  %v7874_v48 = vadd.f32 %v7835_v11, %v11328_v44 }
 0xf83   :  { %7890 = vst.msk [vmem:[#allocation7 + $0x50] sm:$0xff] %vm76_vm0, %v7874_v48 }
 0xfbf   :  { %v9114_v60 = vpop.f32.mrf.mxu1 }
 0xfc0   :  { %v7877_v16 = vadd.f32 %v9114_v60, %v11377_v0 }
 0xfc1   :  { %v7845_v55 = vpop.f32.mrf.mxu1 }
 0xfc2   :  { %7893 = vst.msk [vmem:[#allocation7 + $0x68] sm:$0xff] %vm76_vm0, %v7877_v16  ;;  %v7876_v61 = vadd.f32 %v7845_v55, %v11380_v46 }
 0xfc3   :  { %v9117_v35 = vpop.f32.mrf.mxu1 }
 0xfc4   :  { %7892 = vst.msk [vmem:[#allocation7 + $0x60] sm:$0xff] %vm76_vm0, %v7876_v61  ;;  %v7879_v2 = vadd.f32 %v9117_v35, %v11383_v14 }
 0xfc5   :  { %v7855_v38 = vpop.f32.mrf.mxu1 }
 0xfc6   :  { %7895 = vst.msk [vmem:[#allocation7 + $0x78] sm:$0xff] %vm76_vm0, %v7879_v2  ;;  %v7878_v44 = vadd.f32 %v7855_v38, %v11386_v52 }
 0xfc8   :  { %7894 = vst.msk [vmem:[#allocation7 + $0x70] sm:$0xff] %vm76_vm0, %v7878_v44 }
 0xfc9   :  { %9478 = shalt.err (!%p9475_p0)
}
 0xfca   :  { %7907 = dma.vmem_to_hbm [thread:$0]  %s7902_s26, 2048, %s11549_s8, [#allocation4], %s9494_s30, %s9494_s30, %s9495_s9  }
 0xfcb   :  { %9491 = dma.done.wait [#allocation4], 2048  }
 0xfcc   :  { %9492 = vsyncadd [#allocation4], 4294965248 }
 0xfcd   :  { %7911 = vsyncpa [#allocation3], 1 }
 0xfce   :  { %7912 = vsyncpa [#allocation6], 1 }
 0xfcf   :  { %7913 = vsyncpa [#allocation4], 1 }

</bundles_post_ra>
